<compile_context>
chip_gen: v7x
topology: tpu7x:2x2x1
jax: 0.10.0
libtpu: 0.0.40
codegen_flags: <defaults>
</compile_context>

<pallas_src>
import functools

import jax
import jax.numpy as jnp
from jax import lax
from jax.experimental import pallas as pl
from jax.experimental.pallas import tpu as pltpu


def _round_up(x, m):
    return ((x + m - 1) // m) * m


# ----------------------------------------------------------------------------
# Pallas kernels
# ----------------------------------------------------------------------------
def _conv_mm_kernel(w_ref, p_ref, b_ref, o_ref, *, relu):
    """out[Co, TM] = W[Co, K] @ P[K, TM] + bias, optional ReLU (single K block)."""
    acc = jnp.dot(w_ref[...], p_ref[...], preferred_element_type=jnp.float32)
    acc = acc + b_ref[...]
    if relu:
        acc = jnp.maximum(acc, 0.0)
    o_ref[...] = acc


def _conv_s1_implicit_kernel(w_ref, x_ref, b_ref, o_ref, *, offsets):
    """Implicit-GEMM 3x3 / stride-1 / pad-1 conv on a flat padded activation.

    w_ref: (9, TCo, Cin_p) bf16   per-tap weight slabs (tap = di*3 + dj)
    x_ref: (Cin_p, Xcols)  bf16   zero-padded activation, flattened over (n,hp,wp)
    b_ref: (TCo, 1)        f32
    o_ref: (TCo, Mcomp)    f32    output over the flat padded domain

    For stride 1 every tap is a constant shift off = di*Wp + dj of the flat
    padded image, so the nine shifted operands are static lane slices of the
    resident activation slab -- no im2col patch matrix is ever materialised.
    Flat positions that fall in the padding ring compute garbage and are
    sliced off by the wrapper.
    """
    m = o_ref.shape[-1]
    off0 = offsets[0]
    o_ref[...] = b_ref[...] + jnp.dot(
        w_ref[0], x_ref[:, off0:off0 + m], preferred_element_type=jnp.float32)
    for t in range(1, 9):
        off = offsets[t]
        o_ref[...] += jnp.dot(
            w_ref[t], x_ref[:, off:off + m], preferred_element_type=jnp.float32)


# ----------------------------------------------------------------------------
# Conv wrappers
# ----------------------------------------------------------------------------
def _pick_m_tile(m):
    """Lane-dense M tile: up to 2048 wide, but >= 2 grid steps when M >= 256
    so the 'parallel' axis can shard across v7x's two TensorCores."""
    mp128 = _round_up(m, 128)
    if mp128 < 256:
        return mp128
    ntiles = max(2, pl.cdiv(mp128, 2048))
    return _round_up(pl.cdiv(mp128, ntiles), 128)


def _im2col_T(x, stride):
    """x: (C, N, H, W) -> patch matrix (C*9, N*Ho*Wo); K order = c*9 + di*3 + dj."""
    C, N, H, W = x.shape
    xp = jnp.pad(x, ((0, 0), (0, 0), (1, 1), (1, 1)))
    Ho = (H - 1) // stride + 1
    Wo = (W - 1) // stride + 1
    cols = []
    for di in range(3):
        for dj in range(3):
            cols.append(xp[:, :,
                           di:di + stride * (Ho - 1) + 1:stride,
                           dj:dj + stride * (Wo - 1) + 1:stride])
    pat = jnp.stack(cols, axis=1)            # (C, 9, N, Ho, Wo)
    return pat.reshape(C * 9, N * Ho * Wo), Ho, Wo


def conv3x3_s2(x, w, b, *, relu=True):
    """3x3 / stride-2 / pad-1 conv, channel-first (C, N, H, W) in and out.

    bf16 im2col (cast BEFORE building patches) + one lane-dense MXU matmul
    with bias/ReLU fused in the epilogue.
    """
    C, N, H, W = x.shape
    Cout = w.shape[0]
    P, Ho, Wo = _im2col_T(x.astype(jnp.bfloat16), 2)   # bf16 before im2col
    K, M = P.shape
    Wm = w.reshape(Cout, C * 9).astype(jnp.bfloat16)

    Cp = _round_up(Cout, 16)          # bf16 sublane packing for the weight slab
    Kp = _round_up(K, 16)
    TM = _pick_m_tile(M)
    Mp = _round_up(M, TM)

    w_pad = jnp.pad(Wm, ((0, Cp - Cout), (0, Kp - K)))
    p_pad = jnp.pad(P, ((0, Kp - K), (0, Mp - M)))
    b_pad = jnp.pad(b, (0, Cp - Cout)).astype(jnp.float32).reshape(Cp, 1)

    out = pl.pallas_call(
        functools.partial(_conv_mm_kernel, relu=relu),
        out_shape=jax.ShapeDtypeStruct((Cp, Mp), jnp.float32),
        grid_spec=pltpu.PrefetchScalarGridSpec(
            num_scalar_prefetch=0,
            grid=(Mp // TM,),
            in_specs=[
                pl.BlockSpec((Cp, Kp), lambda i: (0, 0)),   # weights (resident)
                pl.BlockSpec((Kp, TM), lambda i: (0, i)),   # patch tile
                pl.BlockSpec((Cp, 1), lambda i: (0, 0)),    # bias
            ],
            out_specs=pl.BlockSpec((Cp, TM), lambda i: (0, i)),
        ),
        compiler_params=pltpu.CompilerParams(
            dimension_semantics=("parallel",)),
    )(w_pad, p_pad, b_pad)

    return out[:Cout, :M].reshape(Cout, N, Ho, Wo)     # no transpose needed


def conv3x3_s1(x, w, b):
    """3x3 / stride-1 / pad-1 conv, channel-first (C, N, H, W) in and out.

    Implicit GEMM: no im2col patch matrix.  The padded activation is flattened
    to (Cin, N*Hp*Wp) bf16 and kept resident in VMEM; the kernel accumulates
    nine statically-shifted (Cout, Cin) @ (Cin, M) matmuls.
    """
    Cin, N, H, W = x.shape
    Cout = w.shape[0]
    Hp, Wp = H + 2, W + 2
    Mflat = N * Hp * Wp
    Mcomp = _round_up(Mflat, 128)            # flat compute domain
    halo = 2 * Wp + 2                        # largest tap offset
    Xcols = Mcomp + _round_up(halo, 128)

    Cin_p = _round_up(Cin, 16)
    Cp = _round_up(Cout, 16)

    xp = jnp.pad(x.astype(jnp.bfloat16),
                 ((0, Cin_p - Cin), (0, 0), (1, 1), (1, 1)))
    xflat = xp.reshape(Cin_p, Mflat)
    xflat = jnp.pad(xflat, ((0, 0), (0, Xcols - Mflat)))

    # Per-tap weight slabs, tap-major: wt[di*3+dj, co, c] = w[co, c, di, dj]
    wt = jnp.transpose(w, (2, 3, 0, 1)).reshape(9, Cout, Cin).astype(jnp.bfloat16)
    wt = jnp.pad(wt, ((0, 0), (0, Cp - Cout), (0, Cin_p - Cin)))
    b_pad = jnp.pad(b, (0, Cp - Cout)).astype(jnp.float32).reshape(Cp, 1)

    offsets = tuple(di * Wp + dj for di in range(3) for dj in range(3))

    # Tile Cout when it is large so the grid has >= 2 "parallel" steps (v7x).
    TCo = 128 if (Cp >= 256 and Cp % 128 == 0) else Cp

    out = pl.pallas_call(
        functools.partial(_conv_s1_implicit_kernel, offsets=offsets),
        out_shape=jax.ShapeDtypeStruct((Cp, Mcomp), jnp.float32),
        grid_spec=pltpu.PrefetchScalarGridSpec(
            num_scalar_prefetch=0,
            grid=(Cp // TCo,),
            in_specs=[
                pl.BlockSpec((9, TCo, Cin_p), lambda j: (0, j, 0)),  # weights
                pl.BlockSpec((Cin_p, Xcols), lambda j: (0, 0)),      # activation (resident)
                pl.BlockSpec((TCo, 1), lambda j: (j, 0)),            # bias
            ],
            out_specs=pl.BlockSpec((TCo, Mcomp), lambda j: (j, 0)),
        ),
        compiler_params=pltpu.CompilerParams(
            dimension_semantics=("parallel",)),
    )(wt, xflat, b_pad)

    out = out[:Cout, :Mflat].reshape(Cout, N, Hp, Wp)
    return out[:, :, :H, :W]                 # drop the padded-ring garbage


# ----------------------------------------------------------------------------
# XLA glue
# ----------------------------------------------------------------------------
def upsample2x_bilinear(x):
    """x2 bilinear upsample over the last two axes, matching
    F.interpolate(scale_factor=2, mode='bilinear', align_corners=False).
    Closed form for scale 2: 0.25/0.75 lerp with edge replication."""
    def up_axis(t, axis):
        def sl(s):
            idx = [slice(None)] * t.ndim
            idx[axis] = s
            return tuple(idx)
        left = jnp.concatenate([t[sl(slice(0, 1))], t[sl(slice(None, -1))]], axis=axis)
        right = jnp.concatenate([t[sl(slice(1, None))], t[sl(slice(-1, None))]], axis=axis)
        even = 0.25 * left + 0.75 * t
        odd = 0.75 * t + 0.25 * right
        stacked = jnp.stack([even, odd], axis=axis + 1)
        new_shape = list(t.shape)
        new_shape[axis] = 2 * t.shape[axis]
        return stacked.reshape(new_shape)

    x = up_axis(x, x.ndim - 2)
    x = up_axis(x, x.ndim - 1)
    return x


# ----------------------------------------------------------------------------
# PFDM model (parameters + forward)
# ----------------------------------------------------------------------------
def init_params(key, in_channels, base):
    shapes = {
        "down1": (base, in_channels),
        "down2": (2 * base, base),
        "down3": (4 * base, 2 * base),
        "down4": (8 * base, 4 * base),
        "up3": (4 * base, 8 * base),
        "up2": (2 * base, 4 * base),
        "up1": (base, 2 * base),
        "final": (in_channels, base),
    }
    params = {}
    for name, (co, ci) in shapes.items():
        key, kw, kb = jax.random.split(key, 3)
        params[name + "_w"] = 0.1 * jax.random.normal(kw, (co, ci, 3, 3), jnp.float32)
        params[name + "_b"] = 0.01 * jax.random.normal(kb, (co,), jnp.float32)
    return params


def pfdm_forward(p, x):
    """x: (N, Cin, H, W) -> (N, Cin, H//2, W//2); the final conv acts on f1,
    which lives at half the input resolution, exactly as in the reference."""
    xc = jnp.transpose(x, (1, 0, 2, 3))       # channel-first (C, N, H, W)

    # Encoder (DownsampleBlock = conv3x3 stride 2 + ReLU)
    f1 = conv3x3_s2(xc, p["down1_w"], p["down1_b"], relu=True)
    f2 = conv3x3_s2(f1, p["down2_w"], p["down2_b"], relu=True)
    f3 = conv3x3_s2(f2, p["down3_w"], p["down3_b"], relu=True)
    f4 = conv3x3_s2(f3, p["down4_w"], p["down4_b"], relu=True)

    # TODO(synk): MRes / FIM / GSA definitions were not provided -> identity.
    f4_processed = f4

    def upsample_block(xin, skip, name):
        up = upsample2x_bilinear(xin)
        cu, cs = up.shape[0], skip.shape[0]
        skip_in = skip
        if cs < cu:
            # TODO(synk): zero-pad skip channels; the reference add is
            # channel-mismatched with identity MRes/FIM (see module header).
            skip_in = jnp.pad(skip, ((0, cu - cs), (0, 0), (0, 0), (0, 0)))
        conv = conv3x3_s1(up + skip_in, p[name + "_w"], p[name + "_b"])
        return skip + conv                     # f_i + up_i(...); gsa_i == id

    f3 = upsample_block(f4_processed, f3, "up3")
    f2 = upsample_block(f3, f2, "up2")
    f1 = upsample_block(f2, f1, "up1")

    out = conv3x3_s1(f1, p["final_w"], p["final_b"])
    return jnp.transpose(out, (1, 0, 2, 3))    # back to NCHW


# ----------------------------------------------------------------------------
# Pure-JAX reference (f32 convs) for a numerical sanity check
# ----------------------------------------------------------------------------
def _ref_conv(x, w, b, stride):
    y = lax.conv_general_dilated(
        x, w, window_strides=(stride, stride), padding=((1, 1), (1, 1)),
        dimension_numbers=("NCHW", "OIHW", "NCHW"),
        precision=lax.Precision.HIGHEST)
    return y + b.reshape(1, -1, 1, 1)


def pfdm_forward_ref(p, x):
    f1 = jnp.maximum(_ref_conv(x, p["down1_w"], p["down1_b"], 2), 0.0)
    f2 = jnp.maximum(_ref_conv(f1, p["down2_w"], p["down2_b"], 2), 0.0)
    f3 = jnp.maximum(_ref_conv(f2, p["down3_w"], p["down3_b"], 2), 0.0)
    f4 = jnp.maximum(_ref_conv(f3, p["down4_w"], p["down4_b"], 2), 0.0)
    f4_processed = f4

    def up_block(xin, skip, name):
        up = upsample2x_bilinear(xin)
        cu, cs = up.shape[1], skip.shape[1]
        skip_in = skip
        if cs < cu:
            skip_in = jnp.pad(skip, ((0, 0), (0, cu - cs), (0, 0), (0, 0)))
        conv = _ref_conv(up + skip_in, p[name + "_w"], p[name + "_b"], 1)
        return skip + conv

    f3 = up_block(f4_processed, f3, "up3")
    f2 = up_block(f3, f2, "up2")
    f1 = up_block(f2, f1, "up1")
    return _ref_conv(f1, p["final_w"], p["final_b"], 1)


if __name__ == "__main__":
    # Small shapes consistent with the module: 4 stride-2 downsamples need
    # H, W divisible by 16.  Output lives at H//2 x W//2 (see header).
    N, Cin, H, W = 2, 3, 32, 32
    base = 8

    key = jax.random.PRNGKey(0)
    kx, kp = jax.random.split(key)
    x = jax.random.normal(kx, (N, Cin, H, W), jnp.float32)
    params = init_params(kp, Cin, base)

    out = jax.block_until_ready(jax.jit(pfdm_forward)(params, x))
    assert out.shape == (N, Cin, H // 2, W // 2), out.shape
    assert bool(jnp.all(jnp.isfinite(out)))

    # Pallas path uses bf16 MXU operands with f32 accumulation; compare to the
    # f32 XLA reference with a loose absolute tolerance.
    ref = jax.block_until_ready(jax.jit(pfdm_forward_ref)(params, x))
    max_err = float(jnp.max(jnp.abs(out - ref)))
    assert max_err < 0.1, max_err

    print("KERNEL_OK")
</pallas_src>

<mosaic_0001>
module attributes {stable_mosaic.version = 11 : i64} {
  func.func @_conv_mm_kernel(%arg0: i32, %arg1: memref<16x32xbf16, #tpu.memory_space<vmem>>, %arg2: memref<32x256xbf16, #tpu.memory_space<vmem>>, %arg3: memref<16x1xf32, #tpu.memory_space<vmem>>, %arg4: memref<16x256xf32, #tpu.memory_space<vmem>>) attributes {dimension_semantics = [#tpu.dimension_semantics<parallel>], iteration_bounds = array<i64: 2>, scalar_prefetch = 0 : i64, scratch_operands = 0 : i64, tpu.core_type = #tpu.core_type<tc>, window_params = [{pipeline_mode = #tpu.pipeline_mode<synchronous>, transform_indices = @transform_0, window_bounds = array<i64: 16, 32>}, {transform_indices = @transform_1, window_bounds = array<i64: 32, 256>}, {pipeline_mode = #tpu.pipeline_mode<synchronous>, transform_indices = @transform_2, window_bounds = array<i64: 16, 1>}, {transform_indices = @transform_3, window_bounds = array<i64: 16, 256>}]} {
    %c0 = arith.constant 0 : index
    %c0_0 = arith.constant 0 : index
    %0 = vector.load %arg1[%c0, %c0_0] : memref<16x32xbf16, #tpu.memory_space<vmem>>, vector<16x32xbf16>
    %c0_1 = arith.constant 0 : index
    %c0_2 = arith.constant 0 : index
    %1 = vector.load %arg2[%c0_1, %c0_2] : memref<32x256xbf16, #tpu.memory_space<vmem>>, vector<32x256xbf16>
    %cst = arith.constant dense<0.000000e+00> : vector<16x256xf32>
    %2 = tpu.matmul %0, %1, %cst {dimension_numbers = #tpu.dot_dimension_numbers<[1], [0], [0], [1], [0, 0, 1, 1], [], []>} : vector<16x32xbf16>, vector<32x256xbf16>, vector<16x256xf32> -> vector<16x256xf32>
    %c0_3 = arith.constant 0 : index
    %c0_4 = arith.constant 0 : index
    %3 = vector.load %arg3[%c0_3, %c0_4] : memref<16x1xf32, #tpu.memory_space<vmem>>, vector<16x1xf32>
    %4 = vector.broadcast %3 : vector<16x1xf32> to vector<16x256xf32>
    %5 = arith.addf %2, %4 : vector<16x256xf32>
    %cst_5 = arith.constant 0.000000e+00 : f32
    %6 = vector.broadcast %cst_5 : f32 to vector<16x256xf32>
    %7 = arith.maximumf %5, %6 : vector<16x256xf32>
    %c0_6 = arith.constant 0 : index
    %c0_7 = arith.constant 0 : index
    %8 = vector.load %arg4[%c0_6, %c0_7] : memref<16x256xf32, #tpu.memory_space<vmem>>, vector<16x256xf32>
    tpu.vector_store %arg4[%c0_6, %c0_7], %7 {strides = array<i32>} : memref<16x256xf32, #tpu.memory_space<vmem>>, vector<16x256xf32>,
    return
  }
  func.func @transform_0(%arg0: i32) -> (i32, i32) {
    %c0_i32 = arith.constant 0 : i32
    %c0_i32_0 = arith.constant 0 : i32
    %c0_i32_1 = arith.constant 0 : i32
    return %c0_i32, %c0_i32_0 : i32, i32
  }
  func.func @transform_1(%arg0: i32) -> (i32, i32) {
    %c0_i32 = arith.constant 0 : i32
    %c0_i32_0 = arith.constant 0 : i32
    return %c0_i32, %arg0 : i32, i32
  }
  func.func @transform_2(%arg0: i32) -> (i32, i32) {
    %c0_i32 = arith.constant 0 : i32
    %c0_i32_0 = arith.constant 0 : i32
    %c0_i32_1 = arith.constant 0 : i32
    return %c0_i32, %c0_i32_0 : i32, i32
  }
  func.func @transform_3(%arg0: i32) -> (i32, i32) {
    %c0_i32 = arith.constant 0 : i32
    %c0_i32_0 = arith.constant 0 : i32
    return %c0_i32, %arg0 : i32, i32
  }
}

module attributes {stable_mosaic.version = 11 : i64} {
  func.func @_conv_mm_kernel(%arg0: i32, %arg1: memref<16x80xbf16, #tpu.memory_space<vmem>>, %arg2: memref<80x128xbf16, #tpu.memory_space<vmem>>, %arg3: memref<16x1xf32, #tpu.memory_space<vmem>>, %arg4: memref<16x128xf32, #tpu.memory_space<vmem>>) attributes {dimension_semantics = [#tpu.dimension_semantics<parallel>], iteration_bounds = array<i64: 1>, scalar_prefetch = 0 : i64, scratch_operands = 0 : i64, tpu.core_type = #tpu.core_type<tc>, window_params = [{pipeline_mode = #tpu.pipeline_mode<synchronous>, transform_indices = @transform_0, window_bounds = array<i64: 16, 80>}, {transform_indices = @transform_1, window_bounds = array<i64: 80, 128>}, {pipeline_mode = #tpu.pipeline_mode<synchronous>, transform_indices = @transform_2, window_bounds = array<i64: 16, 1>}, {transform_indices = @transform_3, window_bounds = array<i64: 16, 128>}]} {
    %c0 = arith.constant 0 : index
    %c0_0 = arith.constant 0 : index
    %0 = vector.load %arg1[%c0, %c0_0] : memref<16x80xbf16, #tpu.memory_space<vmem>>, vector<16x80xbf16>
    %c0_1 = arith.constant 0 : index
    %c0_2 = arith.constant 0 : index
    %1 = vector.load %arg2[%c0_1, %c0_2] : memref<80x128xbf16, #tpu.memory_space<vmem>>, vector<80x128xbf16>
    %cst = arith.constant dense<0.000000e+00> : vector<16x128xf32>
    %2 = tpu.matmul %0, %1, %cst {dimension_numbers = #tpu.dot_dimension_numbers<[1], [0], [0], [1], [0, 0, 1, 1], [], []>} : vector<16x80xbf16>, vector<80x128xbf16>, vector<16x128xf32> -> vector<16x128xf32>
    %c0_3 = arith.constant 0 : index
    %c0_4 = arith.constant 0 : index
    %3 = vector.load %arg3[%c0_3, %c0_4] : memref<16x1xf32, #tpu.memory_space<vmem>>, vector<16x1xf32>
    %4 = vector.broadcast %3 : vector<16x1xf32> to vector<16x128xf32>
    %5 = arith.addf %2, %4 : vector<16x128xf32>
    %cst_5 = arith.constant 0.000000e+00 : f32
    %6 = vector.broadcast %cst_5 : f32 to vector<16x128xf32>
    %7 = arith.maximumf %5, %6 : vector<16x128xf32>
    %c0_6 = arith.constant 0 : index
    %c0_7 = arith.constant 0 : index
    %8 = vector.load %arg4[%c0_6, %c0_7] : memref<16x128xf32, #tpu.memory_space<vmem>>, vector<16x128xf32>
    tpu.vector_store %arg4[%c0_6, %c0_7], %7 {strides = array<i32>} : memref<16x128xf32, #tpu.memory_space<vmem>>, vector<16x128xf32>,
    return
  }
  func.func @transform_0(%arg0: i32) -> (i32, i32) {
    %c0_i32 = arith.constant 0 : i32
    %c0_i32_0 = arith.constant 0 : i32
    %c0_i32_1 = arith.constant 0 : i32
    return %c0_i32, %c0_i32_0 : i32, i32
  }
  func.func @transform_1(%arg0: i32) -> (i32, i32) {
    %c0_i32 = arith.constant 0 : i32
    %c0_i32_0 = arith.constant 0 : i32
    return %c0_i32, %arg0 : i32, i32
  }
  func.func @transform_2(%arg0: i32) -> (i32, i32) {
    %c0_i32 = arith.constant 0 : i32
    %c0_i32_0 = arith.constant 0 : i32
    %c0_i32_1 = arith.constant 0 : i32
    return %c0_i32, %c0_i32_0 : i32, i32
  }
  func.func @transform_3(%arg0: i32) -> (i32, i32) {
    %c0_i32 = arith.constant 0 : i32
    %c0_i32_0 = arith.constant 0 : i32
    return %c0_i32, %arg0 : i32, i32
  }
}

module attributes {stable_mosaic.version = 11 : i64} {
  func.func @_conv_mm_kernel(%arg0: i32, %arg1: memref<32x144xbf16, #tpu.memory_space<vmem>>, %arg2: memref<144x128xbf16, #tpu.memory_space<vmem>>, %arg3: memref<32x1xf32, #tpu.memory_space<vmem>>, %arg4: memref<32x128xf32, #tpu.memory_space<vmem>>) attributes {dimension_semantics = [#tpu.dimension_semantics<parallel>], iteration_bounds = array<i64: 1>, scalar_prefetch = 0 : i64, scratch_operands = 0 : i64, tpu.core_type = #tpu.core_type<tc>, window_params = [{pipeline_mode = #tpu.pipeline_mode<synchronous>, transform_indices = @transform_0, window_bounds = array<i64: 32, 144>}, {transform_indices = @transform_1, window_bounds = array<i64: 144, 128>}, {pipeline_mode = #tpu.pipeline_mode<synchronous>, transform_indices = @transform_2, window_bounds = array<i64: 32, 1>}, {transform_indices = @transform_3, window_bounds = array<i64: 32, 128>}]} {
    %c0 = arith.constant 0 : index
    %c0_0 = arith.constant 0 : index
    %0 = vector.load %arg1[%c0, %c0_0] : memref<32x144xbf16, #tpu.memory_space<vmem>>, vector<32x144xbf16>
    %c0_1 = arith.constant 0 : index
    %c0_2 = arith.constant 0 : index
    %1 = vector.load %arg2[%c0_1, %c0_2] : memref<144x128xbf16, #tpu.memory_space<vmem>>, vector<144x128xbf16>
    %cst = arith.constant dense<0.000000e+00> : vector<32x128xf32>
    %2 = tpu.matmul %0, %1, %cst {dimension_numbers = #tpu.dot_dimension_numbers<[1], [0], [0], [1], [0, 0, 1, 1], [], []>} : vector<32x144xbf16>, vector<144x128xbf16>, vector<32x128xf32> -> vector<32x128xf32>
    %c0_3 = arith.constant 0 : index
    %c0_4 = arith.constant 0 : index
    %3 = vector.load %arg3[%c0_3, %c0_4] : memref<32x1xf32, #tpu.memory_space<vmem>>, vector<32x1xf32>
    %4 = vector.broadcast %3 : vector<32x1xf32> to vector<32x128xf32>
    %5 = arith.addf %2, %4 : vector<32x128xf32>
    %cst_5 = arith.constant 0.000000e+00 : f32
    %6 = vector.broadcast %cst_5 : f32 to vector<32x128xf32>
    %7 = arith.maximumf %5, %6 : vector<32x128xf32>
    %c0_6 = arith.constant 0 : index
    %c0_7 = arith.constant 0 : index
    %8 = vector.load %arg4[%c0_6, %c0_7] : memref<32x128xf32, #tpu.memory_space<vmem>>, vector<32x128xf32>
    tpu.vector_store %arg4[%c0_6, %c0_7], %7 {strides = array<i32>} : memref<32x128xf32, #tpu.memory_space<vmem>>, vector<32x128xf32>,
    return
  }
  func.func @transform_0(%arg0: i32) -> (i32, i32) {
    %c0_i32 = arith.constant 0 : i32
    %c0_i32_0 = arith.constant 0 : i32
    %c0_i32_1 = arith.constant 0 : i32
    return %c0_i32, %c0_i32_0 : i32, i32
  }
  func.func @transform_1(%arg0: i32) -> (i32, i32) {
    %c0_i32 = arith.constant 0 : i32
    %c0_i32_0 = arith.constant 0 : i32
    return %c0_i32, %arg0 : i32, i32
  }
  func.func @transform_2(%arg0: i32) -> (i32, i32) {
    %c0_i32 = arith.constant 0 : i32
    %c0_i32_0 = arith.constant 0 : i32
    %c0_i32_1 = arith.constant 0 : i32
    return %c0_i32, %c0_i32_0 : i32, i32
  }
  func.func @transform_3(%arg0: i32) -> (i32, i32) {
    %c0_i32 = arith.constant 0 : i32
    %c0_i32_0 = arith.constant 0 : i32
    return %c0_i32, %arg0 : i32, i32
  }
}

module attributes {stable_mosaic.version = 11 : i64} {
  func.func @_conv_mm_kernel(%arg0: i32, %arg1: memref<64x288xbf16, #tpu.memory_space<vmem>>, %arg2: memref<288x128xbf16, #tpu.memory_space<vmem>>, %arg3: memref<64x1xf32, #tpu.memory_space<vmem>>, %arg4: memref<64x128xf32, #tpu.memory_space<vmem>>) attributes {dimension_semantics = [#tpu.dimension_semantics<parallel>], iteration_bounds = array<i64: 1>, scalar_prefetch = 0 : i64, scratch_operands = 0 : i64, tpu.core_type = #tpu.core_type<tc>, window_params = [{pipeline_mode = #tpu.pipeline_mode<synchronous>, transform_indices = @transform_0, window_bounds = array<i64: 64, 288>}, {transform_indices = @transform_1, window_bounds = array<i64: 288, 128>}, {pipeline_mode = #tpu.pipeline_mode<synchronous>, transform_indices = @transform_2, window_bounds = array<i64: 64, 1>}, {transform_indices = @transform_3, window_bounds = array<i64: 64, 128>}]} {
    %c0 = arith.constant 0 : index
    %c0_0 = arith.constant 0 : index
    %0 = vector.load %arg1[%c0, %c0_0] : memref<64x288xbf16, #tpu.memory_space<vmem>>, vector<64x288xbf16>
    %c0_1 = arith.constant 0 : index
    %c0_2 = arith.constant 0 : index
    %1 = vector.load %arg2[%c0_1, %c0_2] : memref<288x128xbf16, #tpu.memory_space<vmem>>, vector<288x128xbf16>
    %cst = arith.constant dense<0.000000e+00> : vector<64x128xf32>
    %2 = tpu.matmul %0, %1, %cst {dimension_numbers = #tpu.dot_dimension_numbers<[1], [0], [0], [1], [0, 0, 1, 1], [], []>} : vector<64x288xbf16>, vector<288x128xbf16>, vector<64x128xf32> -> vector<64x128xf32>
    %c0_3 = arith.constant 0 : index
    %c0_4 = arith.constant 0 : index
    %3 = vector.load %arg3[%c0_3, %c0_4] : memref<64x1xf32, #tpu.memory_space<vmem>>, vector<64x1xf32>
    %4 = vector.broadcast %3 : vector<64x1xf32> to vector<64x128xf32>
    %5 = arith.addf %2, %4 : vector<64x128xf32>
    %cst_5 = arith.constant 0.000000e+00 : f32
    %6 = vector.broadcast %cst_5 : f32 to vector<64x128xf32>
    %7 = arith.maximumf %5, %6 : vector<64x128xf32>
    %c0_6 = arith.constant 0 : index
    %c0_7 = arith.constant 0 : index
    %8 = vector.load %arg4[%c0_6, %c0_7] : memref<64x128xf32, #tpu.memory_space<vmem>>, vector<64x128xf32>
    tpu.vector_store %arg4[%c0_6, %c0_7], %7 {strides = array<i32>} : memref<64x128xf32, #tpu.memory_space<vmem>>, vector<64x128xf32>,
    return
  }
  func.func @transform_0(%arg0: i32) -> (i32, i32) {
    %c0_i32 = arith.constant 0 : i32
    %c0_i32_0 = arith.constant 0 : i32
    %c0_i32_1 = arith.constant 0 : i32
    return %c0_i32, %c0_i32_0 : i32, i32
  }
  func.func @transform_1(%arg0: i32) -> (i32, i32) {
    %c0_i32 = arith.constant 0 : i32
    %c0_i32_0 = arith.constant 0 : i32
    return %c0_i32, %arg0 : i32, i32
  }
  func.func @transform_2(%arg0: i32) -> (i32, i32) {
    %c0_i32 = arith.constant 0 : i32
    %c0_i32_0 = arith.constant 0 : i32
    %c0_i32_1 = arith.constant 0 : i32
    return %c0_i32, %c0_i32_0 : i32, i32
  }
  func.func @transform_3(%arg0: i32) -> (i32, i32) {
    %c0_i32 = arith.constant 0 : i32
    %c0_i32_0 = arith.constant 0 : i32
    return %c0_i32, %arg0 : i32, i32
  }
}

module attributes {stable_mosaic.version = 11 : i64} {
  func.func @_conv_s1_implicit_kernel(%arg0: i32, %arg1: memref<9x32x64xbf16, #tpu.memory_space<vmem>>, %arg2: memref<64x256xbf16, #tpu.memory_space<vmem>>, %arg3: memref<32x1xf32, #tpu.memory_space<vmem>>, %arg4: memref<32x128xf32, #tpu.memory_space<vmem>>) attributes {dimension_semantics = [#tpu.dimension_semantics<parallel>], iteration_bounds = array<i64: 1>, scalar_prefetch = 0 : i64, scratch_operands = 0 : i64, tpu.core_type = #tpu.core_type<tc>, window_params = [{transform_indices = @transform_0, window_bounds = array<i64: 9, 32, 64>}, {pipeline_mode = #tpu.pipeline_mode<synchronous>, transform_indices = @transform_1, window_bounds = array<i64: 64, 256>}, {transform_indices = @transform_2, window_bounds = array<i64: 32, 1>}, {transform_indices = @transform_3, window_bounds = array<i64: 32, 128>}]} {
    %c0 = arith.constant 0 : index
    %c0_0 = arith.constant 0 : index
    %0 = vector.load %arg3[%c0, %c0_0] : memref<32x1xf32, #tpu.memory_space<vmem>>, vector<32x1xf32>
    %c0_1 = arith.constant 0 : index
    %c0_2 = arith.constant 0 : index
    %c0_3 = arith.constant 0 : index
    %1 = vector.load %arg1[%c0_1, %c0_2, %c0_3] : memref<9x32x64xbf16, #tpu.memory_space<vmem>>, vector<1x32x64xbf16>
    %2 = vector.shape_cast %1 : vector<1x32x64xbf16> to vector<32x64xbf16>
    %c0_4 = arith.constant 0 : index
    %c0_5 = arith.constant 0 : index
    %3 = vector.load %arg2[%c0_4, %c0_5] : memref<64x256xbf16, #tpu.memory_space<vmem>>, vector<64x128xbf16>
    %cst = arith.constant dense<0.000000e+00> : vector<32x128xf32>
    %4 = tpu.matmul %2, %3, %cst {dimension_numbers = #tpu.dot_dimension_numbers<[1], [0], [0], [1], [0, 0, 1, 1], [], []>} : vector<32x64xbf16>, vector<64x128xbf16>, vector<32x128xf32> -> vector<32x128xf32>
    %5 = vector.broadcast %0 : vector<32x1xf32> to vector<32x128xf32>
    %6 = arith.addf %5, %4 : vector<32x128xf32>
    %c0_6 = arith.constant 0 : index
    %c0_7 = arith.constant 0 : index
    %7 = vector.load %arg4[%c0_6, %c0_7] : memref<32x128xf32, #tpu.memory_space<vmem>>, vector<32x128xf32>
    tpu.vector_store %arg4[%c0_6, %c0_7], %6 {strides = array<i32>} : memref<32x128xf32, #tpu.memory_space<vmem>>, vector<32x128xf32>,
    %c0_8 = arith.constant 0 : index
    %c0_9 = arith.constant 0 : index
    %8 = vector.load %arg4[%c0_8, %c0_9] : memref<32x128xf32, #tpu.memory_space<vmem>>, vector<32x128xf32>
    %c1 = arith.constant 1 : index
    %c0_10 = arith.constant 0 : index
    %c0_11 = arith.constant 0 : index
    %9 = vector.load %arg1[%c1, %c0_10, %c0_11] : memref<9x32x64xbf16, #tpu.memory_space<vmem>>, vector<1x32x64xbf16>
    %10 = vector.shape_cast %9 : vector<1x32x64xbf16> to vector<32x64xbf16>
    %c0_12 = arith.constant 0 : index
    %c1_13 = arith.constant 1 : index
    %11 = vector.load %arg2[%c0_12, %c1_13] : memref<64x256xbf16, #tpu.memory_space<vmem>>, vector<64x128xbf16>
    %cst_14 = arith.constant dense<0.000000e+00> : vector<32x128xf32>
    %12 = tpu.matmul %10, %11, %cst_14 {dimension_numbers = #tpu.dot_dimension_numbers<[1], [0], [0], [1], [0, 0, 1, 1], [], []>} : vector<32x64xbf16>, vector<64x128xbf16>, vector<32x128xf32> -> vector<32x128xf32>
    %13 = arith.addf %8, %12 : vector<32x128xf32>
    %c0_15 = arith.constant 0 : index
    %c0_16 = arith.constant 0 : index
    %14 = vector.load %arg4[%c0_15, %c0_16] : memref<32x128xf32, #tpu.memory_space<vmem>>, vector<32x128xf32>
    tpu.vector_store %arg4[%c0_15, %c0_16], %13 {strides = array<i32>} : memref<32x128xf32, #tpu.memory_space<vmem>>, vector<32x128xf32>,
    %c0_17 = arith.constant 0 : index
    %c0_18 = arith.constant 0 : index
    %15 = vector.load %arg4[%c0_17, %c0_18] : memref<32x128xf32, #tpu.memory_space<vmem>>, vector<32x128xf32>
    %c2 = arith.constant 2 : index
    %c0_19 = arith.constant 0 : index
    %c0_20 = arith.constant 0 : index
    %16 = vector.load %arg1[%c2, %c0_19, %c0_20] : memref<9x32x64xbf16, #tpu.memory_space<vmem>>, vector<1x32x64xbf16>
    %17 = vector.shape_cast %16 : vector<1x32x64xbf16> to vector<32x64xbf16>
    %c0_21 = arith.constant 0 : index
    %c2_22 = arith.constant 2 : index
    %18 = vector.load %arg2[%c0_21, %c2_22] : memref<64x256xbf16, #tpu.memory_space<vmem>>, vector<64x128xbf16>
    %cst_23 = arith.constant dense<0.000000e+00> : vector<32x128xf32>
    %19 = tpu.matmul %17, %18, %cst_23 {dimension_numbers = #tpu.dot_dimension_numbers<[1], [0], [0], [1], [0, 0, 1, 1], [], []>} : vector<32x64xbf16>, vector<64x128xbf16>, vector<32x128xf32> -> vector<32x128xf32>
    %20 = arith.addf %15, %19 : vector<32x128xf32>
    %c0_24 = arith.constant 0 : index
    %c0_25 = arith.constant 0 : index
    %21 = vector.load %arg4[%c0_24, %c0_25] : memref<32x128xf32, #tpu.memory_space<vmem>>, vector<32x128xf32>
    tpu.vector_store %arg4[%c0_24, %c0_25], %20 {strides = array<i32>} : memref<32x128xf32, #tpu.memory_space<vmem>>, vector<32x128xf32>,
    %c0_26 = arith.constant 0 : index
    %c0_27 = arith.constant 0 : index
    %22 = vector.load %arg4[%c0_26, %c0_27] : memref<32x128xf32, #tpu.memory_space<vmem>>, vector<32x128xf32>
    %c3 = arith.constant 3 : index
    %c0_28 = arith.constant 0 : index
    %c0_29 = arith.constant 0 : index
    %23 = vector.load %arg1[%c3, %c0_28, %c0_29] : memref<9x32x64xbf16, #tpu.memory_space<vmem>>, vector<1x32x64xbf16>
    %24 = vector.shape_cast %23 : vector<1x32x64xbf16> to vector<32x64xbf16>
    %c0_30 = arith.constant 0 : index
    %c6 = arith.constant 6 : index
    %25 = vector.load %arg2[%c0_30, %c6] : memref<64x256xbf16, #tpu.memory_space<vmem>>, vector<64x128xbf16>
    %cst_31 = arith.constant dense<0.000000e+00> : vector<32x128xf32>
    %26 = tpu.matmul %24, %25, %cst_31 {dimension_numbers = #tpu.dot_dimension_numbers<[1], [0], [0], [1], [0, 0, 1, 1], [], []>} : vector<32x64xbf16>, vector<64x128xbf16>, vector<32x128xf32> -> vector<32x128xf32>
    %27 = arith.addf %22, %26 : vector<32x128xf32>
    %c0_32 = arith.constant 0 : index
    %c0_33 = arith.constant 0 : index
    %28 = vector.load %arg4[%c0_32, %c0_33] : memref<32x128xf32, #tpu.memory_space<vmem>>, vector<32x128xf32>
    tpu.vector_store %arg4[%c0_32, %c0_33], %27 {strides = array<i32>} : memref<32x128xf32, #tpu.memory_space<vmem>>, vector<32x128xf32>,
    %c0_34 = arith.constant 0 : index
    %c0_35 = arith.constant 0 : index
    %29 = vector.load %arg4[%c0_34, %c0_35] : memref<32x128xf32, #tpu.memory_space<vmem>>, vector<32x128xf32>
    %c4 = arith.constant 4 : index
    %c0_36 = arith.constant 0 : index
    %c0_37 = arith.constant 0 : index
    %30 = vector.load %arg1[%c4, %c0_36, %c0_37] : memref<9x32x64xbf16, #tpu.memory_space<vmem>>, vector<1x32x64xbf16>
    %31 = vector.shape_cast %30 : vector<1x32x64xbf16> to vector<32x64xbf16>
    %c0_38 = arith.constant 0 : index
    %c7 = arith.constant 7 : index
    %32 = vector.load %arg2[%c0_38, %c7] : memref<64x256xbf16, #tpu.memory_space<vmem>>, vector<64x128xbf16>
    %cst_39 = arith.constant dense<0.000000e+00> : vector<32x128xf32>
    %33 = tpu.matmul %31, %32, %cst_39 {dimension_numbers = #tpu.dot_dimension_numbers<[1], [0], [0], [1], [0, 0, 1, 1], [], []>} : vector<32x64xbf16>, vector<64x128xbf16>, vector<32x128xf32> -> vector<32x128xf32>
    %34 = arith.addf %29, %33 : vector<32x128xf32>
    %c0_40 = arith.constant 0 : index
    %c0_41 = arith.constant 0 : index
    %35 = vector.load %arg4[%c0_40, %c0_41] : memref<32x128xf32, #tpu.memory_space<vmem>>, vector<32x128xf32>
    tpu.vector_store %arg4[%c0_40, %c0_41], %34 {strides = array<i32>} : memref<32x128xf32, #tpu.memory_space<vmem>>, vector<32x128xf32>,
    %c0_42 = arith.constant 0 : index
    %c0_43 = arith.constant 0 : index
    %36 = vector.load %arg4[%c0_42, %c0_43] : memref<32x128xf32, #tpu.memory_space<vmem>>, vector<32x128xf32>
    %c5 = arith.constant 5 : index
    %c0_44 = arith.constant 0 : index
    %c0_45 = arith.constant 0 : index
    %37 = vector.load %arg1[%c5, %c0_44, %c0_45] : memref<9x32x64xbf16, #tpu.memory_space<vmem>>, vector<1x32x64xbf16>
    %38 = vector.shape_cast %37 : vector<1x32x64xbf16> to vector<32x64xbf16>
    %c0_46 = arith.constant 0 : index
    %c8 = arith.constant 8 : index
    %39 = vector.load %arg2[%c0_46, %c8] : memref<64x256xbf16, #tpu.memory_space<vmem>>, vector<64x128xbf16>
    %cst_47 = arith.constant dense<0.000000e+00> : vector<32x128xf32>
    %40 = tpu.matmul %38, %39, %cst_47 {dimension_numbers = #tpu.dot_dimension_numbers<[1], [0], [0], [1], [0, 0, 1, 1], [], []>} : vector<32x64xbf16>, vector<64x128xbf16>, vector<32x128xf32> -> vector<32x128xf32>
    %41 = arith.addf %36, %40 : vector<32x128xf32>
    %c0_48 = arith.constant 0 : index
    %c0_49 = arith.constant 0 : index
    %42 = vector.load %arg4[%c0_48, %c0_49] : memref<32x128xf32, #tpu.memory_space<vmem>>, vector<32x128xf32>
    tpu.vector_store %arg4[%c0_48, %c0_49], %41 {strides = array<i32>} : memref<32x128xf32, #tpu.memory_space<vmem>>, vector<32x128xf32>,
    %c0_50 = arith.constant 0 : index
    %c0_51 = arith.constant 0 : index
    %43 = vector.load %arg4[%c0_50, %c0_51] : memref<32x128xf32, #tpu.memory_space<vmem>>, vector<32x128xf32>
    %c6_52 = arith.constant 6 : index
    %c0_53 = arith.constant 0 : index
    %c0_54 = arith.constant 0 : index
    %44 = vector.load %arg1[%c6_52, %c0_53, %c0_54] : memref<9x32x64xbf16, #tpu.memory_space<vmem>>, vector<1x32x64xbf16>
    %45 = vector.shape_cast %44 : vector<1x32x64xbf16> to vector<32x64xbf16>
    %c0_55 = arith.constant 0 : index
    %c12 = arith.constant 12 : index
    %46 = vector.load %arg2[%c0_55, %c12] : memref<64x256xbf16, #tpu.memory_space<vmem>>, vector<64x128xbf16>
    %cst_56 = arith.constant dense<0.000000e+00> : vector<32x128xf32>
    %47 = tpu.matmul %45, %46, %cst_56 {dimension_numbers = #tpu.dot_dimension_numbers<[1], [0], [0], [1], [0, 0, 1, 1], [], []>} : vector<32x64xbf16>, vector<64x128xbf16>, vector<32x128xf32> -> vector<32x128xf32>
    %48 = arith.addf %43, %47 : vector<32x128xf32>
    %c0_57 = arith.constant 0 : index
    %c0_58 = arith.constant 0 : index
    %49 = vector.load %arg4[%c0_57, %c0_58] : memref<32x128xf32, #tpu.memory_space<vmem>>, vector<32x128xf32>
    tpu.vector_store %arg4[%c0_57, %c0_58], %48 {strides = array<i32>} : memref<32x128xf32, #tpu.memory_space<vmem>>, vector<32x128xf32>,
    %c0_59 = arith.constant 0 : index
    %c0_60 = arith.constant 0 : index
    %50 = vector.load %arg4[%c0_59, %c0_60] : memref<32x128xf32, #tpu.memory_space<vmem>>, vector<32x128xf32>
    %c7_61 = arith.constant 7 : index
    %c0_62 = arith.constant 0 : index
    %c0_63 = arith.constant 0 : index
    %51 = vector.load %arg1[%c7_61, %c0_62, %c0_63] : memref<9x32x64xbf16, #tpu.memory_space<vmem>>, vector<1x32x64xbf16>
    %52 = vector.shape_cast %51 : vector<1x32x64xbf16> to vector<32x64xbf16>
    %c0_64 = arith.constant 0 : index
    %c13 = arith.constant 13 : index
    %53 = vector.load %arg2[%c0_64, %c13] : memref<64x256xbf16, #tpu.memory_space<vmem>>, vector<64x128xbf16>
    %cst_65 = arith.constant dense<0.000000e+00> : vector<32x128xf32>
    %54 = tpu.matmul %52, %53, %cst_65 {dimension_numbers = #tpu.dot_dimension_numbers<[1], [0], [0], [1], [0, 0, 1, 1], [], []>} : vector<32x64xbf16>, vector<64x128xbf16>, vector<32x128xf32> -> vector<32x128xf32>
    %55 = arith.addf %50, %54 : vector<32x128xf32>
    %c0_66 = arith.constant 0 : index
    %c0_67 = arith.constant 0 : index
    %56 = vector.load %arg4[%c0_66, %c0_67] : memref<32x128xf32, #tpu.memory_space<vmem>>, vector<32x128xf32>
    tpu.vector_store %arg4[%c0_66, %c0_67], %55 {strides = array<i32>} : memref<32x128xf32, #tpu.memory_space<vmem>>, vector<32x128xf32>,
    %c0_68 = arith.constant 0 : index
    %c0_69 = arith.constant 0 : index
    %57 = vector.load %arg4[%c0_68, %c0_69] : memref<32x128xf32, #tpu.memory_space<vmem>>, vector<32x128xf32>
    %c8_70 = arith.constant 8 : index
    %c0_71 = arith.constant 0 : index
    %c0_72 = arith.constant 0 : index
    %58 = vector.load %arg1[%c8_70, %c0_71, %c0_72] : memref<9x32x64xbf16, #tpu.memory_space<vmem>>, vector<1x32x64xbf16>
    %59 = vector.shape_cast %58 : vector<1x32x64xbf16> to vector<32x64xbf16>
    %c0_73 = arith.constant 0 : index
    %c14 = arith.constant 14 : index
    %60 = vector.load %arg2[%c0_73, %c14] : memref<64x256xbf16, #tpu.memory_space<vmem>>, vector<64x128xbf16>
    %cst_74 = arith.constant dense<0.000000e+00> : vector<32x128xf32>
    %61 = tpu.matmul %59, %60, %cst_74 {dimension_numbers = #tpu.dot_dimension_numbers<[1], [0], [0], [1], [0, 0, 1, 1], [], []>} : vector<32x64xbf16>, vector<64x128xbf16>, vector<32x128xf32> -> vector<32x128xf32>
    %62 = arith.addf %57, %61 : vector<32x128xf32>
    %c0_75 = arith.constant 0 : index
    %c0_76 = arith.constant 0 : index
    %63 = vector.load %arg4[%c0_75, %c0_76] : memref<32x128xf32, #tpu.memory_space<vmem>>, vector<32x128xf32>
    tpu.vector_store %arg4[%c0_75, %c0_76], %62 {strides = array<i32>} : memref<32x128xf32, #tpu.memory_space<vmem>>, vector<32x128xf32>,
    return
  }
  func.func @transform_0(%arg0: i32) -> (i32, i32, i32) {
    %c0_i32 = arith.constant 0 : i32
    %c0_i32_0 = arith.constant 0 : i32
    %c0_i32_1 = arith.constant 0 : i32
    return %c0_i32, %arg0, %c0_i32_0 : i32, i32, i32
  }
  func.func @transform_1(%arg0: i32) -> (i32, i32) {
    %c0_i32 = arith.constant 0 : i32
    %c0_i32_0 = arith.constant 0 : i32
    %c0_i32_1 = arith.constant 0 : i32
    return %c0_i32, %c0_i32_0 : i32, i32
  }
  func.func @transform_2(%arg0: i32) -> (i32, i32) {
    %c0_i32 = arith.constant 0 : i32
    %c0_i32_0 = arith.constant 0 : i32
    return %arg0, %c0_i32 : i32, i32
  }
  func.func @transform_3(%arg0: i32) -> (i32, i32) {
    %c0_i32 = arith.constant 0 : i32
    %c0_i32_0 = arith.constant 0 : i32
    return %arg0, %c0_i32 : i32, i32
  }
}

module attributes {stable_mosaic.version = 11 : i64} {
  func.func @_conv_s1_implicit_kernel(%arg0: i32, %arg1: memref<9x16x32xbf16, #tpu.memory_space<vmem>>, %arg2: memref<32x384xbf16, #tpu.memory_space<vmem>>, %arg3: memref<16x1xf32, #tpu.memory_space<vmem>>, %arg4: memref<16x256xf32, #tpu.memory_space<vmem>>) attributes {dimension_semantics = [#tpu.dimension_semantics<parallel>], iteration_bounds = array<i64: 1>, scalar_prefetch = 0 : i64, scratch_operands = 0 : i64, tpu.core_type = #tpu.core_type<tc>, window_params = [{transform_indices = @transform_0, window_bounds = array<i64: 9, 16, 32>}, {pipeline_mode = #tpu.pipeline_mode<synchronous>, transform_indices = @transform_1, window_bounds = array<i64: 32, 384>}, {transform_indices = @transform_2, window_bounds = array<i64: 16, 1>}, {transform_indices = @transform_3, window_bounds = array<i64: 16, 256>}]} {
    %c0 = arith.constant 0 : index
    %c0_0 = arith.constant 0 : index
    %0 = vector.load %arg3[%c0, %c0_0] : memref<16x1xf32, #tpu.memory_space<vmem>>, vector<16x1xf32>
    %c0_1 = arith.constant 0 : index
    %c0_2 = arith.constant 0 : index
    %c0_3 = arith.constant 0 : index
    %1 = vector.load %arg1[%c0_1, %c0_2, %c0_3] : memref<9x16x32xbf16, #tpu.memory_space<vmem>>, vector<1x16x32xbf16>
    %2 = vector.shape_cast %1 : vector<1x16x32xbf16> to vector<16x32xbf16>
    %c0_4 = arith.constant 0 : index
    %c0_5 = arith.constant 0 : index
    %3 = vector.load %arg2[%c0_4, %c0_5] : memref<32x384xbf16, #tpu.memory_space<vmem>>, vector<32x256xbf16>
    %cst = arith.constant dense<0.000000e+00> : vector<16x256xf32>
    %4 = tpu.matmul %2, %3, %cst {dimension_numbers = #tpu.dot_dimension_numbers<[1], [0], [0], [1], [0, 0, 1, 1], [], []>} : vector<16x32xbf16>, vector<32x256xbf16>, vector<16x256xf32> -> vector<16x256xf32>
    %5 = vector.broadcast %0 : vector<16x1xf32> to vector<16x256xf32>
    %6 = arith.addf %5, %4 : vector<16x256xf32>
    %c0_6 = arith.constant 0 : index
    %c0_7 = arith.constant 0 : index
    %7 = vector.load %arg4[%c0_6, %c0_7] : memref<16x256xf32, #tpu.memory_space<vmem>>, vector<16x256xf32>
    tpu.vector_store %arg4[%c0_6, %c0_7], %6 {strides = array<i32>} : memref<16x256xf32, #tpu.memory_space<vmem>>, vector<16x256xf32>,
    %c0_8 = arith.constant 0 : index
    %c0_9 = arith.constant 0 : index
    %8 = vector.load %arg4[%c0_8, %c0_9] : memref<16x256xf32, #tpu.memory_space<vmem>>, vector<16x256xf32>
    %c1 = arith.constant 1 : index
    %c0_10 = arith.constant 0 : index
    %c0_11 = arith.constant 0 : index
    %9 = vector.load %arg1[%c1, %c0_10, %c0_11] : memref<9x16x32xbf16, #tpu.memory_space<vmem>>, vector<1x16x32xbf16>
    %10 = vector.shape_cast %9 : vector<1x16x32xbf16> to vector<16x32xbf16>
    %c0_12 = arith.constant 0 : index
    %c1_13 = arith.constant 1 : index
    %11 = vector.load %arg2[%c0_12, %c1_13] : memref<32x384xbf16, #tpu.memory_space<vmem>>, vector<32x256xbf16>
    %cst_14 = arith.constant dense<0.000000e+00> : vector<16x256xf32>
    %12 = tpu.matmul %10, %11, %cst_14 {dimension_numbers = #tpu.dot_dimension_numbers<[1], [0], [0], [1], [0, 0, 1, 1], [], []>} : vector<16x32xbf16>, vector<32x256xbf16>, vector<16x256xf32> -> vector<16x256xf32>
    %13 = arith.addf %8, %12 : vector<16x256xf32>
    %c0_15 = arith.constant 0 : index
    %c0_16 = arith.constant 0 : index
    %14 = vector.load %arg4[%c0_15, %c0_16] : memref<16x256xf32, #tpu.memory_space<vmem>>, vector<16x256xf32>
    tpu.vector_store %arg4[%c0_15, %c0_16], %13 {strides = array<i32>} : memref<16x256xf32, #tpu.memory_space<vmem>>, vector<16x256xf32>,
    %c0_17 = arith.constant 0 : index
    %c0_18 = arith.constant 0 : index
    %15 = vector.load %arg4[%c0_17, %c0_18] : memref<16x256xf32, #tpu.memory_space<vmem>>, vector<16x256xf32>
    %c2 = arith.constant 2 : index
    %c0_19 = arith.constant 0 : index
    %c0_20 = arith.constant 0 : index
    %16 = vector.load %arg1[%c2, %c0_19, %c0_20] : memref<9x16x32xbf16, #tpu.memory_space<vmem>>, vector<1x16x32xbf16>
    %17 = vector.shape_cast %16 : vector<1x16x32xbf16> to vector<16x32xbf16>
    %c0_21 = arith.constant 0 : index
    %c2_22 = arith.constant 2 : index
    %18 = vector.load %arg2[%c0_21, %c2_22] : memref<32x384xbf16, #tpu.memory_space<vmem>>, vector<32x256xbf16>
    %cst_23 = arith.constant dense<0.000000e+00> : vector<16x256xf32>
    %19 = tpu.matmul %17, %18, %cst_23 {dimension_numbers = #tpu.dot_dimension_numbers<[1], [0], [0], [1], [0, 0, 1, 1], [], []>} : vector<16x32xbf16>, vector<32x256xbf16>, vector<16x256xf32> -> vector<16x256xf32>
    %20 = arith.addf %15, %19 : vector<16x256xf32>
    %c0_24 = arith.constant 0 : index
    %c0_25 = arith.constant 0 : index
    %21 = vector.load %arg4[%c0_24, %c0_25] : memref<16x256xf32, #tpu.memory_space<vmem>>, vector<16x256xf32>
    tpu.vector_store %arg4[%c0_24, %c0_25], %20 {strides = array<i32>} : memref<16x256xf32, #tpu.memory_space<vmem>>, vector<16x256xf32>,
    %c0_26 = arith.constant 0 : index
    %c0_27 = arith.constant 0 : index
    %22 = vector.load %arg4[%c0_26, %c0_27] : memref<16x256xf32, #tpu.memory_space<vmem>>, vector<16x256xf32>
    %c3 = arith.constant 3 : index
    %c0_28 = arith.constant 0 : index
    %c0_29 = arith.constant 0 : index
    %23 = vector.load %arg1[%c3, %c0_28, %c0_29] : memref<9x16x32xbf16, #tpu.memory_space<vmem>>, vector<1x16x32xbf16>
    %24 = vector.shape_cast %23 : vector<1x16x32xbf16> to vector<16x32xbf16>
    %c0_30 = arith.constant 0 : index
    %c10 = arith.constant 10 : index
    %25 = vector.load %arg2[%c0_30, %c10] : memref<32x384xbf16, #tpu.memory_space<vmem>>, vector<32x256xbf16>
    %cst_31 = arith.constant dense<0.000000e+00> : vector<16x256xf32>
    %26 = tpu.matmul %24, %25, %cst_31 {dimension_numbers = #tpu.dot_dimension_numbers<[1], [0], [0], [1], [0, 0, 1, 1], [], []>} : vector<16x32xbf16>, vector<32x256xbf16>, vector<16x256xf32> -> vector<16x256xf32>
    %27 = arith.addf %22, %26 : vector<16x256xf32>
    %c0_32 = arith.constant 0 : index
    %c0_33 = arith.constant 0 : index
    %28 = vector.load %arg4[%c0_32, %c0_33] : memref<16x256xf32, #tpu.memory_space<vmem>>, vector<16x256xf32>
    tpu.vector_store %arg4[%c0_32, %c0_33], %27 {strides = array<i32>} : memref<16x256xf32, #tpu.memory_space<vmem>>, vector<16x256xf32>,
    %c0_34 = arith.constant 0 : index
    %c0_35 = arith.constant 0 : index
    %29 = vector.load %arg4[%c0_34, %c0_35] : memref<16x256xf32, #tpu.memory_space<vmem>>, vector<16x256xf32>
    %c4 = arith.constant 4 : index
    %c0_36 = arith.constant 0 : index
    %c0_37 = arith.constant 0 : index
    %30 = vector.load %arg1[%c4, %c0_36, %c0_37] : memref<9x16x32xbf16, #tpu.memory_space<vmem>>, vector<1x16x32xbf16>
    %31 = vector.shape_cast %30 : vector<1x16x32xbf16> to vector<16x32xbf16>
    %c0_38 = arith.constant 0 : index
    %c11 = arith.constant 11 : index
    %32 = vector.load %arg2[%c0_38, %c11] : memref<32x384xbf16, #tpu.memory_space<vmem>>, vector<32x256xbf16>
    %cst_39 = arith.constant dense<0.000000e+00> : vector<16x256xf32>
    %33 = tpu.matmul %31, %32, %cst_39 {dimension_numbers = #tpu.dot_dimension_numbers<[1], [0], [0], [1], [0, 0, 1, 1], [], []>} : vector<16x32xbf16>, vector<32x256xbf16>, vector<16x256xf32> -> vector<16x256xf32>
    %34 = arith.addf %29, %33 : vector<16x256xf32>
    %c0_40 = arith.constant 0 : index
    %c0_41 = arith.constant 0 : index
    %35 = vector.load %arg4[%c0_40, %c0_41] : memref<16x256xf32, #tpu.memory_space<vmem>>, vector<16x256xf32>
    tpu.vector_store %arg4[%c0_40, %c0_41], %34 {strides = array<i32>} : memref<16x256xf32, #tpu.memory_space<vmem>>, vector<16x256xf32>,
    %c0_42 = arith.constant 0 : index
    %c0_43 = arith.constant 0 : index
    %36 = vector.load %arg4[%c0_42, %c0_43] : memref<16x256xf32, #tpu.memory_space<vmem>>, vector<16x256xf32>
    %c5 = arith.constant 5 : index
    %c0_44 = arith.constant 0 : index
    %c0_45 = arith.constant 0 : index
    %37 = vector.load %arg1[%c5, %c0_44, %c0_45] : memref<9x16x32xbf16, #tpu.memory_space<vmem>>, vector<1x16x32xbf16>
    %38 = vector.shape_cast %37 : vector<1x16x32xbf16> to vector<16x32xbf16>
    %c0_46 = arith.constant 0 : index
    %c12 = arith.constant 12 : index
    %39 = vector.load %arg2[%c0_46, %c12] : memref<32x384xbf16, #tpu.memory_space<vmem>>, vector<32x256xbf16>
    %cst_47 = arith.constant dense<0.000000e+00> : vector<16x256xf32>
    %40 = tpu.matmul %38, %39, %cst_47 {dimension_numbers = #tpu.dot_dimension_numbers<[1], [0], [0], [1], [0, 0, 1, 1], [], []>} : vector<16x32xbf16>, vector<32x256xbf16>, vector<16x256xf32> -> vector<16x256xf32>
    %41 = arith.addf %36, %40 : vector<16x256xf32>
    %c0_48 = arith.constant 0 : index
    %c0_49 = arith.constant 0 : index
    %42 = vector.load %arg4[%c0_48, %c0_49] : memref<16x256xf32, #tpu.memory_space<vmem>>, vector<16x256xf32>
    tpu.vector_store %arg4[%c0_48, %c0_49], %41 {strides = array<i32>} : memref<16x256xf32, #tpu.memory_space<vmem>>, vector<16x256xf32>,
    %c0_50 = arith.constant 0 : index
    %c0_51 = arith.constant 0 : index
    %43 = vector.load %arg4[%c0_50, %c0_51] : memref<16x256xf32, #tpu.memory_space<vmem>>, vector<16x256xf32>
    %c6 = arith.constant 6 : index
    %c0_52 = arith.constant 0 : index
    %c0_53 = arith.constant 0 : index
    %44 = vector.load %arg1[%c6, %c0_52, %c0_53] : memref<9x16x32xbf16, #tpu.memory_space<vmem>>, vector<1x16x32xbf16>
    %45 = vector.shape_cast %44 : vector<1x16x32xbf16> to vector<16x32xbf16>
    %c0_54 = arith.constant 0 : index
    %c20 = arith.constant 20 : index
    %46 = vector.load %arg2[%c0_54, %c20] : memref<32x384xbf16, #tpu.memory_space<vmem>>, vector<32x256xbf16>
    %cst_55 = arith.constant dense<0.000000e+00> : vector<16x256xf32>
    %47 = tpu.matmul %45, %46, %cst_55 {dimension_numbers = #tpu.dot_dimension_numbers<[1], [0], [0], [1], [0, 0, 1, 1], [], []>} : vector<16x32xbf16>, vector<32x256xbf16>, vector<16x256xf32> -> vector<16x256xf32>
    %48 = arith.addf %43, %47 : vector<16x256xf32>
    %c0_56 = arith.constant 0 : index
    %c0_57 = arith.constant 0 : index
    %49 = vector.load %arg4[%c0_56, %c0_57] : memref<16x256xf32, #tpu.memory_space<vmem>>, vector<16x256xf32>
    tpu.vector_store %arg4[%c0_56, %c0_57], %48 {strides = array<i32>} : memref<16x256xf32, #tpu.memory_space<vmem>>, vector<16x256xf32>,
    %c0_58 = arith.constant 0 : index
    %c0_59 = arith.constant 0 : index
    %50 = vector.load %arg4[%c0_58, %c0_59] : memref<16x256xf32, #tpu.memory_space<vmem>>, vector<16x256xf32>
    %c7 = arith.constant 7 : index
    %c0_60 = arith.constant 0 : index
    %c0_61 = arith.constant 0 : index
    %51 = vector.load %arg1[%c7, %c0_60, %c0_61] : memref<9x16x32xbf16, #tpu.memory_space<vmem>>, vector<1x16x32xbf16>
    %52 = vector.shape_cast %51 : vector<1x16x32xbf16> to vector<16x32xbf16>
    %c0_62 = arith.constant 0 : index
    %c21 = arith.constant 21 : index
    %53 = vector.load %arg2[%c0_62, %c21] : memref<32x384xbf16, #tpu.memory_space<vmem>>, vector<32x256xbf16>
    %cst_63 = arith.constant dense<0.000000e+00> : vector<16x256xf32>
    %54 = tpu.matmul %52, %53, %cst_63 {dimension_numbers = #tpu.dot_dimension_numbers<[1], [0], [0], [1], [0, 0, 1, 1], [], []>} : vector<16x32xbf16>, vector<32x256xbf16>, vector<16x256xf32> -> vector<16x256xf32>
    %55 = arith.addf %50, %54 : vector<16x256xf32>
    %c0_64 = arith.constant 0 : index
    %c0_65 = arith.constant 0 : index
    %56 = vector.load %arg4[%c0_64, %c0_65] : memref<16x256xf32, #tpu.memory_space<vmem>>, vector<16x256xf32>
    tpu.vector_store %arg4[%c0_64, %c0_65], %55 {strides = array<i32>} : memref<16x256xf32, #tpu.memory_space<vmem>>, vector<16x256xf32>,
    %c0_66 = arith.constant 0 : index
    %c0_67 = arith.constant 0 : index
    %57 = vector.load %arg4[%c0_66, %c0_67] : memref<16x256xf32, #tpu.memory_space<vmem>>, vector<16x256xf32>
    %c8 = arith.constant 8 : index
    %c0_68 = arith.constant 0 : index
    %c0_69 = arith.constant 0 : index
    %58 = vector.load %arg1[%c8, %c0_68, %c0_69] : memref<9x16x32xbf16, #tpu.memory_space<vmem>>, vector<1x16x32xbf16>
    %59 = vector.shape_cast %58 : vector<1x16x32xbf16> to vector<16x32xbf16>
    %c0_70 = arith.constant 0 : index
    %c22 = arith.constant 22 : index
    %60 = vector.load %arg2[%c0_70, %c22] : memref<32x384xbf16, #tpu.memory_space<vmem>>, vector<32x256xbf16>
    %cst_71 = arith.constant dense<0.000000e+00> : vector<16x256xf32>
    %61 = tpu.matmul %59, %60, %cst_71 {dimension_numbers = #tpu.dot_dimension_numbers<[1], [0], [0], [1], [0, 0, 1, 1], [], []>} : vector<16x32xbf16>, vector<32x256xbf16>, vector<16x256xf32> -> vector<16x256xf32>
    %62 = arith.addf %57, %61 : vector<16x256xf32>
    %c0_72 = arith.constant 0 : index
    %c0_73 = arith.constant 0 : index
    %63 = vector.load %arg4[%c0_72, %c0_73] : memref<16x256xf32, #tpu.memory_space<vmem>>, vector<16x256xf32>
    tpu.vector_store %arg4[%c0_72, %c0_73], %62 {strides = array<i32>} : memref<16x256xf32, #tpu.memory_space<vmem>>, vector<16x256xf32>,
    return
  }
  func.func @transform_0(%arg0: i32) -> (i32, i32, i32) {
    %c0_i32 = arith.constant 0 : i32
    %c0_i32_0 = arith.constant 0 : i32
    %c0_i32_1 = arith.constant 0 : i32
    return %c0_i32, %arg0, %c0_i32_0 : i32, i32, i32
  }
  func.func @transform_1(%arg0: i32) -> (i32, i32) {
    %c0_i32 = arith.constant 0 : i32
    %c0_i32_0 = arith.constant 0 : i32
    %c0_i32_1 = arith.constant 0 : i32
    return %c0_i32, %c0_i32_0 : i32, i32
  }
  func.func @transform_2(%arg0: i32) -> (i32, i32) {
    %c0_i32 = arith.constant 0 : i32
    %c0_i32_0 = arith.constant 0 : i32
    return %arg0, %c0_i32 : i32, i32
  }
  func.func @transform_3(%arg0: i32) -> (i32, i32) {
    %c0_i32 = arith.constant 0 : i32
    %c0_i32_0 = arith.constant 0 : i32
    return %arg0, %c0_i32 : i32, i32
  }
}

module attributes {stable_mosaic.version = 11 : i64} {
  func.func @_conv_s1_implicit_kernel(%arg0: i32, %arg1: memref<9x16x16xbf16, #tpu.memory_space<vmem>>, %arg2: memref<16x896xbf16, #tpu.memory_space<vmem>>, %arg3: memref<16x1xf32, #tpu.memory_space<vmem>>, %arg4: memref<16x768xf32, #tpu.memory_space<vmem>>) attributes {dimension_semantics = [#tpu.dimension_semantics<parallel>], iteration_bounds = array<i64: 1>, scalar_prefetch = 0 : i64, scratch_operands = 0 : i64, tpu.core_type = #tpu.core_type<tc>, window_params = [{transform_indices = @transform_0, window_bounds = array<i64: 9, 16, 16>}, {pipeline_mode = #tpu.pipeline_mode<synchronous>, transform_indices = @transform_1, window_bounds = array<i64: 16, 896>}, {transform_indices = @transform_2, window_bounds = array<i64: 16, 1>}, {transform_indices = @transform_3, window_bounds = array<i64: 16, 768>}]} {
    %c0 = arith.constant 0 : index
    %c0_0 = arith.constant 0 : index
    %0 = vector.load %arg3[%c0, %c0_0] : memref<16x1xf32, #tpu.memory_space<vmem>>, vector<16x1xf32>
    %c0_1 = arith.constant 0 : index
    %c0_2 = arith.constant 0 : index
    %c0_3 = arith.constant 0 : index
    %1 = vector.load %arg1[%c0_1, %c0_2, %c0_3] : memref<9x16x16xbf16, #tpu.memory_space<vmem>>, vector<1x16x16xbf16>
    %2 = vector.shape_cast %1 : vector<1x16x16xbf16> to vector<16x16xbf16>
    %c0_4 = arith.constant 0 : index
    %c0_5 = arith.constant 0 : index
    %3 = vector.load %arg2[%c0_4, %c0_5] : memref<16x896xbf16, #tpu.memory_space<vmem>>, vector<16x768xbf16>
    %cst = arith.constant dense<0.000000e+00> : vector<16x768xf32>
    %4 = tpu.matmul %2, %3, %cst {dimension_numbers = #tpu.dot_dimension_numbers<[1], [0], [0], [1], [0, 0, 1, 1], [], []>} : vector<16x16xbf16>, vector<16x768xbf16>, vector<16x768xf32> -> vector<16x768xf32>
    %5 = vector.broadcast %0 : vector<16x1xf32> to vector<16x768xf32>
    %6 = arith.addf %5, %4 : vector<16x768xf32>
    %c0_6 = arith.constant 0 : index
    %c0_7 = arith.constant 0 : index
    %7 = vector.load %arg4[%c0_6, %c0_7] : memref<16x768xf32, #tpu.memory_space<vmem>>, vector<16x768xf32>
    tpu.vector_store %arg4[%c0_6, %c0_7], %6 {strides = array<i32>} : memref<16x768xf32, #tpu.memory_space<vmem>>, vector<16x768xf32>,
    %c0_8 = arith.constant 0 : index
    %c0_9 = arith.constant 0 : index
    %8 = vector.load %arg4[%c0_8, %c0_9] : memref<16x768xf32, #tpu.memory_space<vmem>>, vector<16x768xf32>
    %c1 = arith.constant 1 : index
    %c0_10 = arith.constant 0 : index
    %c0_11 = arith.constant 0 : index
    %9 = vector.load %arg1[%c1, %c0_10, %c0_11] : memref<9x16x16xbf16, #tpu.memory_space<vmem>>, vector<1x16x16xbf16>
    %10 = vector.shape_cast %9 : vector<1x16x16xbf16> to vector<16x16xbf16>
    %c0_12 = arith.constant 0 : index
    %c1_13 = arith.constant 1 : index
    %11 = vector.load %arg2[%c0_12, %c1_13] : memref<16x896xbf16, #tpu.memory_space<vmem>>, vector<16x768xbf16>
    %cst_14 = arith.constant dense<0.000000e+00> : vector<16x768xf32>
    %12 = tpu.matmul %10, %11, %cst_14 {dimension_numbers = #tpu.dot_dimension_numbers<[1], [0], [0], [1], [0, 0, 1, 1], [], []>} : vector<16x16xbf16>, vector<16x768xbf16>, vector<16x768xf32> -> vector<16x768xf32>
    %13 = arith.addf %8, %12 : vector<16x768xf32>
    %c0_15 = arith.constant 0 : index
    %c0_16 = arith.constant 0 : index
    %14 = vector.load %arg4[%c0_15, %c0_16] : memref<16x768xf32, #tpu.memory_space<vmem>>, vector<16x768xf32>
    tpu.vector_store %arg4[%c0_15, %c0_16], %13 {strides = array<i32>} : memref<16x768xf32, #tpu.memory_space<vmem>>, vector<16x768xf32>,
    %c0_17 = arith.constant 0 : index
    %c0_18 = arith.constant 0 : index
    %15 = vector.load %arg4[%c0_17, %c0_18] : memref<16x768xf32, #tpu.memory_space<vmem>>, vector<16x768xf32>
    %c2 = arith.constant 2 : index
    %c0_19 = arith.constant 0 : index
    %c0_20 = arith.constant 0 : index
    %16 = vector.load %arg1[%c2, %c0_19, %c0_20] : memref<9x16x16xbf16, #tpu.memory_space<vmem>>, vector<1x16x16xbf16>
    %17 = vector.shape_cast %16 : vector<1x16x16xbf16> to vector<16x16xbf16>
    %c0_21 = arith.constant 0 : index
    %c2_22 = arith.constant 2 : index
    %18 = vector.load %arg2[%c0_21, %c2_22] : memref<16x896xbf16, #tpu.memory_space<vmem>>, vector<16x768xbf16>
    %cst_23 = arith.constant dense<0.000000e+00> : vector<16x768xf32>
    %19 = tpu.matmul %17, %18, %cst_23 {dimension_numbers = #tpu.dot_dimension_numbers<[1], [0], [0], [1], [0, 0, 1, 1], [], []>} : vector<16x16xbf16>, vector<16x768xbf16>, vector<16x768xf32> -> vector<16x768xf32>
    %20 = arith.addf %15, %19 : vector<16x768xf32>
    %c0_24 = arith.constant 0 : index
    %c0_25 = arith.constant 0 : index
    %21 = vector.load %arg4[%c0_24, %c0_25] : memref<16x768xf32, #tpu.memory_space<vmem>>, vector<16x768xf32>
    tpu.vector_store %arg4[%c0_24, %c0_25], %20 {strides = array<i32>} : memref<16x768xf32, #tpu.memory_space<vmem>>, vector<16x768xf32>,
    %c0_26 = arith.constant 0 : index
    %c0_27 = arith.constant 0 : index
    %22 = vector.load %arg4[%c0_26, %c0_27] : memref<16x768xf32, #tpu.memory_space<vmem>>, vector<16x768xf32>
    %c3 = arith.constant 3 : index
    %c0_28 = arith.constant 0 : index
    %c0_29 = arith.constant 0 : index
    %23 = vector.load %arg1[%c3, %c0_28, %c0_29] : memref<9x16x16xbf16, #tpu.memory_space<vmem>>, vector<1x16x16xbf16>
    %24 = vector.shape_cast %23 : vector<1x16x16xbf16> to vector<16x16xbf16>
    %c0_30 = arith.constant 0 : index
    %c18 = arith.constant 18 : index
    %25 = vector.load %arg2[%c0_30, %c18] : memref<16x896xbf16, #tpu.memory_space<vmem>>, vector<16x768xbf16>
    %cst_31 = arith.constant dense<0.000000e+00> : vector<16x768xf32>
    %26 = tpu.matmul %24, %25, %cst_31 {dimension_numbers = #tpu.dot_dimension_numbers<[1], [0], [0], [1], [0, 0, 1, 1], [], []>} : vector<16x16xbf16>, vector<16x768xbf16>, vector<16x768xf32> -> vector<16x768xf32>
    %27 = arith.addf %22, %26 : vector<16x768xf32>
    %c0_32 = arith.constant 0 : index
    %c0_33 = arith.constant 0 : index
    %28 = vector.load %arg4[%c0_32, %c0_33] : memref<16x768xf32, #tpu.memory_space<vmem>>, vector<16x768xf32>
    tpu.vector_store %arg4[%c0_32, %c0_33], %27 {strides = array<i32>} : memref<16x768xf32, #tpu.memory_space<vmem>>, vector<16x768xf32>,
    %c0_34 = arith.constant 0 : index
    %c0_35 = arith.constant 0 : index
    %29 = vector.load %arg4[%c0_34, %c0_35] : memref<16x768xf32, #tpu.memory_space<vmem>>, vector<16x768xf32>
    %c4 = arith.constant 4 : index
    %c0_36 = arith.constant 0 : index
    %c0_37 = arith.constant 0 : index
    %30 = vector.load %arg1[%c4, %c0_36, %c0_37] : memref<9x16x16xbf16, #tpu.memory_space<vmem>>, vector<1x16x16xbf16>
    %31 = vector.shape_cast %30 : vector<1x16x16xbf16> to vector<16x16xbf16>
    %c0_38 = arith.constant 0 : index
    %c19 = arith.constant 19 : index
    %32 = vector.load %arg2[%c0_38, %c19] : memref<16x896xbf16, #tpu.memory_space<vmem>>, vector<16x768xbf16>
    %cst_39 = arith.constant dense<0.000000e+00> : vector<16x768xf32>
    %33 = tpu.matmul %31, %32, %cst_39 {dimension_numbers = #tpu.dot_dimension_numbers<[1], [0], [0], [1], [0, 0, 1, 1], [], []>} : vector<16x16xbf16>, vector<16x768xbf16>, vector<16x768xf32> -> vector<16x768xf32>
    %34 = arith.addf %29, %33 : vector<16x768xf32>
    %c0_40 = arith.constant 0 : index
    %c0_41 = arith.constant 0 : index
    %35 = vector.load %arg4[%c0_40, %c0_41] : memref<16x768xf32, #tpu.memory_space<vmem>>, vector<16x768xf32>
    tpu.vector_store %arg4[%c0_40, %c0_41], %34 {strides = array<i32>} : memref<16x768xf32, #tpu.memory_space<vmem>>, vector<16x768xf32>,
    %c0_42 = arith.constant 0 : index
    %c0_43 = arith.constant 0 : index
    %36 = vector.load %arg4[%c0_42, %c0_43] : memref<16x768xf32, #tpu.memory_space<vmem>>, vector<16x768xf32>
    %c5 = arith.constant 5 : index
    %c0_44 = arith.constant 0 : index
    %c0_45 = arith.constant 0 : index
    %37 = vector.load %arg1[%c5, %c0_44, %c0_45] : memref<9x16x16xbf16, #tpu.memory_space<vmem>>, vector<1x16x16xbf16>
    %38 = vector.shape_cast %37 : vector<1x16x16xbf16> to vector<16x16xbf16>
    %c0_46 = arith.constant 0 : index
    %c20 = arith.constant 20 : index
    %39 = vector.load %arg2[%c0_46, %c20] : memref<16x896xbf16, #tpu.memory_space<vmem>>, vector<16x768xbf16>
    %cst_47 = arith.constant dense<0.000000e+00> : vector<16x768xf32>
    %40 = tpu.matmul %38, %39, %cst_47 {dimension_numbers = #tpu.dot_dimension_numbers<[1], [0], [0], [1], [0, 0, 1, 1], [], []>} : vector<16x16xbf16>, vector<16x768xbf16>, vector<16x768xf32> -> vector<16x768xf32>
    %41 = arith.addf %36, %40 : vector<16x768xf32>
    %c0_48 = arith.constant 0 : index
    %c0_49 = arith.constant 0 : index
    %42 = vector.load %arg4[%c0_48, %c0_49] : memref<16x768xf32, #tpu.memory_space<vmem>>, vector<16x768xf32>
    tpu.vector_store %arg4[%c0_48, %c0_49], %41 {strides = array<i32>} : memref<16x768xf32, #tpu.memory_space<vmem>>, vector<16x768xf32>,
    %c0_50 = arith.constant 0 : index
    %c0_51 = arith.constant 0 : index
    %43 = vector.load %arg4[%c0_50, %c0_51] : memref<16x768xf32, #tpu.memory_space<vmem>>, vector<16x768xf32>
    %c6 = arith.constant 6 : index
    %c0_52 = arith.constant 0 : index
    %c0_53 = arith.constant 0 : index
    %44 = vector.load %arg1[%c6, %c0_52, %c0_53] : memref<9x16x16xbf16, #tpu.memory_space<vmem>>, vector<1x16x16xbf16>
    %45 = vector.shape_cast %44 : vector<1x16x16xbf16> to vector<16x16xbf16>
    %c0_54 = arith.constant 0 : index
    %c36 = arith.constant 36 : index
    %46 = vector.load %arg2[%c0_54, %c36] : memref<16x896xbf16, #tpu.memory_space<vmem>>, vector<16x768xbf16>
    %cst_55 = arith.constant dense<0.000000e+00> : vector<16x768xf32>
    %47 = tpu.matmul %45, %46, %cst_55 {dimension_numbers = #tpu.dot_dimension_numbers<[1], [0], [0], [1], [0, 0, 1, 1], [], []>} : vector<16x16xbf16>, vector<16x768xbf16>, vector<16x768xf32> -> vector<16x768xf32>
    %48 = arith.addf %43, %47 : vector<16x768xf32>
    %c0_56 = arith.constant 0 : index
    %c0_57 = arith.constant 0 : index
    %49 = vector.load %arg4[%c0_56, %c0_57] : memref<16x768xf32, #tpu.memory_space<vmem>>, vector<16x768xf32>
    tpu.vector_store %arg4[%c0_56, %c0_57], %48 {strides = array<i32>} : memref<16x768xf32, #tpu.memory_space<vmem>>, vector<16x768xf32>,
    %c0_58 = arith.constant 0 : index
    %c0_59 = arith.constant 0 : index
    %50 = vector.load %arg4[%c0_58, %c0_59] : memref<16x768xf32, #tpu.memory_space<vmem>>, vector<16x768xf32>
    %c7 = arith.constant 7 : index
    %c0_60 = arith.constant 0 : index
    %c0_61 = arith.constant 0 : index
    %51 = vector.load %arg1[%c7, %c0_60, %c0_61] : memref<9x16x16xbf16, #tpu.memory_space<vmem>>, vector<1x16x16xbf16>
    %52 = vector.shape_cast %51 : vector<1x16x16xbf16> to vector<16x16xbf16>
    %c0_62 = arith.constant 0 : index
    %c37 = arith.constant 37 : index
    %53 = vector.load %arg2[%c0_62, %c37] : memref<16x896xbf16, #tpu.memory_space<vmem>>, vector<16x768xbf16>
    %cst_63 = arith.constant dense<0.000000e+00> : vector<16x768xf32>
    %54 = tpu.matmul %52, %53, %cst_63 {dimension_numbers = #tpu.dot_dimension_numbers<[1], [0], [0], [1], [0, 0, 1, 1], [], []>} : vector<16x16xbf16>, vector<16x768xbf16>, vector<16x768xf32> -> vector<16x768xf32>
    %55 = arith.addf %50, %54 : vector<16x768xf32>
    %c0_64 = arith.constant 0 : index
    %c0_65 = arith.constant 0 : index
    %56 = vector.load %arg4[%c0_64, %c0_65] : memref<16x768xf32, #tpu.memory_space<vmem>>, vector<16x768xf32>
    tpu.vector_store %arg4[%c0_64, %c0_65], %55 {strides = array<i32>} : memref<16x768xf32, #tpu.memory_space<vmem>>, vector<16x768xf32>,
    %c0_66 = arith.constant 0 : index
    %c0_67 = arith.constant 0 : index
    %57 = vector.load %arg4[%c0_66, %c0_67] : memref<16x768xf32, #tpu.memory_space<vmem>>, vector<16x768xf32>
    %c8 = arith.constant 8 : index
    %c0_68 = arith.constant 0 : index
    %c0_69 = arith.constant 0 : index
    %58 = vector.load %arg1[%c8, %c0_68, %c0_69] : memref<9x16x16xbf16, #tpu.memory_space<vmem>>, vector<1x16x16xbf16>
    %59 = vector.shape_cast %58 : vector<1x16x16xbf16> to vector<16x16xbf16>
    %c0_70 = arith.constant 0 : index
    %c38 = arith.constant 38 : index
    %60 = vector.load %arg2[%c0_70, %c38] : memref<16x896xbf16, #tpu.memory_space<vmem>>, vector<16x768xbf16>
    %cst_71 = arith.constant dense<0.000000e+00> : vector<16x768xf32>
    %61 = tpu.matmul %59, %60, %cst_71 {dimension_numbers = #tpu.dot_dimension_numbers<[1], [0], [0], [1], [0, 0, 1, 1], [], []>} : vector<16x16xbf16>, vector<16x768xbf16>, vector<16x768xf32> -> vector<16x768xf32>
    %62 = arith.addf %57, %61 : vector<16x768xf32>
    %c0_72 = arith.constant 0 : index
    %c0_73 = arith.constant 0 : index
    %63 = vector.load %arg4[%c0_72, %c0_73] : memref<16x768xf32, #tpu.memory_space<vmem>>, vector<16x768xf32>
    tpu.vector_store %arg4[%c0_72, %c0_73], %62 {strides = array<i32>} : memref<16x768xf32, #tpu.memory_space<vmem>>, vector<16x768xf32>,
    return
  }
  func.func @transform_0(%arg0: i32) -> (i32, i32, i32) {
    %c0_i32 = arith.constant 0 : i32
    %c0_i32_0 = arith.constant 0 : i32
    %c0_i32_1 = arith.constant 0 : i32
    return %c0_i32, %arg0, %c0_i32_0 : i32, i32, i32
  }
  func.func @transform_1(%arg0: i32) -> (i32, i32) {
    %c0_i32 = arith.constant 0 : i32
    %c0_i32_0 = arith.constant 0 : i32
    %c0_i32_1 = arith.constant 0 : i32
    return %c0_i32, %c0_i32_0 : i32, i32
  }
  func.func @transform_2(%arg0: i32) -> (i32, i32) {
    %c0_i32 = arith.constant 0 : i32
    %c0_i32_0 = arith.constant 0 : i32
    return %arg0, %c0_i32 : i32, i32
  }
  func.func @transform_3(%arg0: i32) -> (i32, i32) {
    %c0_i32 = arith.constant 0 : i32
    %c0_i32_0 = arith.constant 0 : i32
    return %arg0, %c0_i32 : i32, i32
  }
}

</mosaic_0001>

<bundles_post_ra>
// kernel: pfdm_forward.8
= control target key start
LH: loop header
LB: loop body
LE: loop exit
PB: predicated region body
PF: predicated region fallthrough
CT: control target
= control target key end

     0   :  { %s503_s12 = smov 0   ;;  %s505_s13 = smov 0   ;;  %s576_s0 = inlined_call_operand.vmem [shape: bf16[16,32], index: 0, kind: input, shape index: {}]   ;;  %s577_s1 = inlined_call_operand.vmem [shape: bf16[32,512], index: 1, kind: input, shape index: {}]   ;;  %s578_s2 = inlined_call_operand.vmem [shape: f32[16,1], index: 2, kind: input, shape index: {}]   ;;  %s579_s3 = inlined_call_operand.vmem [shape: f32[16,512], index: 3, kind: output, shape index: {}]  }
   0x1   :  { %s507_s14 = smov 0  }
   0x2 LB: > { %s402_s15 = sadd.s32 4294967295, %s480_s14   ;;  %s520_s16 = sadd.s32 1, %s480_s14   ;;  %s480_s14 = sphi %s507_s14, %s583_s14   ;;  %s476_s13 = sphi %s505_s13, %s582_s13   ;;  %s472_s12 = sphi %s503_s12, %s581_s12  }
   0x3   : > { %s38_s17 = ssub.s32 %s480_s14, %s520_s16  ;;  %s41_s18 = sadd.s32 1, %s476_s13 }
   0x4   : > { %p39_p0 = scmp.eq.s32.totalorder %s38_s17, 0  ;;  %p48_p1 = scmp.ne.s32.totalorder %s476_s13, %s472_s12 }
   0x5   : > { %p49_p2 = scmp.eq.s32.totalorder %s480_s14, 0  ;;  %p99_p3 = scmp.eq.s32.totalorder %s402_s15, 1 }
   0x6   : > { %s531_s19 = scalar_select %p39_p0, %s476_s13, %s41_s18  }
   0x7   : > { %p50_p4 = por %p49_p2, %p48_p1  ;;  %p533_p5 = por %p99_p3, %p48_p1 }
   0x8   : > { %p405_p6 = scmp.ge.s32.totalorder %s480_s14, 2 }
   0xa   : > { %127 = sbr.rel (%p405_p6) target bundleno = 24 (0x18), region = 24 }
  0x11   : > { %130 = sbr.rel (!%p50_p4) target bundleno = 24 (0x18), region = 28  ;;  %s132_s21 = sand.u32 (%p50_p4), 1, %s476_s13  }
  0x12   : > { %s423_s22 = sshll.u32 (%p50_p4), %s480_s14, 3  ;;  %s406_s23 = sshll.u32 (%p50_p4), %s132_s21, 5 }
  0x13   : > { %s137_s26 = scalar_lea.vmem (%p50_p4), %s577_s1, %s423_s22  ;;  %s134_s27 = scalar_lea.vmem (%p50_p4), [#allocation2], %s406_s23 }
  0x14   : > { %v171_v0 = vld [vmem:[%s137_s26] sm:$0xff] (%p50_p4)  ;;  %v173_v1 = vld [vmem:[%s137_s26 + $0x10] sm:$0xff] (%p50_p4) }
  0x15   : > { %v175_v2 = vld [vmem:[%s137_s26 + $0x20] sm:$0xff] (%p50_p4)  ;;  %172 = vst [vmem:[%s134_s27] sm:$0xff] (%p50_p4), %v171_v0  ;;  %174 = vst [vmem:[%s134_s27 + $0x8] sm:$0xff] (%p50_p4), %v173_v1  ;;  %v177_v3 = vld [vmem:[%s137_s26 + $0x30] sm:$0xff] (%p50_p4) }
  0x16   : > { %176 = vst [vmem:[%s134_s27 + $0x10] sm:$0xff] (%p50_p4), %v175_v2  ;;  %178 = vst [vmem:[%s134_s27 + $0x18] sm:$0xff] (%p50_p4), %v177_v3 }
  0x18 PF: > { %p409_p7 = scmp.ge.s32.totalorder %s480_s14, 1  ;;  %p183_p8 = scmp.lt.s32.totalorder %s480_s14, 3 }
  0x1a   : > { %p184_p9 = pnand %p409_p7, %p183_p8 }
  0x1b   : > { %s190_s28 = sand.u32 (!%p184_p9), 1, %s472_s12   ;;  %v482_v4 = vmov (!%p184_p9), 0   ;;  %v221_v5 = vld [vmem:[%s578_s2] sm:$0xff] (!%p184_p9)  ;;  %v222_v6 = vld [vmem:[%s578_s2 + $0x8] sm:$0xff] (!%p184_p9)  ;;  %vm258_vm0 = vcmask (!%p184_p9), 261120  }
  0x1c   : > { %187 = sbr.rel (%p184_p9) target bundleno = 267 (0x10b), region = 66  ;;  %s546_s29 = sshll.u32 (!%p184_p9), %s190_s28, 5  ;;  %294 = vmatprep.mubr.bf16.mxu0 (!%p184_p9), %v482_v4  ;;  %450 = vset.pattern.permute.xlu0 (!%p184_p9), %v482_v4  ;;  %v457_v11 = vld [vmem:[%s576_s0] sm:$0xff] (!%p184_p9)  }
  0x1d   : > { %225 = vperm.xlu0 (!%p184_p9), %450, %v221_v5   ;;  %s192_s7 = scalar_lea.vmem (!%p184_p9), [#allocation2], %s546_s29  ;;  %s211_s10 = scalar_lea.vmem (!%p184_p9), [#allocation3], %s546_s29 }
  0x1e   : > { %v451_v7 = vld [vmem:[%s192_s7 + $0x4] ss:$8 sps:$4 sm:$0xff] (!%p184_p9)   ;;  %v453_v8 = vld [vmem:[%s192_s7] ss:$8 sps:$4 sm:$0xff] (!%p184_p9)   ;;  %v454_v9 = vld [vmem:[%s192_s7 + $0x14] ss:$8 sps:$4 sm:$0xff] (!%p184_p9)  }
  0x1f   : > { %262 = vmatprep.subr.bf16.mxu0 (!%p184_p9), %v451_v7  ;;  %v456_v10 = vld [vmem:[%s192_s7 + $0x10] ss:$8 sps:$4 sm:$0xff] (!%p184_p9)  }
  0x20   : > { %263 = vmatpush1.bf16.msra.mxu0 (!%p184_p9), %v453_v8 }
  0x21   : > { %230 = vperm.xlu0 (!%p184_p9), %450, %v222_v6   ;;  %264 = vmatprep.subr.bf16.mxu0 (!%p184_p9), %v454_v9 }
  0x23   : > { %s424_s11 = sshll.u32 (%p533_p5), %s402_s15, 4 }
  0x24   : > { %265 = vmatpush1.bf16.msra.mxu0 %v456_v10  ;;  %s322_s18 = scalar_lea.vmem (%p533_p5), %s579_s3, %s424_s11 }
  0x27   : > { %417 = vmatmul.mubr.msk.bf16.vlgmr.msra.gmra.mrb[0].mxu0 %vm258_vm0, %v457_v11 }
  0x9c   : > { %v226_v12 = vpop.permute.xlu0 %225 }
  0xa0   : > { %v231_v16 = vpop.permute.xlu0 %230 }
  0xfa   : > { %v296_v13 = vpop.f32.mrb[0].mxu0 }
  0xfb   : > { %v297_v14 = vadd.f32 %v296_v13, %v226_v12  ;;  %v298_v15 = vpop.f32.mrb[1].mxu0 }
  0xfc   : > { %v299_v17 = vadd.f32 %v298_v15, %v226_v12  ;;  %v300_v18 = vpop.f32.mrb[2].mxu0  ;;  %319 = sbr.rel (!%p533_p5) target bundleno = 267 (0x10b), region = 74 }
  0xfd   : > { %v305_v19 = vmax.f32 %v297_v14, 0.0  ;;  %v301_v20 = vadd.f32 %v300_v18, %v231_v16  ;;  %v302_v21 = vpop.f32.mrb[3].mxu0 }
  0xfe   : > { %v306_v22 = vmax.f32 %v299_v17, 0.0  ;;  %v303_v23 = vadd.f32 %v302_v21, %v231_v16 }
  0xff   : > { %309 = vst [vmem:[%s211_s10] sm:$0xff] %v305_v19  ;;  %v307_v24 = vmax.f32 %v301_v20, 0.0 }
 0x100   : > { %310 = vst [vmem:[%s211_s10 + $0x8] sm:$0xff] %v306_v22  ;;  %v308_v25 = vmax.f32 %v303_v23, 0.0 }
 0x101   : > { %311 = vst [vmem:[%s211_s10 + $0x10] sm:$0xff] %v307_v24 }
 0x102   : > { %312 = vst [vmem:[%s211_s10 + $0x18] sm:$0xff] %v308_v25 }
 0x106   : > { %v335_v26 = vld [vmem:[%s211_s10] sm:$0xff] }
 0x107   : > { %v337_v27 = vld [vmem:[%s211_s10 + $0x8] sm:$0xff]  ;;  %336 = vst [vmem:[%s322_s18] sm:$0xff] %v335_v26 }
 0x108   : > { %v339_v28 = vld [vmem:[%s211_s10 + $0x10] sm:$0xff]  ;;  %338 = vst [vmem:[%s322_s18 + $0x8] sm:$0xff] %v337_v27 }
 0x109   : > { %v341_v29 = vld [vmem:[%s211_s10 + $0x18] sm:$0xff]  ;;  %340 = vst [vmem:[%s322_s18 + $0x20] sm:$0xff] %v339_v28 }
 0x10a   : > { %342 = vst [vmem:[%s322_s18 + $0x28] sm:$0xff] %v341_v29 }
 0x10b PF: > { %p10_p10 = scmp.ge.s32.totalorder %s520_s16, 4   ;;  %s581_s12 = smov %s476_s13 }
 0x10c   : > { %s582_s13 = smov %s531_s19  ;;  %s583_s14 = smov %s520_s16 }
 0x10d   :  { %12 = sbr.rel (!%p10_p10) target bundleno = 2 (0x2), region = 128 }

// kernel: pfdm_forward.9
= control target key start
LH: loop header
LB: loop body
LE: loop exit
PB: predicated region body
PF: predicated region fallthrough
CT: control target
= control target key end

     0   :  { %v164_v0 = vmov 0.0   ;;  %vm165_vm0 = vmmov 0   ;;  %v166_v2 = vmov 0   ;;  %vm74_vm1 = vcmask 654336   ;;  %s217_s1 = inlined_call_operand.vmem [shape: bf16[80,128], index: 1, kind: input, shape index: {}]   ;;  %s218_s2 = inlined_call_operand.vmem [shape: f32[16,1], index: 2, kind: input, shape index: {}]   ;;  %s219_s0 = inlined_call_operand.vmem [shape: bf16[16,80], index: 0, kind: input, shape index: {}]   ;;  %s220_s3 = inlined_call_operand.vmem [shape: f32[16,128], index: 3, kind: output, shape index: {}]  }
   0x1   :  { %140 = vmatprep.subr.bf16.mxu0 %v164_v0  ;;  %v158_v1 = vld [vmem:[%s217_s1] sm:$0xff]   ;;  %150 = vmatprep.mubr.msk.bf16.mxu0 %vm165_vm0, %v164_v0  ;;  %v159_v3 = vld [vmem:[%s217_s1 + $0x8] sm:$0xff]   ;;  %v160_v4 = vld [vmem:[%s217_s1 + $0x10] sm:$0xff]  }
   0x2   :  { %157 = vset.pattern.permute.xlu0 %v166_v2  ;;  %141 = vmatpush3.bf16.msra.mxu0 %v158_v1  ;;  %v27_v5 = vld [vmem:[%s218_s2] sm:$0xff]  ;;  %v28_v6 = vld [vmem:[%s218_s2 + $0x8] sm:$0xff]  ;;  %v161_v7 = vld [vmem:[%s217_s1 + $0x18] sm:$0xff]  }
   0x3   :  { %142 = vmatprep.subr.bf16.mxu0 %v164_v0  ;;  %31 = vperm.xlu0 %157, %v27_v5   ;;  %v162_v8 = vld [vmem:[%s217_s1 + $0x20] sm:$0xff]  }
   0x4   :  { %v163_v9 = vld [vmem:[%s219_s0] sm:$0xff]  }
   0x6   :  { %143 = vmatpush3.bf16.msra.mxu0 %v159_v3 }
   0x7   :  { %144 = vmatprep.subr.bf16.mxu0 %v164_v0  ;;  %36 = vperm.xlu0 %157, %v28_v6  }
   0xa   :  { %145 = vmatpush3.bf16.msra.mxu0 %v160_v4 }
   0xb   :  { %146 = vmatprep.subr.bf16.mxu0 %v164_v0 }
   0xe   :  { %147 = vmatpush3.bf16.msra.mxu0 %v161_v7 }
   0xf   :  { %148 = vmatprep.subr.bf16.mxu0 %v164_v0 }
  0x12   :  { %149 = vmatpush3.bf16.msra.mxu0 %v162_v8 }
  0x15   :  { %151 = vmatmul.mubr.msk.bf16.vlgmr.msra.gmra.mrb[0].mxu0 %vm74_vm1, %v163_v9 }
  0x82   :  { %v32_v10 = vpop.permute.xlu0 %31 }
  0x86   :  { %v37_v14 = vpop.permute.xlu0 %36 }
  0xe8   :  { %v112_v11 = vpop.f32.mrb[0].mxu0 }
  0xe9   :  { %v113_v12 = vadd.f32 %v112_v11, %v32_v10  ;;  %v152_v13 = vpop.f32.mrb[1].mxu0 }
  0xea   :  { %v115_v15 = vpop.f32.mrb[2].mxu0 }
  0xeb   :  { %v119_v16 = vmax.f32 %v113_v12, 0.0  ;;  %v116_v17 = vadd.f32 %v115_v15, %v37_v14  ;;  %v153_v18 = vpop.f32.mrb[3].mxu0 }
  0xed   :  { %121 = vst [vmem:[%s220_s3] sm:$0xff] %v119_v16  ;;  %v120_v19 = vmax.f32 %v116_v17, 0.0 }
  0xef   :  { %122 = vst [vmem:[%s220_s3 + $0x8] sm:$0xff] %v120_v19 }

// kernel: pfdm_forward.10
= control target key start
LH: loop header
LB: loop body
LE: loop exit
PB: predicated region body
PF: predicated region fallthrough
CT: control target
= control target key end

     0   :  { %v252_v0 = vmov 0   ;;  %vm133_vm0 = vcmask 130048   ;;  %s336_s1 = inlined_call_operand.vmem [shape: bf16[144,128], index: 1, kind: input, shape index: {}]   ;;  %s337_s0 = inlined_call_operand.vmem [shape: bf16[32,144], index: 0, kind: input, shape index: {}]   ;;  %s338_s2 = inlined_call_operand.vmem [shape: f32[32,1], index: 2, kind: input, shape index: {}]   ;;  %s339_s3 = inlined_call_operand.vmem [shape: f32[32,128], index: 3, kind: output, shape index: {}]  }
   0x1   :  { %140 = vmatprep.subr.bf16.mxu0 %v252_v0  ;;  %216 = vmatprep.subr.bf16.mxu1 %v252_v0  ;;  %v237_v1 = vld [vmem:[%s336_s1] sm:$0xff]   ;;  %v238_v2 = vld [vmem:[%s336_s1 + $0x8] sm:$0xff]   ;;  %v239_v3 = vld [vmem:[%s336_s1 + $0x10] sm:$0xff]  }
   0x2   :  { %236 = vset.pattern.permute.xlu1 %v252_v0  ;;  %235 = vset.pattern.permute.xlu0 %v252_v0  ;;  %v240_v4 = vld [vmem:[%s336_s1 + $0x18] sm:$0xff]   ;;  %v248_v5 = vld [vmem:[%s337_s0 + $0x4] ss:$8 sps:$4 sm:$0xff]   ;;  %v39_v7 = vld [vmem:[%s338_s2 + $0x10] sm:$0xff] }
   0x3   :  { %141 = vmatpush1.bf16.msra.mxu0 %v237_v1  ;;  %225 = vmatpush1.bf16.msra.mxu1 %v237_v1  ;;  %v251_v6 = vld [vmem:[%s337_s0 + $0x14] ss:$8 sps:$4 sm:$0xff]   ;;  %v37_v8 = vld [vmem:[%s338_s2] sm:$0xff]  ;;  %v38_v11 = vld [vmem:[%s338_s2 + $0x8] sm:$0xff] }
   0x4   :  { %142 = vmatprep.subr.bf16.mxu0 %v252_v0  ;;  %217 = vmatprep.subr.bf16.mxu1 %v252_v0  ;;  %v40_v9 = vld [vmem:[%s338_s2 + $0x18] sm:$0xff]  ;;  %v241_v10 = vld [vmem:[%s336_s1 + $0x20] sm:$0xff]   ;;  %v242_v12 = vld [vmem:[%s336_s1 + $0x28] sm:$0xff]  }
   0x5   :  { %214 = vmatprep.mubr.msk.bf16.mxu0 %vm133_vm0, %v248_v5  ;;  %53 = vperm.xlu1 %236, %v39_v7   ;;  %v243_v13 = vld [vmem:[%s336_s1 + $0x30] sm:$0xff]   ;;  %v244_v14 = vld [vmem:[%s336_s1 + $0x38] sm:$0xff]   ;;  %v245_v15 = vld [vmem:[%s336_s1 + $0x40] sm:$0xff]  }
   0x6   :  { %215 = vmatprep.mubr.msk.bf16.mxu1 %vm133_vm0, %v251_v6  ;;  %43 = vperm.xlu0 %235, %v37_v8   ;;  %v246_v16 = vld [vmem:[%s337_s0] ss:$8 sps:$4 sm:$0xff]   ;;  %v249_v17 = vld [vmem:[%s337_s0 + $0x10] ss:$8 sps:$4 sm:$0xff]  }
   0x7   :  { %143 = vmatpush1.bf16.msra.mxu0 %v238_v2  ;;  %226 = vmatpush1.bf16.msra.mxu1 %v238_v2 }
   0x8   :  { %144 = vmatprep.subr.bf16.mxu0 %v252_v0  ;;  %218 = vmatprep.subr.bf16.mxu1 %v252_v0 }
   0x9   :  { %58 = vperm.xlu1 %236, %v40_v9  }
   0xa   :  { %48 = vperm.xlu0 %235, %v38_v11  }
   0xb   :  { %145 = vmatpush1.bf16.msra.mxu0 %v239_v3  ;;  %227 = vmatpush1.bf16.msra.mxu1 %v239_v3 }
   0xc   :  { %146 = vmatprep.subr.bf16.mxu0 %v252_v0  ;;  %219 = vmatprep.subr.bf16.mxu1 %v252_v0 }
   0xf   :  { %147 = vmatpush1.bf16.msra.mxu0 %v240_v4  ;;  %228 = vmatpush1.bf16.msra.mxu1 %v240_v4 }
  0x10   :  { %148 = vmatprep.subr.bf16.mxu0 %v252_v0  ;;  %220 = vmatprep.subr.bf16.mxu1 %v252_v0 }
  0x13   :  { %149 = vmatpush1.bf16.msra.mxu0 %v241_v10  ;;  %229 = vmatpush1.bf16.msra.mxu1 %v241_v10 }
  0x14   :  { %150 = vmatprep.subr.bf16.mxu0 %v252_v0  ;;  %221 = vmatprep.subr.bf16.mxu1 %v252_v0 }
  0x17   :  { %151 = vmatpush1.bf16.msra.mxu0 %v242_v12  ;;  %230 = vmatpush1.bf16.msra.mxu1 %v242_v12 }
  0x18   :  { %152 = vmatprep.subr.bf16.mxu0 %v252_v0  ;;  %222 = vmatprep.subr.bf16.mxu1 %v252_v0 }
  0x1b   :  { %153 = vmatpush1.bf16.msra.mxu0 %v243_v13  ;;  %231 = vmatpush1.bf16.msra.mxu1 %v243_v13 }
  0x1c   :  { %154 = vmatprep.subr.bf16.mxu0 %v252_v0  ;;  %223 = vmatprep.subr.bf16.mxu1 %v252_v0 }
  0x1f   :  { %155 = vmatpush1.bf16.msra.mxu0 %v244_v14  ;;  %232 = vmatpush1.bf16.msra.mxu1 %v244_v14 }
  0x20   :  { %156 = vmatprep.subr.bf16.mxu0 %v252_v0  ;;  %224 = vmatprep.subr.bf16.mxu1 %v252_v0 }
  0x23   :  { %157 = vmatpush1.bf16.msra.mxu0 %v245_v15  ;;  %233 = vmatpush1.bf16.msra.mxu1 %v245_v15 }
  0x26   :  { %173 = vmatmul.mubr.bf16.vlgmr.msra.gmra.mrb[0].mxu0 %v246_v16  ;;  %181 = vmatmul.mubr.bf16.vlgmr.msra.gmra.mrb[0].mxu1 %v249_v17 }
  0x84   :  { %v54_v18 = vpop.permute.xlu1 %53 }
  0x85   :  { %v44_v19 = vpop.permute.xlu0 %43 }
  0x88   :  { %v59_v20 = vpop.permute.xlu1 %58 }
  0x89   :  { %v49_v21 = vpop.permute.xlu0 %48 }
  0xf9   :  { %v174_v22 = vpop.f32.mrb[0].mxu0  ;;  %v182_v23 = vpop.f32.mrb[0].mxu1 }
  0xfa   :  { %v175_v24 = vadd.f32 %v174_v22, %v44_v19  ;;  %v183_v25 = vadd.f32 %v182_v23, %v54_v18  ;;  %v176_v26 = vpop.f32.mrb[1].mxu0  ;;  %v184_v27 = vpop.f32.mrb[1].mxu1 }
  0xfb   :  { %v177_v28 = vpop.f32.mrb[2].mxu0  ;;  %v185_v29 = vpop.f32.mrb[2].mxu1 }
  0xfc   :  { %v189_v30 = vmax.f32 %v175_v24, 0.0  ;;  %v191_v31 = vmax.f32 %v183_v25, 0.0  ;;  %v178_v32 = vadd.f32 %v177_v28, %v49_v21  ;;  %v186_v33 = vadd.f32 %v185_v29, %v59_v20  ;;  %v179_v34 = vpop.f32.mrb[3].mxu0  ;;  %v187_v35 = vpop.f32.mrb[3].mxu1 }
  0xfe   :  { %193 = vst [vmem:[%s339_s3] sm:$0xff] %v189_v30  ;;  %195 = vst [vmem:[%s339_s3 + $0x10] sm:$0xff] %v191_v31  ;;  %v190_v36 = vmax.f32 %v178_v32, 0.0  ;;  %v192_v37 = vmax.f32 %v186_v33, 0.0 }
 0x100   :  { %194 = vst [vmem:[%s339_s3 + $0x8] sm:$0xff] %v190_v36  ;;  %196 = vst [vmem:[%s339_s3 + $0x18] sm:$0xff] %v192_v37 }

// kernel: pfdm_forward.11
= control target key start
LH: loop header
LB: loop body
LE: loop exit
PB: predicated region body
PF: predicated region fallthrough
CT: control target
= control target key end

     0   :  { %v591_v1 = vmov 0   ;;  %vm283_vm0 = vcmask 261120   ;;  %s754_s1 = inlined_call_operand.vmem [shape: bf16[288,128], index: 1, kind: input, shape index: {}]   ;;  %s755_s0 = inlined_call_operand.vmem [shape: bf16[64,288], index: 0, kind: input, shape index: {}]   ;;  %s756_s2 = inlined_call_operand.vmem [shape: f32[64,1], index: 2, kind: input, shape index: {}]   ;;  %s757_s3 = inlined_call_operand.vmem [shape: f32[64,128], index: 3, kind: output, shape index: {}]  }
   0x1   :  { %v557_v0 = vld [vmem:[%s754_s1 + $0x40] sm:$0xff]   ;;  %556 = vset.pattern.permute.xlu1 %v591_v1  ;;  %555 = vset.pattern.permute.xlu0 %v591_v1  ;;  %v559_v3 = vld [vmem:[%s754_s1 + $0x48] sm:$0xff]   ;;  %v561_v5 = vld [vmem:[%s754_s1 + $0x50] sm:$0xff]  }
   0x2   :  { %v558_v2 = vld [vmem:[%s754_s1] sm:$0xff]   ;;  %480 = vmatprep.subr.bf16.mxu0 %v557_v0  ;;  %538 = vmatprep.subr.bf16.mxu1 %v557_v0  ;;  %v560_v4 = vld [vmem:[%s754_s1 + $0x8] sm:$0xff]   ;;  %v562_v6 = vld [vmem:[%s754_s1 + $0x10] sm:$0xff]  }
   0x3   :  { %481 = vmatpush3.bf16.msra.mxu0 %v558_v2  ;;  %546 = vmatpush3.bf16.msra.mxu1 %v558_v2  ;;  %v563_v7 = vld [vmem:[%s754_s1 + $0x58] sm:$0xff]   ;;  %v565_v9 = vld [vmem:[%s754_s1 + $0x60] sm:$0xff]   ;;  %v567_v11 = vld [vmem:[%s754_s1 + $0x68] sm:$0xff]  }
   0x4   :  { %482 = vmatprep.subr.bf16.mxu0 %v559_v3  ;;  %539 = vmatprep.subr.bf16.mxu1 %v559_v3  ;;  %v564_v8 = vld [vmem:[%s754_s1 + $0x18] sm:$0xff]   ;;  %v566_v10 = vld [vmem:[%s754_s1 + $0x20] sm:$0xff]   ;;  %v568_v14 = vld [vmem:[%s754_s1 + $0x28] sm:$0xff]  }
   0x5   :  { %v575_v12 = vld [vmem:[%s755_s0 + $0x4] ss:$12 sps:$4 sm:$0xff]   ;;  %v578_v13 = vld [vmem:[%s755_s0 + $0x4c] ss:$12 sps:$4 sm:$0xff]   ;;  %v576_v23 = vld [vmem:[%s755_s0 + $0x48] ss:$12 sps:$4 sm:$0xff]  }
   0x6   :  { %v569_v15 = vld [vmem:[%s754_s1 + $0x70] sm:$0xff]   ;;  %328 = vmatprep.mubr.bf16.mxu0 %v575_v12  ;;  %352 = vmatprep.mubr.bf16.mxu1 %v578_v13  ;;  %v571_v17 = vld [vmem:[%s754_s1 + $0x78] sm:$0xff]   ;;  %v67_v20 = vld [vmem:[%s756_s2] sm:$0xff] }
   0x7   :  { %483 = vmatpush3.bf16.msra.mxu0 %v560_v4  ;;  %547 = vmatpush3.bf16.msra.mxu1 %v560_v4  ;;  %v570_v16 = vld [vmem:[%s754_s1 + $0x30] sm:$0xff]   ;;  %v572_v18 = vld [vmem:[%s754_s1 + $0x38] sm:$0xff]   ;;  %v579_v21 = vld [vmem:[%s754_s1 + $0x80] sm:$0xff]  }
   0x8   :  { %484 = vmatprep.subr.bf16.mxu0 %v561_v5  ;;  %540 = vmatprep.subr.bf16.mxu1 %v561_v5  ;;  %v69_v19 = vld [vmem:[%s756_s2 + $0x10] sm:$0xff]  ;;  %v573_v22 = vld [vmem:[%s755_s0] ss:$12 sps:$4 sm:$0xff]   ;;  %v70_v24 = vld [vmem:[%s756_s2 + $0x18] sm:$0xff] }
   0x9   :  { %87 = vperm.xlu1 %556, %v69_v19   ;;  %77 = vperm.xlu0 %555, %v67_v20   ;;  %v68_v25 = vld [vmem:[%s756_s2 + $0x8] sm:$0xff]  ;;  %v71_v30 = vld [vmem:[%s756_s2 + $0x20] sm:$0xff]  ;;  %v74_v33 = vld [vmem:[%s756_s2 + $0x38] sm:$0xff] }
   0xa   :  { %v581_v26 = vld [vmem:[%s755_s0 + $0x1c] ss:$12 sps:$4 sm:$0xff]   ;;  %v584_v31 = vld [vmem:[%s755_s0 + $0x18] ss:$12 sps:$4 sm:$0xff]   ;;  %v585_v32 = vld [vmem:[%s755_s0 + $0x20] ss:$12 sps:$4 sm:$0xff]  }
   0xb   :  { %485 = vmatpush3.bf16.msra.mxu0 %v562_v6  ;;  %548 = vmatpush3.bf16.msra.mxu1 %v562_v6  ;;  %v580_v27 = vld [vmem:[%s754_s1 + $0x88] sm:$0xff]   ;;  %v73_v34 = vld [vmem:[%s756_s2 + $0x30] sm:$0xff]  ;;  %v588_v36 = vld [vmem:[%s755_s0 + $0x38] ss:$12 sps:$4 sm:$0xff]  }
   0xc   :  { %486 = vmatprep.subr.bf16.mxu0 %v563_v7  ;;  %541 = vmatprep.subr.bf16.mxu1 %v563_v7  ;;  %v583_v28 = vld [vmem:[%s755_s0 + $0x8] ss:$12 sps:$4 sm:$0xff]   ;;  %v589_v37 = vld [vmem:[%s755_s0 + $0x30] ss:$12 sps:$4 sm:$0xff]  }
   0xd   :  { %92 = vperm.xlu1 %556, %v70_v24   ;;  %82 = vperm.xlu0 %555, %v68_v25   ;;  %v72_v29 = vld [vmem:[%s756_s2 + $0x28] sm:$0xff]  ;;  %v586_v35 = vld [vmem:[%s755_s0 + $0x34] ss:$12 sps:$4 sm:$0xff]   ;;  %v590_v38 = vld [vmem:[%s755_s0 + $0x50] ss:$12 sps:$4 sm:$0xff]  }
   0xf   :  { %487 = vmatpush3.bf16.msra.mxu0 %v564_v8  ;;  %549 = vmatpush3.bf16.msra.mxu1 %v564_v8 }
  0x10   :  { %488 = vmatprep.subr.bf16.mxu0 %v565_v9  ;;  %542 = vmatprep.subr.bf16.mxu1 %v565_v9 }
  0x11   :  { %102 = vperm.xlu1 %556, %v72_v29   ;;  %97 = vperm.xlu0 %555, %v71_v30  }
  0x13   :  { %489 = vmatpush3.bf16.msra.mxu0 %v566_v10  ;;  %550 = vmatpush3.bf16.msra.mxu1 %v566_v10 }
  0x14   :  { %490 = vmatprep.subr.bf16.mxu0 %v567_v11  ;;  %543 = vmatprep.subr.bf16.mxu1 %v567_v11 }
  0x15   :  { %112 = vperm.xlu1 %556, %v74_v33   ;;  %107 = vperm.xlu0 %555, %v73_v34  }
  0x17   :  { %491 = vmatpush3.bf16.msra.mxu0 %v568_v14  ;;  %551 = vmatpush3.bf16.msra.mxu1 %v568_v14 }
  0x18   :  { %492 = vmatprep.subr.bf16.mxu0 %v569_v15  ;;  %544 = vmatprep.subr.bf16.mxu1 %v569_v15 }
  0x1b   :  { %493 = vmatpush3.bf16.msra.mxu0 %v570_v16  ;;  %552 = vmatpush3.bf16.msra.mxu1 %v570_v16 }
  0x1c   :  { %494 = vmatprep.subr.bf16.mxu0 %v571_v17  ;;  %545 = vmatprep.subr.bf16.mxu1 %v571_v17 }
  0x1f   :  { %495 = vmatpush3.bf16.msra.mxu0 %v572_v18  ;;  %553 = vmatpush3.bf16.msra.mxu1 %v572_v18 }
  0x20   :  { %526 = vmatprep.subr.bf16.mxu1 %v579_v21 }
  0x22   :  { %329 = vmatmul.mubr.bf16.vlgmr.msra.gmra.mrb[0].mxu0 %v573_v22  ;;  %353 = vmatmul.mubr.bf16.vlgmr.msra.gmra.mrb[0].mxu1 %v576_v23 }
  0x23   :  { %527 = vmatpush3.bf16.msra.mxu1 %v579_v21  ;;  %336 = vmatprep.mubr.bf16.mxu0 %v581_v26 }
  0x24   :  { %528 = vmatprep.subr.bf16.mxu1 %v580_v27  ;;  %530 = vmatprep.mubr.msk.bf16.mxu1 %vm283_vm0, %v583_v28 }
  0x27   :  { %529 = vmatpush3.bf16.msra.mxu1 %v580_v27 }
  0x2a   :  { %337 = vmatmul.mubr.bf16.gmra.mrb[4].mxu0 %v584_v31  ;;  %531 = vmatmul.mubr.msk.bf16.vlgmr.msra.gmra.mrb[4].mxu1 %vm283_vm0, %v585_v32 }
  0x2b   :  { %344 = vmatprep.mubr.bf16.mxu0 %v586_v35  ;;  %534 = vmatprep.mubr.msk.bf16.mxu1 %vm283_vm0, %v588_v36 }
  0x32   :  { %345 = vmatmul.mubr.bf16.gmra.mrb[8].mxu0 %v589_v37  ;;  %535 = vmatmul.mubr.msk.bf16.gmra.mrb[8].mxu1 %vm283_vm0, %v590_v38 }
  0x88   :  { %v88_v39 = vpop.permute.xlu1 %87  ;;  %v78_v40 = vpop.permute.xlu0 %77 }
  0x8c   :  { %v93_v41 = vpop.permute.xlu1 %92  ;;  %v83_v42 = vpop.permute.xlu0 %82 }
  0x90   :  { %v98_v55 = vpop.permute.xlu0 %97  ;;  %v103_v56 = vpop.permute.xlu1 %102 }
  0x94   :  { %v108_v5 = vpop.permute.xlu0 %107  ;;  %v113_v10 = vpop.permute.xlu1 %112 }
  0xf5   :  { %v496_v43 = vpop.f32.mrb[0].mxu0  ;;  %v514_v44 = vpop.f32.mrb[0].mxu1 }
  0xf6   :  { %v497_v45 = vpop.f32.mrb[1].mxu0  ;;  %v515_v46 = vpop.f32.mrb[1].mxu1 }
  0xf7   :  { %v498_v47 = vadd.f32 %v497_v45, %v496_v43  ;;  %v499_v48 = vpop.f32.mrb[2].mxu0  ;;  %v516_v49 = vadd.f32 %v515_v46, %v514_v44  ;;  %v517_v50 = vpop.f32.mrb[2].mxu1 }
  0xf8   :  { %v500_v51 = vpop.f32.mrb[3].mxu0  ;;  %v518_v52 = vpop.f32.mrb[3].mxu1 }
  0xf9   :  { %v501_v53 = vadd.f32 %v500_v51, %v499_v48  ;;  %v519_v54 = vadd.f32 %v518_v52, %v517_v50  ;;  %v331_v59 = vadd.f32 %v498_v47, %v78_v40  ;;  %v355_v14 = vadd.f32 %v516_v49, %v108_v5 }
  0xfb   :  { %v334_v2 = vadd.f32 %v501_v53, %v83_v42  ;;  %v358_v19 = vadd.f32 %v519_v54, %v113_v10 }
  0xfd   :  { %v502_v57 = vpop.f32.mrb[4].mxu0  ;;  %v532_v58 = vpop.f32.mrb[4].mxu1 }
  0xfe   :  { %v503_v60 = vpop.f32.mrb[5].mxu0  ;;  %v395_v61 = vpop.f32.mrb[5].mxu1 }
  0xff   :  { %v504_v62 = vadd.f32 %v503_v60, %v502_v57  ;;  %v396_v63 = vadd.f32 %v395_v61, %v331_v59  ;;  %v505_v0 = vpop.f32.mrb[6].mxu0  ;;  %v533_v1 = vpop.f32.mrb[6].mxu1 }
 0x100   :  { %v506_v3 = vpop.f32.mrb[7].mxu0  ;;  %v398_v4 = vpop.f32.mrb[7].mxu1 }
 0x101   :  { %v339_v6 = vadd.f32 %v504_v62, %v88_v39  ;;  %v426_v7 = vmax.f32 %v396_v63, 0.0  ;;  %v507_v8 = vadd.f32 %v506_v3, %v505_v0  ;;  %v399_v9 = vadd.f32 %v398_v4, %v334_v2 }
 0x103   :  { %v404_v11 = vadd.f32 %v532_v58, %v339_v6  ;;  %434 = vst [vmem:[%s757_s3] sm:$0xff] %v426_v7  ;;  %v342_v12 = vadd.f32 %v507_v8, %v93_v41  ;;  %v427_v13 = vmax.f32 %v399_v9, 0.0 }
 0x105   :  { %v428_v15 = vmax.f32 %v404_v11, 0.0  ;;  %v407_v16 = vadd.f32 %v533_v1, %v342_v12  ;;  %435 = vst [vmem:[%s757_s3 + $0x8] sm:$0xff] %v427_v13  ;;  %v508_v17 = vpop.f32.mrb[8].mxu0  ;;  %v536_v18 = vpop.f32.mrb[8].mxu1 }
 0x106   :  { %v420_v20 = vadd.f32 %v536_v18, %v355_v14  ;;  %v509_v21 = vpop.f32.mrb[9].mxu0  ;;  %v411_v22 = vpop.f32.mrb[9].mxu1 }
 0x107   :  { %436 = vst [vmem:[%s757_s3 + $0x10] sm:$0xff] %v428_v15  ;;  %v429_v23 = vmax.f32 %v407_v16, 0.0  ;;  %v510_v24 = vadd.f32 %v509_v21, %v508_v17  ;;  %v511_v25 = vpop.f32.mrb[10].mxu0  ;;  %v537_v26 = vpop.f32.mrb[10].mxu1 }
 0x108   :  { %v432_v27 = vmax.f32 %v420_v20, 0.0  ;;  %v423_v28 = vadd.f32 %v537_v26, %v358_v19  ;;  %v512_v29 = vpop.f32.mrb[11].mxu0  ;;  %v414_v30 = vpop.f32.mrb[11].mxu1 }
 0x109   :  { %437 = vst [vmem:[%s757_s3 + $0x18] sm:$0xff] %v429_v23  ;;  %v347_v31 = vadd.f32 %v510_v24, %v98_v55  ;;  %v513_v32 = vadd.f32 %v512_v29, %v511_v25 }
 0x10a   :  { %440 = vst [vmem:[%s757_s3 + $0x30] sm:$0xff] %v432_v27  ;;  %v433_v33 = vmax.f32 %v423_v28, 0.0 }
 0x10b   :  { %v412_v34 = vadd.f32 %v411_v22, %v347_v31  ;;  %v350_v35 = vadd.f32 %v513_v32, %v103_v56 }
 0x10c   :  { %441 = vst [vmem:[%s757_s3 + $0x38] sm:$0xff] %v433_v33 }
 0x10d   :  { %v430_v36 = vmax.f32 %v412_v34, 0.0  ;;  %v415_v37 = vadd.f32 %v414_v30, %v350_v35 }
 0x10f   :  { %438 = vst [vmem:[%s757_s3 + $0x20] sm:$0xff] %v430_v36  ;;  %v431_v38 = vmax.f32 %v415_v37, 0.0 }
 0x111   :  { %439 = vst [vmem:[%s757_s3 + $0x28] sm:$0xff] %v431_v38 }

// kernel: pfdm_forward.12
= control target key start
LH: loop header
LB: loop body
LE: loop exit
PB: predicated region body
PF: predicated region fallthrough
CT: control target
= control target key end

     0   :  { %s1724_s16 = smov 121   ;;  %vm65_vm0 = vcmask 523264   ;;  %s1725_s14 = smov 120   ;;  %vm665_vm1 = vcmask 990208   ;;  %v1732_v19 = vmov 0   ;;  %vm812_vm2 = vcmask 982016   ;;  %s1997_s1 = inlined_call_operand.vmem [shape: bf16[64,256], index: 1, kind: input, shape index: {}]   ;;  %s1998_s0 = inlined_call_operand.vmem [shape: bf16[9,32,64], index: 0, kind: input, shape index: {}]   ;;  %s1999_s2 = inlined_call_operand.vmem [shape: f32[32,1], index: 2, kind: input, shape index: {}]   ;;  %s2000_s3 = inlined_call_operand.vmem [shape: f32[32,128], index: 3, kind: output, shape index: {}]  }
   0x1   :  { %v1756_v0 = vld [vmem:[%s1997_s1 + $0x10] ss:$8 sps:$4 sm:$0xff]   ;;  %v1761_v1 = vld [vmem:[%s1997_s1 + $0x14] ss:$8 sps:$4 sm:$0xff]   ;;  %v1767_v2 = vld [vmem:[%s1997_s1] ss:$8 sps:$4 sm:$0xff]   ;;  %1689 = vset.pattern.permute.xlu1 %v1732_v19  ;;  %1688 = vset.pattern.permute.xlu0 %v1732_v19 }
   0x2   :  { %653 = vrot.lane.b32.xlu1 %v1756_v0, %s1724_s16  ;;  %v1772_v3 = vld [vmem:[%s1997_s1 + $0x4] ss:$8 sps:$4 sm:$0xff]   ;;  %649 = vrot.lane.b32.xlu0 %v1767_v2, %s1724_s16  ;;  %v1702_v5 = vld [vmem:[%s1997_s1] ss:$8 sps:$4 sm:$0xff]   ;;  %s1727_s17 = smov 116   ;;  %s1728_s20 = smov 126  }
   0x3   :  { %v1778_v4 = vld [vmem:[%s1997_s1 + $0x24] ss:$8 sps:$4 sm:$0xff]   ;;  %v1703_v6 = vld [vmem:[%s1997_s1 + $0x10] ss:$8 sps:$4 sm:$0xff]   ;;  %v1791_v7 = vld [vmem:[%s1997_s1 + $0x20] ss:$8 sps:$4 sm:$0xff]   ;;  %1519 = vmatprep.subr.bf16.mxu1 %v1702_v5 }
   0x4   :  { %v1796_v8 = vld [vmem:[%s1997_s1 + $0x34] ss:$8 sps:$4 sm:$0xff]   ;;  %1520 = vmatpush3.bf16.msra.mxu1 %v1702_v5  ;;  %v1802_v9 = vld [vmem:[%s1997_s1 + $0x30] ss:$8 sps:$4 sm:$0xff]   ;;  %v1704_v10 = vld [vmem:[%s1997_s1 + $0x20] ss:$8 sps:$4 sm:$0xff]  }
   0x5   :  { %1521 = vmatprep.subr.bf16.mxu1 %v1703_v6  ;;  %v1706_v11 = vld [vmem:[%s1998_s0 + $0x40] sm:$0xff]   ;;  %v1705_v12 = vld [vmem:[%s1997_s1 + $0x30] ss:$8 sps:$4 sm:$0xff]   ;;  %v1709_v14 = vld [vmem:[%s1998_s0 + $0x8] sm:$0xff]   ;;  %s1729_s21 = smov 115   ;;  %s1730_s22 = smov 122  }
   0x6   :  { %655 = vrot.lane.b32.xlu1 %v1761_v1, %s1724_s16  ;;  %651 = vrot.lane.b32.xlu0 %v1772_v3, %s1724_s16  ;;  %v1708_v13 = vld [vmem:[%s1998_s0] sm:$0xff]   ;;  %v1712_v15 = vld [vmem:[%s1998_s0 + $0x10] sm:$0xff]   ;;  %s1731_s23 = smov 114   ;;  %vm224_vm3 = vcmask 1039360   ;;  %vm959_vm4 = vcmask 949248   ;;  %vm371_vm5 = vcmask 1031168  }
   0x7   :  { %1575 = vmatprep.mubr.msk.bf16.mxu0 %vm65_vm0, %v1706_v11  ;;  %1527 = vmatprep.mubr.msk.bf16.mxu1 %vm65_vm0, %v1708_v13  ;;  %v16_v25 = vld [vmem:[%s1999_s2 + $0x8] sm:$0xff]  ;;  %v15_v28 = vld [vmem:[%s1999_s2] sm:$0xff]  ;;  %v17_v30 = vld [vmem:[%s1999_s2 + $0x10] sm:$0xff]  ;;  %vm1106_vm6 = vcmask 941056   ;;  %vm518_vm7 = vcmask 998400   ;;  %vm1253_vm8 = vcmask 932864  }
   0x8   :  { %1522 = vmatpush3.bf16.msra.mxu1 %v1703_v6  ;;  %v18_v33 = vld [vmem:[%s1999_s2 + $0x18] sm:$0xff]  ;;  %v1707_v36 = vld [vmem:[%s1998_s0 + $0x48] sm:$0xff]   ;;  %v1710_v38 = vld [vmem:[%s1998_s0 + $0x50] sm:$0xff]  }
   0x9   :  { %1523 = vmatprep.subr.bf16.mxu1 %v1704_v10  ;;  %v1711_v54 = vld [vmem:[%s1998_s0 + $0x58] sm:$0xff]   ;;  %v1714_v55 = vld [vmem:[%s1998_s0 + $0x60] sm:$0xff]   ;;  %v1718_v19 = vld [vmem:[%s1998_s0 + $0x70] sm:$0xff]  }
   0xa   :  { %659 = vrot.lane.b32.xlu1 %v1778_v4, %s1724_s16  ;;  %657 = vrot.lane.b32.xlu0 %v1791_v7, %s1724_s16 }
   0xc   :  { %1524 = vmatpush3.bf16.msra.mxu1 %v1704_v10 }
   0xd   :  { %1525 = vmatprep.subr.bf16.mxu1 %v1705_v12 }
   0xe   :  { %663 = vrot.lane.b32.xlu1 %v1796_v8, %s1724_s16  ;;  %661 = vrot.lane.b32.xlu0 %v1802_v9, %s1724_s16  ;;  %s1726_s16 = smov 127  }
  0x10   :  { %1526 = vmatpush3.bf16.msra.mxu1 %v1705_v12 }
  0x12   :  { %798 = vrot.lane.b32.xlu1 %v1772_v3, %s1725_s14  ;;  %796 = vrot.lane.b32.xlu0 %v1767_v2, %s1725_s14 }
  0x13   :  { %1528 = vmatmul.mubr.msk.bf16.vlgmr.msra.gmra.mrb[0].mxu1 %vm65_vm0, %v1709_v14 }
  0x14   :  { %1539 = vmatprep.mubr.msk.bf16.mxu1 %vm65_vm0, %v1712_v15 }
  0x16   :  { %802 = vrot.lane.b32.xlu1 %v1761_v1, %s1725_s14  ;;  %800 = vrot.lane.b32.xlu0 %v1756_v0, %s1725_s14 }
  0x1a   :  { %210 = vrot.lane.b32.xlu1 %v1772_v3, %s1726_s16  ;;  %208 = vrot.lane.b32.xlu0 %v1767_v2, %s1726_s16 }
  0x1e   :  { %806 = vrot.lane.b32.xlu1 %v1778_v4, %s1725_s14  ;;  %804 = vrot.lane.b32.xlu0 %v1791_v7, %s1725_s14 }
  0x22   :  { %214 = vrot.lane.b32.xlu1 %v1761_v1, %s1726_s16  ;;  %212 = vrot.lane.b32.xlu0 %v1756_v0, %s1726_s16 }
  0x26   :  { %810 = vrot.lane.b32.xlu1 %v1796_v8, %s1725_s14  ;;  %808 = vrot.lane.b32.xlu0 %v1802_v9, %s1725_s14 }
  0x2a   :  { %218 = vrot.lane.b32.xlu1 %v1778_v4, %s1726_s16  ;;  %216 = vrot.lane.b32.xlu0 %v1791_v7, %s1726_s16 }
  0x2e   :  { %945 = vrot.lane.b32.xlu1 %v1772_v3, %s1727_s17  ;;  %943 = vrot.lane.b32.xlu0 %v1767_v2, %s1727_s17 }
  0x32   :  { %222 = vrot.lane.b32.xlu1 %v1796_v8, %s1726_s16  ;;  %220 = vrot.lane.b32.xlu0 %v1802_v9, %s1726_s16 }
  0x36   :  { %949 = vrot.lane.b32.xlu1 %v1761_v1, %s1727_s17  ;;  %947 = vrot.lane.b32.xlu0 %v1756_v0, %s1727_s17 }
  0x3a   :  { %357 = vrot.lane.b32.xlu1 %v1772_v3, %s1728_s20  ;;  %355 = vrot.lane.b32.xlu0 %v1767_v2, %s1728_s20 }
  0x3e   :  { %953 = vrot.lane.b32.xlu1 %v1778_v4, %s1727_s17  ;;  %951 = vrot.lane.b32.xlu0 %v1791_v7, %s1727_s17 }
  0x42   :  { %361 = vrot.lane.b32.xlu1 %v1761_v1, %s1728_s20  ;;  %359 = vrot.lane.b32.xlu0 %v1756_v0, %s1728_s20 }
  0x46   :  { %957 = vrot.lane.b32.xlu1 %v1796_v8, %s1727_s17  ;;  %955 = vrot.lane.b32.xlu0 %v1802_v9, %s1727_s17 }
  0x4a   :  { %365 = vrot.lane.b32.xlu1 %v1778_v4, %s1728_s20  ;;  %363 = vrot.lane.b32.xlu0 %v1791_v7, %s1728_s20 }
  0x4e   :  { %1092 = vrot.lane.b32.xlu1 %v1772_v3, %s1729_s21  ;;  %1090 = vrot.lane.b32.xlu0 %v1767_v2, %s1729_s21 }
  0x52   :  { %369 = vrot.lane.b32.xlu1 %v1796_v8, %s1728_s20  ;;  %367 = vrot.lane.b32.xlu0 %v1802_v9, %s1728_s20 }
  0x56   :  { %1096 = vrot.lane.b32.xlu1 %v1761_v1, %s1729_s21  ;;  %1094 = vrot.lane.b32.xlu0 %v1756_v0, %s1729_s21 }
  0x5a   :  { %504 = vrot.lane.b32.xlu1 %v1772_v3, %s1730_s22  ;;  %502 = vrot.lane.b32.xlu0 %v1767_v2, %s1730_s22 }
  0x5e   :  { %1100 = vrot.lane.b32.xlu1 %v1778_v4, %s1729_s21  ;;  %1098 = vrot.lane.b32.xlu0 %v1791_v7, %s1729_s21 }
  0x62   :  { %508 = vrot.lane.b32.xlu1 %v1761_v1, %s1730_s22  ;;  %506 = vrot.lane.b32.xlu0 %v1756_v0, %s1730_s22 }
  0x66   :  { %1104 = vrot.lane.b32.xlu1 %v1796_v8, %s1729_s21  ;;  %1102 = vrot.lane.b32.xlu0 %v1802_v9, %s1729_s21 }
  0x6a   :  { %512 = vrot.lane.b32.xlu1 %v1778_v4, %s1730_s22  ;;  %510 = vrot.lane.b32.xlu0 %v1791_v7, %s1730_s22 }
  0x6e   :  { %1239 = vrot.lane.b32.xlu1 %v1772_v3, %s1731_s23  ;;  %1237 = vrot.lane.b32.xlu0 %v1767_v2, %s1731_s23  ;;  %v1716_v2 = vld [vmem:[%s1998_s0 + $0x20] sm:$0xff]  }
  0x72   :  { %516 = vrot.lane.b32.xlu1 %v1796_v8, %s1730_s22  ;;  %514 = vrot.lane.b32.xlu0 %v1802_v9, %s1730_s22 }
  0x74   :  { %v654_v16 = vpop.permute.xlu1 %653  ;;  %v650_v17 = vpop.permute.xlu0 %649 }
  0x76   :  { %1243 = vrot.lane.b32.xlu1 %v1761_v1, %s1731_s23  ;;  %1241 = vrot.lane.b32.xlu0 %v1756_v0, %s1731_s23  ;;  %v1713_v1 = vld [vmem:[%s1998_s0 + $0x18] sm:$0xff]  }
  0x78   :  { %v656_v18 = vpop.permute.xlu1 %655  ;;  %v652_v20 = vpop.permute.xlu0 %651 }
  0x79   :  { %v666_v21 = vsel %vm665_vm1, %v650_v17, %v652_v20  ;;  %v667_v23 = vsel %vm665_vm1, %v654_v16, %v656_v18  ;;  %v1715_v18 = vld [vmem:[%s1998_s0 + $0x68] sm:$0xff]  }
  0x7a   :  { %1247 = vrot.lane.b32.xlu1 %v1778_v4, %s1731_s23  ;;  %1567 = vmatprep.subr.bf16.mxu0 %v666_v21 }
  0x7b   :  { %1245 = vrot.lane.b32.xlu0 %v1791_v7, %s1731_s23  ;;  %1568 = vmatpush3.bf16.msra.mxu0 %v666_v21 }
  0x7c   :  { %v660_v22 = vpop.permute.xlu1 %659  ;;  %1569 = vmatprep.subr.bf16.mxu0 %v667_v23  ;;  %v658_v24 = vpop.permute.xlu0 %657 }
  0x7d   :  { %v668_v27 = vsel %vm665_vm1, %v658_v24, %v660_v22 }
  0x7e   :  { %1251 = vrot.lane.b32.xlu1 %v1796_v8, %s1731_s23 }
  0x7f   :  { %1249 = vrot.lane.b32.xlu0 %v1802_v9, %s1731_s23  ;;  %1570 = vmatpush3.bf16.msra.mxu0 %v667_v23 }
  0x80   :  { %v664_v26 = vpop.permute.xlu1 %663  ;;  %1571 = vmatprep.subr.bf16.mxu0 %v668_v27  ;;  %v662_v29 = vpop.permute.xlu0 %661 }
  0x81   :  { %v669_v32 = vsel %vm665_vm1, %v662_v29, %v664_v26  ;;  %v1717_v29 = vld [vmem:[%s1998_s0 + $0x28] sm:$0xff]  }
  0x82   :  { %128 = vperm.xlu1 %1689, %v16_v25  }
  0x83   :  { %123 = vperm.xlu0 %1688, %v15_v28   ;;  %1572 = vmatpush3.bf16.msra.mxu0 %v668_v27 }
  0x84   :  { %v799_v31 = vpop.permute.xlu1 %798  ;;  %1573 = vmatprep.subr.bf16.mxu0 %v669_v32  ;;  %v797_v34 = vpop.permute.xlu0 %796 }
  0x85   :  { %v813_v37 = vsel %vm812_vm2, %v797_v34, %v799_v31 }
  0x86   :  { %133 = vperm.xlu1 %1689, %v17_v30   ;;  %v1720_v30 = vld [vmem:[%s1998_s0 + $0x30] sm:$0xff]  }
  0x87   :  { %138 = vperm.xlu0 %1688, %v18_v33   ;;  %1574 = vmatpush3.bf16.msra.mxu0 %v669_v32 }
  0x88   :  { %v803_v35 = vpop.permute.xlu1 %802  ;;  %1579 = vmatprep.subr.bf16.mxu0 %v813_v37  ;;  %v801_v39 = vpop.permute.xlu0 %800 }
  0x89   :  { %v814_v41 = vsel %vm812_vm2, %v801_v39, %v803_v35 }
  0x8a   :  { %1576 = vmatmul.mubr.msk.bf16.vlgmr.msra.gmra.mrb[0].mxu0 %vm65_vm0, %v1707_v36 }
  0x8b   :  { %1580 = vmatpush3.bf16.msra.mxu0 %v813_v37  ;;  %1587 = vmatprep.mubr.msk.bf16.mxu0 %vm65_vm0, %v1710_v38 }
  0x8c   :  { %v211_v40 = vpop.permute.xlu1 %210  ;;  %v209_v42 = vpop.permute.xlu0 %208  ;;  %1581 = vmatprep.subr.bf16.mxu0 %v814_v41 }
  0x8d   :  { %v225_v43 = vsel %vm224_vm3, %v209_v42, %v211_v40 }
  0x8e   :  { %1531 = vmatprep.subr.bf16.mxu1 %v225_v43 }
  0x8f   :  { %1532 = vmatpush3.bf16.msra.mxu1 %v225_v43  ;;  %1582 = vmatpush3.bf16.msra.mxu0 %v814_v41 }
  0x90   :  { %v807_v44 = vpop.permute.xlu1 %806  ;;  %v805_v45 = vpop.permute.xlu0 %804 }
  0x91   :  { %v815_v46 = vsel %vm812_vm2, %v805_v45, %v807_v44 }
  0x92   :  { %1583 = vmatprep.subr.bf16.mxu0 %v815_v46 }
  0x93   :  { %1584 = vmatpush3.bf16.msra.mxu0 %v815_v46  ;;  %v1719_v46 = vld [vmem:[%s1998_s0 + $0x78] sm:$0xff]  }
  0x94   :  { %v215_v47 = vpop.permute.xlu1 %214  ;;  %v213_v48 = vpop.permute.xlu0 %212 }
  0x95   :  { %v226_v49 = vsel %vm224_vm3, %v213_v48, %v215_v47  ;;  %v1722_v47 = vld [vmem:[%s1998_s0 + $0x80] sm:$0xff]  }
  0x96   :  { %1533 = vmatprep.subr.bf16.mxu1 %v226_v49 }
  0x97   :  { %1534 = vmatpush3.bf16.msra.mxu1 %v226_v49 }
  0x98   :  { %v811_v50 = vpop.permute.xlu1 %810  ;;  %v809_v51 = vpop.permute.xlu0 %808 }
  0x99   :  { %v816_v52 = vsel %vm812_vm2, %v809_v51, %v811_v50 }
  0x9a   :  { %1585 = vmatprep.subr.bf16.mxu0 %v816_v52 }
  0x9b   :  { %1586 = vmatpush3.bf16.msra.mxu0 %v816_v52 }
  0x9c   :  { %v219_v53 = vpop.permute.xlu1 %218  ;;  %v217_v56 = vpop.permute.xlu0 %216 }
  0x9d   :  { %v227_v57 = vsel %vm224_vm3, %v217_v56, %v219_v53 }
  0x9e   :  { %1535 = vmatprep.subr.bf16.mxu1 %v227_v57  ;;  %1588 = vmatmul.mubr.msk.bf16.vlgmr.msra.gmra.mrb[0].mxu0 %vm65_vm0, %v1711_v54 }
  0x9f   :  { %1536 = vmatpush3.bf16.msra.mxu1 %v227_v57  ;;  %1599 = vmatprep.mubr.msk.bf16.mxu0 %vm65_vm0, %v1714_v55  ;;  %v1721_v57 = vld [vmem:[%s1998_s0 + $0x38] sm:$0xff]  }
  0xa0   :  { %v946_v58 = vpop.permute.xlu1 %945  ;;  %v944_v59 = vpop.permute.xlu0 %943 }
  0xa1   :  { %v960_v60 = vsel %vm959_vm4, %v944_v59, %v946_v58 }
  0xa2   :  { %1591 = vmatprep.subr.bf16.mxu0 %v960_v60 }
  0xa3   :  { %1592 = vmatpush3.bf16.msra.mxu0 %v960_v60 }
  0xa4   :  { %v223_v61 = vpop.permute.xlu1 %222  ;;  %v221_v62 = vpop.permute.xlu0 %220 }
  0xa5   :  { %v228_v63 = vsel %vm224_vm3, %v221_v62, %v223_v61 }
  0xa6   :  { %1537 = vmatprep.subr.bf16.mxu1 %v228_v63 }
  0xa7   :  { %1538 = vmatpush3.bf16.msra.mxu1 %v228_v63 }
  0xa8   :  { %v950_v0 = vpop.permute.xlu1 %949  ;;  %v948_v3 = vpop.permute.xlu0 %947 }
  0xa9   :  { %v961_v4 = vsel %vm959_vm4, %v948_v3, %v950_v0 }
  0xaa   :  { %1593 = vmatprep.subr.bf16.mxu0 %v961_v4  ;;  %1540 = vmatmul.mubr.msk.bf16.vlgmr.msra.gmra.mrb[0].mxu1 %vm65_vm0, %v1713_v1 }
  0xab   :  { %1594 = vmatpush3.bf16.msra.mxu0 %v961_v4  ;;  %1551 = vmatprep.mubr.msk.bf16.mxu1 %vm65_vm0, %v1716_v2  ;;  %v1723_v2 = vld [vmem:[%s1998_s0 + $0x88] sm:$0xff]  }
  0xac   :  { %v358_v5 = vpop.permute.xlu1 %357  ;;  %v356_v6 = vpop.permute.xlu0 %355 }
  0xad   :  { %v372_v7 = vsel %vm371_vm5, %v356_v6, %v358_v5 }
  0xae   :  { %1543 = vmatprep.subr.bf16.mxu1 %v372_v7 }
  0xaf   :  { %1544 = vmatpush3.bf16.msra.mxu1 %v372_v7 }
  0xb0   :  { %v954_v8 = vpop.permute.xlu1 %953  ;;  %v952_v9 = vpop.permute.xlu0 %951 }
  0xb1   :  { %v962_v10 = vsel %vm959_vm4, %v952_v9, %v954_v8 }
  0xb2   :  { %1595 = vmatprep.subr.bf16.mxu0 %v962_v10 }
  0xb3   :  { %1596 = vmatpush3.bf16.msra.mxu0 %v962_v10 }
  0xb4   :  { %v362_v11 = vpop.permute.xlu1 %361  ;;  %v360_v12 = vpop.permute.xlu0 %359 }
  0xb5   :  { %v373_v13 = vsel %vm371_vm5, %v360_v12, %v362_v11 }
  0xb6   :  { %1545 = vmatprep.subr.bf16.mxu1 %v373_v13 }
  0xb7   :  { %1546 = vmatpush3.bf16.msra.mxu1 %v373_v13 }
  0xb8   :  { %v958_v14 = vpop.permute.xlu1 %957  ;;  %v956_v15 = vpop.permute.xlu0 %955 }
  0xb9   :  { %v963_v16 = vsel %vm959_vm4, %v956_v15, %v958_v14 }
  0xba   :  { %1597 = vmatprep.subr.bf16.mxu0 %v963_v16 }
  0xbb   :  { %1598 = vmatpush3.bf16.msra.mxu0 %v963_v16 }
  0xbc   :  { %v366_v17 = vpop.permute.xlu1 %365  ;;  %v364_v20 = vpop.permute.xlu0 %363 }
  0xbd   :  { %v374_v21 = vsel %vm371_vm5, %v364_v20, %v366_v17 }
  0xbe   :  { %1547 = vmatprep.subr.bf16.mxu1 %v374_v21  ;;  %1600 = vmatmul.mubr.msk.bf16.vlgmr.msra.gmra.mrb[0].mxu0 %vm65_vm0, %v1715_v18 }
  0xbf   :  { %1548 = vmatpush3.bf16.msra.mxu1 %v374_v21  ;;  %1611 = vmatprep.mubr.msk.bf16.mxu0 %vm65_vm0, %v1718_v19 }
  0xc0   :  { %v1093_v22 = vpop.permute.xlu1 %1092  ;;  %v1091_v23 = vpop.permute.xlu0 %1090 }
  0xc1   :  { %v1107_v24 = vsel %vm1106_vm6, %v1091_v23, %v1093_v22 }
  0xc2   :  { %1603 = vmatprep.subr.bf16.mxu0 %v1107_v24 }
  0xc3   :  { %1604 = vmatpush3.bf16.msra.mxu0 %v1107_v24 }
  0xc4   :  { %v370_v25 = vpop.permute.xlu1 %369  ;;  %v368_v26 = vpop.permute.xlu0 %367 }
  0xc5   :  { %v375_v27 = vsel %vm371_vm5, %v368_v26, %v370_v25 }
  0xc6   :  { %1549 = vmatprep.subr.bf16.mxu1 %v375_v27 }
  0xc7   :  { %1550 = vmatpush3.bf16.msra.mxu1 %v375_v27 }
  0xc8   :  { %v1097_v28 = vpop.permute.xlu1 %1096  ;;  %v1095_v31 = vpop.permute.xlu0 %1094 }
  0xc9   :  { %v1108_v32 = vsel %vm1106_vm6, %v1095_v31, %v1097_v28 }
  0xca   :  { %1605 = vmatprep.subr.bf16.mxu0 %v1108_v32  ;;  %1552 = vmatmul.mubr.msk.bf16.vlgmr.msra.gmra.mrb[0].mxu1 %vm65_vm0, %v1717_v29 }
  0xcb   :  { %1606 = vmatpush3.bf16.msra.mxu0 %v1108_v32  ;;  %1563 = vmatprep.mubr.msk.bf16.mxu1 %vm65_vm0, %v1720_v30 }
  0xcc   :  { %v505_v33 = vpop.permute.xlu1 %504  ;;  %v503_v34 = vpop.permute.xlu0 %502 }
  0xcd   :  { %v519_v35 = vsel %vm518_vm7, %v503_v34, %v505_v33 }
  0xce   :  { %1555 = vmatprep.subr.bf16.mxu1 %v519_v35 }
  0xcf   :  { %1556 = vmatpush3.bf16.msra.mxu1 %v519_v35 }
  0xd0   :  { %v1101_v36 = vpop.permute.xlu1 %1100  ;;  %v1099_v37 = vpop.permute.xlu0 %1098 }
  0xd1   :  { %v1109_v38 = vsel %vm1106_vm6, %v1099_v37, %v1101_v36 }
  0xd2   :  { %1607 = vmatprep.subr.bf16.mxu0 %v1109_v38 }
  0xd3   :  { %1608 = vmatpush3.bf16.msra.mxu0 %v1109_v38 }
  0xd4   :  { %v509_v39 = vpop.permute.xlu1 %508  ;;  %v507_v40 = vpop.permute.xlu0 %506 }
  0xd5   :  { %v520_v41 = vsel %vm518_vm7, %v507_v40, %v509_v39 }
  0xd6   :  { %1557 = vmatprep.subr.bf16.mxu1 %v520_v41 }
  0xd7   :  { %1558 = vmatpush3.bf16.msra.mxu1 %v520_v41 }
  0xd8   :  { %v1105_v42 = vpop.permute.xlu1 %1104  ;;  %v1103_v43 = vpop.permute.xlu0 %1102 }
  0xd9   :  { %v1110_v44 = vsel %vm1106_vm6, %v1103_v43, %v1105_v42 }
  0xda   :  { %1609 = vmatprep.subr.bf16.mxu0 %v1110_v44 }
  0xdb   :  { %1610 = vmatpush3.bf16.msra.mxu0 %v1110_v44 }
  0xdc   :  { %v513_v45 = vpop.permute.xlu1 %512  ;;  %v511_v48 = vpop.permute.xlu0 %510 }
  0xdd   :  { %v521_v49 = vsel %vm518_vm7, %v511_v48, %v513_v45 }
  0xde   :  { %1559 = vmatprep.subr.bf16.mxu1 %v521_v49  ;;  %1612 = vmatmul.mubr.msk.bf16.vlgmr.msra.gmra.mrb[0].mxu0 %vm65_vm0, %v1719_v46 }
  0xdf   :  { %1560 = vmatpush3.bf16.msra.mxu1 %v521_v49  ;;  %1623 = vmatprep.mubr.msk.bf16.mxu0 %vm65_vm0, %v1722_v47 }
  0xe0   :  { %v1240_v50 = vpop.permute.xlu1 %1239  ;;  %v1238_v51 = vpop.permute.xlu0 %1237 }
  0xe1   :  { %v1254_v52 = vsel %vm1253_vm8, %v1238_v51, %v1240_v50 }
  0xe2   :  { %1615 = vmatprep.subr.bf16.mxu0 %v1254_v52 }
  0xe3   :  { %1616 = vmatpush3.bf16.msra.mxu0 %v1254_v52 }
  0xe4   :  { %v517_v53 = vpop.permute.xlu1 %516  ;;  %v515_v54 = vpop.permute.xlu0 %514 }
  0xe5   :  { %v522_v55 = vsel %vm518_vm7, %v515_v54, %v517_v53 }
  0xe6   :  { %1561 = vmatprep.subr.bf16.mxu1 %v522_v55 }
  0xe7   :  { %1562 = vmatpush3.bf16.msra.mxu1 %v522_v55 }
  0xe8   :  { %v1244_v56 = vpop.permute.xlu1 %1243  ;;  %v1242_v58 = vpop.permute.xlu0 %1241 }
  0xe9   :  { %v1255_v59 = vsel %vm1253_vm8, %v1242_v58, %v1244_v56 }
  0xea   :  { %1564 = vmatmul.mubr.msk.bf16.vlgmr.msra.gmra.mrb[0].mxu1 %vm65_vm0, %v1721_v57  ;;  %1617 = vmatprep.subr.bf16.mxu0 %v1255_v59 }
  0xeb   :  { %1618 = vmatpush3.bf16.msra.mxu0 %v1255_v59 }
  0xec   :  { %v1248_v60 = vpop.permute.xlu1 %1247 }
  0xed   :  { %v1246_v61 = vpop.permute.xlu0 %1245 }
  0xee   :  { %v1256_v62 = vsel %vm1253_vm8, %v1246_v61, %v1248_v60 }
  0xef   :  { %1619 = vmatprep.subr.bf16.mxu0 %v1256_v62 }
  0xf0   :  { %v1252_v63 = vpop.permute.xlu1 %1251  ;;  %1620 = vmatpush3.bf16.msra.mxu0 %v1256_v62 }
  0xf1   :  { %v1250_v0 = vpop.permute.xlu0 %1249 }
  0xf2   :  { %v1257_v1 = vsel %vm1253_vm8, %v1250_v0, %v1252_v63 }
  0xf3   :  { %1621 = vmatprep.subr.bf16.mxu0 %v1257_v1 }
  0xf4   :  { %1622 = vmatpush3.bf16.msra.mxu0 %v1257_v1 }
  0xf7   :  { %1624 = vmatmul.mubr.msk.bf16.vlgmr.msra.gmra.mrb[0].mxu0 %vm65_vm0, %v1723_v2 }
 0x101   :  { %v129_v5 = vpop.permute.xlu1 %128 }
 0x102   :  { %v124_v8 = vpop.permute.xlu0 %123 }
 0x105   :  { %v134_v9 = vpop.permute.xlu1 %133 }
 0x106   :  { %v139_v10 = vpop.permute.xlu0 %138 }
 0x1bd   :  { %v1565_v3 = vpop.f32.mrb[0].mxu1 }
 0x1be   :  { %v567_v4 = vpop.f32.mrb[1].mxu1  ;;  %v1629_v11 = vadd.f32 %v1565_v3, %v134_v9 }
 0x1bf   :  { %v1566_v6 = vpop.f32.mrb[2].mxu1  ;;  %v1635_v12 = vadd.f32 %v567_v4, %v124_v8 }
 0x1c0   :  { %v570_v7 = vpop.f32.mrb[3].mxu1  ;;  %v1641_v14 = vadd.f32 %v1566_v6, %v139_v10 }
 0x1c1   :  { %v1647_v17 = vadd.f32 %v570_v7, %v129_v5 }
 0x1ca   :  { %v1625_v13 = vpop.f32.mrb[0].mxu0 }
 0x1cb   :  { %v1632_v15 = vadd.f32 %v1629_v11, %v1625_v13  ;;  %v1302_v16 = vpop.f32.mrb[1].mxu0 }
 0x1cc   :  { %v1638_v18 = vadd.f32 %v1635_v12, %v1302_v16  ;;  %v1626_v19 = vpop.f32.mrb[2].mxu0 }
 0x1cd   :  { %1323 = vst [vmem:[%s2000_s3 + $0x10] sm:$0xff] %v1632_v15  ;;  %v1644_v20 = vadd.f32 %v1641_v14, %v1626_v19  ;;  %v1305_v21 = vpop.f32.mrb[3].mxu0 }
 0x1ce   :  { %1321 = vst [vmem:[%s2000_s3] sm:$0xff] %v1638_v18  ;;  %v1650_v22 = vadd.f32 %v1647_v17, %v1305_v21 }
 0x1cf   :  { %1324 = vst [vmem:[%s2000_s3 + $0x18] sm:$0xff] %v1644_v20 }
 0x1d0   :  { %1322 = vst [vmem:[%s2000_s3 + $0x8] sm:$0xff] %v1650_v22 }

// kernel: pfdm_forward.13
= control target key start
LH: loop header
LB: loop body
LE: loop exit
PB: predicated region body
PF: predicated region fallthrough
CT: control target
= control target key end

     0   :  { %s1265_s16 = smov 117   ;;  %s1266_s27 = smov 116   ;;  %v1268_v8 = vmov 0   ;;  %vm48_vm0 = vcmask 261120   ;;  %vm534_vm1 = vcmask 957440   ;;  %vm655_vm2 = vcmask 949248   ;;  %s1487_s1 = inlined_call_operand.vmem [shape: bf16[32,384], index: 1, kind: input, shape index: {}]   ;;  %s1488_s0 = inlined_call_operand.vmem [shape: bf16[9,16,32], index: 0, kind: input, shape index: {}]   ;;  %s1489_s2 = inlined_call_operand.vmem [shape: f32[16,1], index: 2, kind: input, shape index: {}]   ;;  %s1490_s3 = inlined_call_operand.vmem [shape: f32[16,256], index: 3, kind: output, shape index: {}]  }
   0x1   :  { %v1297_v0 = vld [vmem:[%s1487_s1 + $0x4] ss:$12 sps:$4 sm:$0xff]   ;;  %v1302_v1 = vld [vmem:[%s1487_s1] ss:$12 sps:$4 sm:$0xff]   ;;  %v1237_v2 = vld [vmem:[%s1487_s1 + $0x8] ss:$12 sps:$4 sm:$0xff]   ;;  %578 = vmatprep.mubr.bf16.mxu0 %v1268_v8  ;;  %84 = vmatprep.mubr.bf16.mxu1 %v1268_v8 }
   0x2   :  { %524 = vrot.lane.b32.xlu0 %v1297_v0, %s1265_s16  ;;  %52 = vmatprep.subr.bf16.mxu1 %v1297_v0  ;;  %v1313_v3 = vld [vmem:[%s1487_s1 + $0x1c] ss:$12 sps:$4 sm:$0xff]   ;;  %v1319_v4 = vld [vmem:[%s1487_s1 + $0x18] ss:$12 sps:$4 sm:$0xff]   ;;  %v1240_v5 = vld [vmem:[%s1487_s1 + $0x20] ss:$12 sps:$4 sm:$0xff]  }
   0x3   :  { %522 = vrot.lane.b32.xlu1 %v1302_v1, %s1265_s16  ;;  %53 = vmatpush1.bf16.msra.mxu1 %v1302_v1  ;;  %v1242_v6 = vld [vmem:[%s1487_s1 + $0x8] ss:$12 sps:$4 sm:$0xff]   ;;  %s1267_s30 = smov 127   ;;  %v1257_v9 = vld [vmem:[%s1488_s0] sm:$0xff]   ;;  %s1269_s12 = smov 108   ;;  %vm171_vm3 = vcmask 1039360  }
   0x4   :  { %54 = vmatprep.subr.bf16.mxu1 %v1313_v3  ;;  %v1243_v7 = vld [vmem:[%s1487_s1 + $0x8] ss:$12 sps:$4 sm:$0xff]   ;;  %v1244_v10 = vld [vmem:[%s1487_s1 + $0x20] ss:$12 sps:$4 sm:$0xff]   ;;  %1232 = vset.pattern.permute.xlu0 %v1268_v8  ;;  %s1270_s15 = smov 126   ;;  %s1271_s22 = smov 107  }
   0x5   :  { %1233 = vset.pattern.permute.xlu1 %v1268_v8  ;;  %v1245_v11 = vld [vmem:[%s1487_s1 + $0x20] ss:$12 sps:$4 sm:$0xff]   ;;  %v1246_v12 = vld [vmem:[%s1487_s1 + $0x8] ss:$12 sps:$4 sm:$0xff]   ;;  %s1272_s25 = smov 118   ;;  %s1273_s5 = smov 106  }
   0x6   :  { %526 = vrot.lane.b32.xlu0 %v1237_v2, %s1265_s16  ;;  %v1247_v13 = vld [vmem:[%s1487_s1 + $0x8] ss:$12 sps:$4 sm:$0xff]   ;;  %v1248_v14 = vld [vmem:[%s1487_s1 + $0x20] ss:$12 sps:$4 sm:$0xff]   ;;  %vm776_vm4 = vcmask 883712   ;;  %vm292_vm5 = vcmask 1031168  }
   0x7   :  { %530 = vrot.lane.b32.xlu1 %v1313_v3, %s1265_s16  ;;  %55 = vmatpush1.bf16.msra.mxu1 %v1319_v4  ;;  %v1249_v15 = vld [vmem:[%s1487_s1 + $0x20] ss:$12 sps:$4 sm:$0xff]   ;;  %v1250_v16 = vld [vmem:[%s1487_s1 + $0x8] ss:$12 sps:$4 sm:$0xff]   ;;  %vm897_vm6 = vcmask 875520   ;;  %vm413_vm7 = vcmask 965632  }
   0x8   :  { %v1251_v17 = vld [vmem:[%s1487_s1 + $0x8] ss:$12 sps:$4 sm:$0xff]   ;;  %v1252_v18 = vld [vmem:[%s1487_s1 + $0x20] ss:$12 sps:$4 sm:$0xff]   ;;  %vm1018_vm8 = vcmask 867328  }
   0x9   :  { %v1253_v19 = vld [vmem:[%s1487_s1 + $0x20] ss:$12 sps:$4 sm:$0xff]   ;;  %v1254_v20 = vld [vmem:[%s1487_s1 + $0x8] ss:$12 sps:$4 sm:$0xff]  }
   0xa   :  { %532 = vrot.lane.b32.xlu0 %v1240_v5, %s1265_s16  ;;  %1090 = vmatmul.mubr.msk.bf16.vlgmr.msra.gmra.mrb[0].mxu1 %vm48_vm0, %v1257_v9  ;;  %v1255_v21 = vld [vmem:[%s1487_s1 + $0x20] ss:$12 sps:$4 sm:$0xff]  }
   0xb   :  { %528 = vrot.lane.b32.xlu1 %v1319_v4, %s1265_s16  ;;  %215 = vmatprep.mubr.bf16.mxu1 %v1268_v8  ;;  %v15_v22 = vld [vmem:[%s1489_s2] sm:$0xff]  ;;  %v16_v23 = vld [vmem:[%s1489_s2 + $0x8] sm:$0xff] }
   0xc   :  { %v1256_v34 = vld [vmem:[%s1488_s0 + $0x20] sm:$0xff]   ;;  %v1258_v51 = vld [vmem:[%s1488_s0 + $0x28] sm:$0xff]  }
   0xd   :  { %v1259_v56 = vld [vmem:[%s1488_s0 + $0x8] sm:$0xff]  }
   0xe   :  { %645 = vrot.lane.b32.xlu0 %v1297_v0, %s1266_s27 }
   0xf   :  { %647 = vrot.lane.b32.xlu1 %v1242_v6, %s1266_s27 }
  0x12   :  { %643 = vrot.lane.b32.xlu0 %v1302_v1, %s1266_s27 }
  0x13   :  { %161 = vrot.lane.b32.xlu1 %v1297_v0, %s1267_s30 }
  0x16   :  { %163 = vrot.lane.b32.xlu0 %v1243_v7, %s1267_s30 }
  0x17   :  { %159 = vrot.lane.b32.xlu1 %v1302_v1, %s1267_s30 }
  0x1a   :  { %651 = vrot.lane.b32.xlu0 %v1313_v3, %s1266_s27 }
  0x1b   :  { %653 = vrot.lane.b32.xlu1 %v1244_v10, %s1266_s27  ;;  %v1260_v10 = vld [vmem:[%s1488_s0 + $0x30] sm:$0xff]  }
  0x1e   :  { %649 = vrot.lane.b32.xlu0 %v1319_v4, %s1266_s27 }
  0x1f   :  { %167 = vrot.lane.b32.xlu1 %v1313_v3, %s1267_s30 }
  0x22   :  { %169 = vrot.lane.b32.xlu0 %v1245_v11, %s1267_s30 }
  0x23   :  { %165 = vrot.lane.b32.xlu1 %v1319_v4, %s1267_s30 }
  0x26   :  { %766 = vrot.lane.b32.xlu0 %v1297_v0, %s1269_s12 }
  0x27   :  { %768 = vrot.lane.b32.xlu1 %v1246_v12, %s1269_s12 }
  0x2a   :  { %764 = vrot.lane.b32.xlu0 %v1302_v1, %s1269_s12 }
  0x2b   :  { %282 = vrot.lane.b32.xlu1 %v1297_v0, %s1270_s15 }
  0x2e   :  { %284 = vrot.lane.b32.xlu0 %v1247_v13, %s1270_s15 }
  0x2f   :  { %280 = vrot.lane.b32.xlu1 %v1302_v1, %s1270_s15 }
  0x32   :  { %772 = vrot.lane.b32.xlu0 %v1313_v3, %s1269_s12 }
  0x33   :  { %774 = vrot.lane.b32.xlu1 %v1248_v14, %s1269_s12 }
  0x36   :  { %770 = vrot.lane.b32.xlu0 %v1319_v4, %s1269_s12 }
  0x37   :  { %288 = vrot.lane.b32.xlu1 %v1313_v3, %s1270_s15 }
  0x3a   :  { %290 = vrot.lane.b32.xlu0 %v1249_v15, %s1270_s15  ;;  %v1261_v15 = vld [vmem:[%s1488_s0 + $0x10] sm:$0xff]  }
  0x3b   :  { %286 = vrot.lane.b32.xlu1 %v1319_v4, %s1270_s15 }
  0x3e   :  { %887 = vrot.lane.b32.xlu0 %v1297_v0, %s1271_s22 }
  0x3f   :  { %889 = vrot.lane.b32.xlu1 %v1250_v16, %s1271_s22 }
  0x42   :  { %885 = vrot.lane.b32.xlu0 %v1302_v1, %s1271_s22 }
  0x43   :  { %403 = vrot.lane.b32.xlu1 %v1297_v0, %s1272_s25 }
  0x46   :  { %405 = vrot.lane.b32.xlu0 %v1251_v17, %s1272_s25 }
  0x47   :  { %401 = vrot.lane.b32.xlu1 %v1302_v1, %s1272_s25 }
  0x4a   :  { %893 = vrot.lane.b32.xlu0 %v1313_v3, %s1271_s22 }
  0x4b   :  { %895 = vrot.lane.b32.xlu1 %v1252_v18, %s1271_s22 }
  0x4e   :  { %891 = vrot.lane.b32.xlu0 %v1319_v4, %s1271_s22 }
  0x4f   :  { %409 = vrot.lane.b32.xlu1 %v1313_v3, %s1272_s25 }
  0x52   :  { %411 = vrot.lane.b32.xlu0 %v1253_v19, %s1272_s25 }
  0x53   :  { %407 = vrot.lane.b32.xlu1 %v1319_v4, %s1272_s25 }
  0x56   :  { %1008 = vrot.lane.b32.xlu0 %v1297_v0, %s1273_s5 }
  0x57   :  { %1010 = vrot.lane.b32.xlu1 %v1254_v20, %s1273_s5 }
  0x5a   :  { %1006 = vrot.lane.b32.xlu0 %v1302_v1, %s1273_s5 }
  0x5b   :  { %1014 = vrot.lane.b32.xlu1 %v1313_v3, %s1273_s5 }
  0x5e   :  { %1016 = vrot.lane.b32.xlu0 %v1255_v21, %s1273_s5 }
  0x5f   :  { %1012 = vrot.lane.b32.xlu1 %v1319_v4, %s1273_s5 }
  0x62   :  { %97 = vperm.xlu0 %1232, %v15_v22  }
  0x63   :  { %102 = vperm.xlu1 %1233, %v16_v23  }
  0x74   :  { %v525_v24 = vpop.permute.xlu0 %524 }
  0x75   :  { %v523_v25 = vpop.permute.xlu1 %522 }
  0x76   :  { %v535_v29 = vsel %vm534_vm1, %v523_v25, %v525_v24 }
  0x78   :  { %v527_v26 = vpop.permute.xlu0 %526 }
  0x79   :  { %v531_v27 = vpop.permute.xlu1 %530  ;;  %v536_v28 = vsel %vm534_vm1, %v525_v24, %v527_v26 }
  0x7a   :  { %546 = vmatprep.subr.bf16.mxu0 %v536_v28 }
  0x7b   :  { %547 = vmatpush1.bf16.msra.mxu0 %v535_v29 }
  0x7c   :  { %v533_v30 = vpop.permute.xlu0 %532 }
  0x7d   :  { %v529_v31 = vpop.permute.xlu1 %528  ;;  %v538_v32 = vsel %vm534_vm1, %v531_v27, %v533_v30 }
  0x7e   :  { %548 = vmatprep.subr.bf16.mxu0 %v538_v32  ;;  %v537_v33 = vsel %vm534_vm1, %v529_v31, %v531_v27  ;;  %v1263_v32 = vld [vmem:[%s1488_s0 + $0x38] sm:$0xff]  }
  0x7f   :  { %549 = vmatpush1.bf16.msra.mxu0 %v537_v33 }
  0x80   :  { %v646_v35 = vpop.permute.xlu0 %645 }
  0x81   :  { %v648_v36 = vpop.permute.xlu1 %647 }
  0x82   :  { %v657_v37 = vsel %vm655_vm2, %v646_v35, %v648_v36  ;;  %1130 = vmatmul.mubr.msk.bf16.vlgmr.msra.gmra.mrb[0].mxu0 %vm48_vm0, %v1256_v34 }
  0x83   :  { %667 = vmatprep.subr.bf16.mxu0 %v657_v37  ;;  %699 = vmatprep.mubr.bf16.mxu0 %v1268_v8  ;;  %v1262_v37 = vld [vmem:[%s1488_s0 + $0x18] sm:$0xff]  }
  0x84   :  { %v644_v38 = vpop.permute.xlu0 %643 }
  0x85   :  { %v656_v39 = vsel %vm655_vm2, %v644_v38, %v646_v35  ;;  %v162_v40 = vpop.permute.xlu1 %161 }
  0x86   :  { %668 = vmatpush1.bf16.msra.mxu0 %v656_v39 }
  0x88   :  { %v164_v41 = vpop.permute.xlu0 %163 }
  0x89   :  { %v160_v42 = vpop.permute.xlu1 %159  ;;  %v173_v43 = vsel %vm171_vm3, %v162_v40, %v164_v41 }
  0x8a   :  { %v172_v44 = vsel %vm171_vm3, %v160_v42, %v162_v40  ;;  %183 = vmatprep.subr.bf16.mxu1 %v173_v43 }
  0x8b   :  { %184 = vmatpush1.bf16.msra.mxu1 %v172_v44 }
  0x8c   :  { %v652_v45 = vpop.permute.xlu0 %651 }
  0x8d   :  { %v654_v46 = vpop.permute.xlu1 %653 }
  0x8e   :  { %v659_v47 = vsel %vm655_vm2, %v652_v45, %v654_v46 }
  0x8f   :  { %669 = vmatprep.subr.bf16.mxu0 %v659_v47 }
  0x90   :  { %v650_v48 = vpop.permute.xlu0 %649 }
  0x91   :  { %v658_v49 = vsel %vm655_vm2, %v650_v48, %v652_v45  ;;  %v168_v50 = vpop.permute.xlu1 %167 }
  0x92   :  { %670 = vmatpush1.bf16.msra.mxu0 %v658_v49 }
  0x94   :  { %v170_v52 = vpop.permute.xlu0 %169 }
  0x95   :  { %v166_v53 = vpop.permute.xlu1 %165  ;;  %v175_v54 = vsel %vm171_vm3, %v168_v50, %v170_v52  ;;  %1140 = vmatmul.mubr.msk.bf16.vlgmr.msra.gmra.mrb[0].mxu0 %vm48_vm0, %v1258_v51 }
  0x96   :  { %v174_v55 = vsel %vm171_vm3, %v166_v53, %v168_v50  ;;  %185 = vmatprep.subr.bf16.mxu1 %v175_v54  ;;  %820 = vmatprep.mubr.bf16.mxu0 %v1268_v8 }
  0x97   :  { %186 = vmatpush1.bf16.msra.mxu1 %v174_v55 }
  0x98   :  { %v767_v57 = vpop.permute.xlu0 %766 }
  0x99   :  { %v769_v58 = vpop.permute.xlu1 %768 }
  0x9a   :  { %v778_v59 = vsel %vm776_vm4, %v767_v57, %v769_v58  ;;  %1100 = vmatmul.mubr.msk.bf16.vlgmr.msra.gmra.mrb[0].mxu1 %vm48_vm0, %v1259_v56 }
  0x9b   :  { %788 = vmatprep.subr.bf16.mxu0 %v778_v59  ;;  %336 = vmatprep.mubr.bf16.mxu1 %v1268_v8 }
  0x9c   :  { %v765_v60 = vpop.permute.xlu0 %764 }
  0x9d   :  { %v777_v61 = vsel %vm776_vm4, %v765_v60, %v767_v57  ;;  %v283_v62 = vpop.permute.xlu1 %282 }
  0x9e   :  { %789 = vmatpush1.bf16.msra.mxu0 %v777_v61 }
  0xa0   :  { %v285_v63 = vpop.permute.xlu0 %284 }
  0xa1   :  { %v281_v0 = vpop.permute.xlu1 %280  ;;  %v294_v1 = vsel %vm292_vm5, %v283_v62, %v285_v63 }
  0xa2   :  { %v293_v2 = vsel %vm292_vm5, %v281_v0, %v283_v62  ;;  %304 = vmatprep.subr.bf16.mxu1 %v294_v1 }
  0xa3   :  { %305 = vmatpush1.bf16.msra.mxu1 %v293_v2 }
  0xa4   :  { %v773_v3 = vpop.permute.xlu0 %772 }
  0xa5   :  { %v775_v4 = vpop.permute.xlu1 %774 }
  0xa6   :  { %v780_v5 = vsel %vm776_vm4, %v773_v3, %v775_v4 }
  0xa7   :  { %790 = vmatprep.subr.bf16.mxu0 %v780_v5 }
  0xa8   :  { %v771_v6 = vpop.permute.xlu0 %770 }
  0xa9   :  { %v779_v7 = vsel %vm776_vm4, %v771_v6, %v773_v3  ;;  %v289_v9 = vpop.permute.xlu1 %288 }
  0xaa   :  { %791 = vmatpush1.bf16.msra.mxu0 %v779_v7 }
  0xac   :  { %v291_v11 = vpop.permute.xlu0 %290 }
  0xad   :  { %v287_v12 = vpop.permute.xlu1 %286  ;;  %v296_v13 = vsel %vm292_vm5, %v289_v9, %v291_v11  ;;  %1150 = vmatmul.mubr.msk.bf16.vlgmr.msra.gmra.mrb[0].mxu0 %vm48_vm0, %v1260_v10 }
  0xae   :  { %v295_v14 = vsel %vm292_vm5, %v287_v12, %v289_v9  ;;  %306 = vmatprep.subr.bf16.mxu1 %v296_v13  ;;  %941 = vmatprep.mubr.bf16.mxu0 %v1268_v8 }
  0xaf   :  { %307 = vmatpush1.bf16.msra.mxu1 %v295_v14 }
  0xb0   :  { %v888_v16 = vpop.permute.xlu0 %887 }
  0xb1   :  { %v890_v17 = vpop.permute.xlu1 %889 }
  0xb2   :  { %v899_v18 = vsel %vm897_vm6, %v888_v16, %v890_v17  ;;  %1110 = vmatmul.mubr.msk.bf16.vlgmr.msra.gmra.mrb[0].mxu1 %vm48_vm0, %v1261_v15 }
  0xb3   :  { %909 = vmatprep.subr.bf16.mxu0 %v899_v18  ;;  %457 = vmatprep.mubr.bf16.mxu1 %v1268_v8 }
  0xb4   :  { %v886_v19 = vpop.permute.xlu0 %885 }
  0xb5   :  { %v898_v20 = vsel %vm897_vm6, %v886_v19, %v888_v16  ;;  %v404_v21 = vpop.permute.xlu1 %403 }
  0xb6   :  { %910 = vmatpush1.bf16.msra.mxu0 %v898_v20 }
  0xb8   :  { %v406_v22 = vpop.permute.xlu0 %405 }
  0xb9   :  { %v402_v23 = vpop.permute.xlu1 %401  ;;  %v415_v24 = vsel %vm413_vm7, %v404_v21, %v406_v22 }
  0xba   :  { %v414_v25 = vsel %vm413_vm7, %v402_v23, %v404_v21  ;;  %425 = vmatprep.subr.bf16.mxu1 %v415_v24 }
  0xbb   :  { %426 = vmatpush1.bf16.msra.mxu1 %v414_v25 }
  0xbc   :  { %v894_v26 = vpop.permute.xlu0 %893 }
  0xbd   :  { %v896_v27 = vpop.permute.xlu1 %895 }
  0xbe   :  { %v901_v28 = vsel %vm897_vm6, %v894_v26, %v896_v27 }
  0xbf   :  { %911 = vmatprep.subr.bf16.mxu0 %v901_v28 }
  0xc0   :  { %v892_v29 = vpop.permute.xlu0 %891 }
  0xc1   :  { %v900_v30 = vsel %vm897_vm6, %v892_v29, %v894_v26  ;;  %v410_v31 = vpop.permute.xlu1 %409 }
  0xc2   :  { %912 = vmatpush1.bf16.msra.mxu0 %v900_v30 }
  0xc4   :  { %v412_v33 = vpop.permute.xlu0 %411 }
  0xc5   :  { %v408_v34 = vpop.permute.xlu1 %407  ;;  %v417_v35 = vsel %vm413_vm7, %v410_v31, %v412_v33  ;;  %1160 = vmatmul.mubr.msk.bf16.vlgmr.msra.gmra.mrb[0].mxu0 %vm48_vm0, %v1263_v32 }
  0xc6   :  { %v416_v36 = vsel %vm413_vm7, %v408_v34, %v410_v31  ;;  %427 = vmatprep.subr.bf16.mxu1 %v417_v35  ;;  %1062 = vmatprep.mubr.bf16.mxu0 %v1268_v8  ;;  %v1264_v8 = vld [vmem:[%s1488_s0 + $0x40] sm:$0xff]  }
  0xc7   :  { %428 = vmatpush1.bf16.msra.mxu1 %v416_v36 }
  0xc8   :  { %v1009_v38 = vpop.permute.xlu0 %1008 }
  0xc9   :  { %v1011_v39 = vpop.permute.xlu1 %1010 }
  0xca   :  { %1120 = vmatmul.mubr.msk.bf16.vlgmr.msra.gmra.mrb[0].mxu1 %vm48_vm0, %v1262_v37  ;;  %v1020_v40 = vsel %vm1018_vm8, %v1009_v38, %v1011_v39 }
  0xcb   :  { %1030 = vmatprep.subr.bf16.mxu0 %v1020_v40 }
  0xcc   :  { %v1007_v41 = vpop.permute.xlu0 %1006 }
  0xcd   :  { %v1019_v42 = vsel %vm1018_vm8, %v1007_v41, %v1009_v38  ;;  %v1015_v43 = vpop.permute.xlu1 %1014 }
  0xce   :  { %1031 = vmatpush1.bf16.msra.mxu0 %v1019_v42 }
  0xd0   :  { %v1017_v44 = vpop.permute.xlu0 %1016 }
  0xd1   :  { %v1013_v45 = vpop.permute.xlu1 %1012  ;;  %v1022_v46 = vsel %vm1018_vm8, %v1015_v43, %v1017_v44 }
  0xd2   :  { %v1021_v47 = vsel %vm1018_vm8, %v1013_v45, %v1015_v43  ;;  %1032 = vmatprep.subr.bf16.mxu0 %v1022_v46 }
  0xd3   :  { %1033 = vmatpush1.bf16.msra.mxu0 %v1021_v47 }
  0xd6   :  { %1170 = vmatmul.mubr.msk.bf16.vlgmr.msra.gmra.mrb[0].mxu0 %vm48_vm0, %v1264_v8 }
  0xe1   :  { %v98_v52 = vpop.permute.xlu0 %97 }
  0xe2   :  { %v103_v53 = vpop.permute.xlu1 %102 }
 0x19d   :  { %v459_v48 = vpop.f32.mrb[0].mxu1 }
 0x19e   :  { %v461_v49 = vpop.f32.mrb[1].mxu1  ;;  %v1173_v54 = vadd.f32 %v459_v48, %v98_v52 }
 0x19f   :  { %v463_v50 = vpop.f32.mrb[2].mxu1  ;;  %v1179_v55 = vadd.f32 %v461_v49, %v98_v52 }
 0x1a0   :  { %v465_v51 = vpop.f32.mrb[3].mxu1  ;;  %v1185_v57 = vadd.f32 %v463_v50, %v103_v53 }
 0x1a1   :  { %v1191_v60 = vadd.f32 %v465_v51, %v103_v53 }
 0x1a9   :  { %v1064_v56 = vpop.f32.mrb[0].mxu0 }
 0x1aa   :  { %v1176_v58 = vadd.f32 %v1173_v54, %v1064_v56  ;;  %v1066_v59 = vpop.f32.mrb[1].mxu0 }
 0x1ab   :  { %v1182_v61 = vadd.f32 %v1179_v55, %v1066_v59  ;;  %v1068_v62 = vpop.f32.mrb[2].mxu0 }
 0x1ac   :  { %1077 = vst [vmem:[%s1490_s3] sm:$0xff] %v1176_v58  ;;  %v1188_v63 = vadd.f32 %v1185_v57, %v1068_v62  ;;  %v1070_v0 = vpop.f32.mrb[3].mxu0 }
 0x1ad   :  { %1078 = vst [vmem:[%s1490_s3 + $0x8] sm:$0xff] %v1182_v61  ;;  %v1194_v1 = vadd.f32 %v1191_v60, %v1070_v0 }
 0x1ae   :  { %1079 = vst [vmem:[%s1490_s3 + $0x10] sm:$0xff] %v1188_v63 }
 0x1af   :  { %1080 = vst [vmem:[%s1490_s3 + $0x18] sm:$0xff] %v1194_v1 }

// kernel: pfdm_forward.14
= control target key start
LH: loop header
LB: loop body
LE: loop exit
PB: predicated region body
PF: predicated region fallthrough
CT: control target
= control target key end

     0   :  { %v2450_v1 = vmov 0   ;;  %s2451_s16 = smov 126   ;;  %s2452_s21 = smov 127   ;;  %vm60_vm0 = vcmask 130048   ;;  %vm538_vm1 = vcmask 1031168   ;;  %vm298_vm2 = vcmask 1039360   ;;  %s2776_s1 = inlined_call_operand.vmem [shape: bf16[16,896], index: 1, kind: input, shape index: {}]   ;;  %s2777_s0 = inlined_call_operand.vmem [shape: bf16[9,16,16], index: 0, kind: input, shape index: {}]   ;;  %s2778_s2 = inlined_call_operand.vmem [shape: f32[16,1], index: 2, kind: input, shape index: {}]   ;;  %s2779_s3 = inlined_call_operand.vmem [shape: f32[16,768], index: 3, kind: output, shape index: {}]  }
   0x1   :  { %v2482_v0 = vld [vmem:[%s2776_s1 + $0x4] ss:$28 sps:$4 sm:$0xff]   ;;  %96 = vmatprep.mubr.bf16.mxu1 %v2450_v1  ;;  %586 = vmatprep.mubr.bf16.mxu0 %v2450_v1  ;;  %v2507_v4 = vld [vmem:[%s2776_s1 + $0xc] ss:$28 sps:$4 sm:$0xff]   ;;  %v2516_v5 = vld [vmem:[%s2776_s1 + $0x14] ss:$28 sps:$4 sm:$0xff]  }
   0x2   :  { %v2489_v2 = vld [vmem:[%s2776_s1] ss:$28 sps:$4 sm:$0xff]   ;;  %2422 = vset.pattern.permute.xlu0 %v2450_v1  ;;  %2423 = vset.pattern.permute.xlu1 %v2450_v1  ;;  %v2498_v3 = vld [vmem:[%s2776_s1 + $0x8] ss:$28 sps:$4 sm:$0xff]   ;;  %v2431_v6 = vld [vmem:[%s2776_s1 + $0x18] ss:$28 sps:$4 sm:$0xff]  }
   0x3   :  { %526 = vrot.lane.b32.xlu0 %v2482_v0, %s2451_s16  ;;  %64 = vmatprep.subr.bf16.mxu1 %v2482_v0  ;;  %v2440_v7 = vld [vmem:[%s2777_s0] sm:$0xff]   ;;  %v2532_v8 = vld [vmem:[%s2776_s1 + $0x10] ss:$28 sps:$4 sm:$0xff]   ;;  %s2453_s30 = smov 110   ;;  %v2434_v9 = vld [vmem:[%s2776_s1 + $0x18] ss:$28 sps:$4 sm:$0xff]  }
   0x4   :  { %524 = vrot.lane.b32.xlu1 %v2489_v2, %s2451_s16  ;;  %65 = vmatpush1.bf16.msra.mxu1 %v2489_v2  ;;  %v2435_v10 = vld [vmem:[%s2776_s1 + $0x18] ss:$28 sps:$4 sm:$0xff]   ;;  %s2454_s8 = smov 109   ;;  %s2455_s11 = smov 108   ;;  %v15_v16 = vld [vmem:[%s2778_s2] sm:$0xff]  ;;  %v16_v17 = vld [vmem:[%s2778_s2 + $0x8] sm:$0xff] }
   0x5   :  { %107 = vmatprep.subr.bf16.mxu1 %v2507_v4  ;;  %v2436_v11 = vld [vmem:[%s2776_s1 + $0x18] ss:$28 sps:$4 sm:$0xff]   ;;  %s2456_s14 = smov 92   ;;  %s2457_s17 = smov 91   ;;  %v2442_v32 = vld [vmem:[%s2777_s0 + $0x8] sm:$0xff]   ;;  %vm778_vm3 = vcmask 900096  }
   0x6   :  { %v2437_v12 = vld [vmem:[%s2776_s1 + $0x18] ss:$28 sps:$4 sm:$0xff]   ;;  %s2458_s20 = smov 90   ;;  %vm1018_vm4 = vcmask 891904   ;;  %v2445_v63 = vld [vmem:[%s2777_s0 + $0x20] sm:$0xff]   ;;  %vm1258_vm5 = vcmask 883712  }
   0x7   :  { %528 = vrot.lane.b32.xlu0 %v2498_v3, %s2451_s16  ;;  %2158 = vmatmul.mubr.msk.bf16.vlgmr.msra.gmra.mrb[0].mxu1 %vm60_vm0, %v2440_v7  ;;  %v2438_v13 = vld [vmem:[%s2776_s1 + $0x18] ss:$28 sps:$4 sm:$0xff]   ;;  %vm1498_vm6 = vcmask 752640   ;;  %vm1738_vm7 = vcmask 744448   ;;  %vm1978_vm8 = vcmask 736256  }
   0x8   :  { %286 = vrot.lane.b32.xlu1 %v2482_v0, %s2452_s21  ;;  %108 = vmatpush1.bf16.msra.mxu1 %v2498_v3  ;;  %v2439_v14 = vld [vmem:[%s2776_s1 + $0x18] ss:$28 sps:$4 sm:$0xff]  }
   0x9   :  { %139 = vmatprep.mubr.bf16.mxu1 %v2450_v1  ;;  %150 = vmatprep.subr.bf16.mxu1 %v2516_v5  ;;  %v2441_v15 = vld [vmem:[%s2776_s1 + $0x18] ss:$28 sps:$4 sm:$0xff]  }
   0xa   :  { %v2621_v24 = vld [vmem:[%s2777_s0 + $0x10] sm:$0xff]   ;;  %v2444_v44 = vld [vmem:[%s2777_s0 + $0x18] sm:$0xff]  }
   0xb   :  { %288 = vrot.lane.b32.xlu0 %v2498_v3, %s2452_s21 }
   0xc   :  { %534 = vrot.lane.b32.xlu1 %v2516_v5, %s2451_s16 }
   0xf   :  { %536 = vrot.lane.b32.xlu0 %v2431_v6, %s2451_s16  ;;  %2159 = vmatmul.mubr.msk.bf16.vlgmr.msra.gmra.mrb[4].mxu1 %vm60_vm0, %v2440_v7 }
  0x10   :  { %284 = vrot.lane.b32.xlu1 %v2489_v2, %s2452_s21  ;;  %151 = vmatpush1.bf16.msra.mxu1 %v2532_v8 }
  0x11   :  { %182 = vmatprep.mubr.bf16.mxu1 %v2450_v1 }
  0x13   :  { %532 = vrot.lane.b32.xlu0 %v2532_v8, %s2451_s16 }
  0x14   :  { %290 = vrot.lane.b32.xlu1 %v2507_v4, %s2452_s21 }
  0x17   :  { %292 = vrot.lane.b32.xlu0 %v2532_v8, %s2452_s21  ;;  %2160 = vmatmul.mubr.msk.bf16.vlgmr.msra.gmra.mrb[8].mxu1 %vm60_vm0, %v2440_v7 }
  0x18   :  { %766 = vrot.lane.b32.xlu1 %v2482_v0, %s2453_s30  ;;  %346 = vmatprep.mubr.bf16.mxu1 %v2450_v1 }
  0x1b   :  { %768 = vrot.lane.b32.xlu0 %v2498_v3, %s2453_s30 }
  0x1c   :  { %764 = vrot.lane.b32.xlu1 %v2489_v2, %s2453_s30 }
  0x1f   :  { %294 = vrot.lane.b32.xlu0 %v2516_v5, %s2452_s21 }
  0x20   :  { %296 = vrot.lane.b32.xlu1 %v2434_v9, %s2452_s21 }
  0x23   :  { %774 = vrot.lane.b32.xlu0 %v2516_v5, %s2453_s30 }
  0x24   :  { %776 = vrot.lane.b32.xlu1 %v2435_v10, %s2453_s30 }
  0x27   :  { %772 = vrot.lane.b32.xlu0 %v2532_v8, %s2453_s30 }
  0x28   :  { %530 = vrot.lane.b32.xlu1 %v2507_v4, %s2451_s16 }
  0x2b   :  { %1006 = vrot.lane.b32.xlu0 %v2482_v0, %s2454_s8 }
  0x2c   :  { %1008 = vrot.lane.b32.xlu1 %v2498_v3, %s2454_s8 }
  0x2f   :  { %1004 = vrot.lane.b32.xlu0 %v2489_v2, %s2454_s8 }
  0x30   :  { %1014 = vrot.lane.b32.xlu1 %v2516_v5, %s2454_s8 }
  0x33   :  { %1016 = vrot.lane.b32.xlu0 %v2436_v11, %s2454_s8 }
  0x34   :  { %1012 = vrot.lane.b32.xlu1 %v2532_v8, %s2454_s8 }
  0x37   :  { %770 = vrot.lane.b32.xlu0 %v2507_v4, %s2453_s30 }
  0x38   :  { %1246 = vrot.lane.b32.xlu1 %v2482_v0, %s2455_s11 }
  0x3b   :  { %1248 = vrot.lane.b32.xlu0 %v2498_v3, %s2455_s11 }
  0x3c   :  { %1244 = vrot.lane.b32.xlu1 %v2489_v2, %s2455_s11 }
  0x3f   :  { %1010 = vrot.lane.b32.xlu0 %v2507_v4, %s2454_s8 }
  0x40   :  { %1254 = vrot.lane.b32.xlu1 %v2516_v5, %s2455_s11 }
  0x43   :  { %1256 = vrot.lane.b32.xlu0 %v2437_v12, %s2455_s11 }
  0x44   :  { %1252 = vrot.lane.b32.xlu1 %v2532_v8, %s2455_s11 }
  0x47   :  { %1486 = vrot.lane.b32.xlu0 %v2482_v0, %s2456_s14 }
  0x48   :  { %1488 = vrot.lane.b32.xlu1 %v2498_v3, %s2456_s14 }
  0x4b   :  { %1484 = vrot.lane.b32.xlu0 %v2489_v2, %s2456_s14 }
  0x4c   :  { %1250 = vrot.lane.b32.xlu1 %v2507_v4, %s2455_s11 }
  0x4f   :  { %1494 = vrot.lane.b32.xlu0 %v2516_v5, %s2456_s14 }
  0x50   :  { %1496 = vrot.lane.b32.xlu1 %v2438_v13, %s2456_s14 }
  0x53   :  { %1492 = vrot.lane.b32.xlu0 %v2532_v8, %s2456_s14 }
  0x54   :  { %1490 = vrot.lane.b32.xlu1 %v2507_v4, %s2456_s14 }
  0x57   :  { %1726 = vrot.lane.b32.xlu0 %v2482_v0, %s2457_s17 }
  0x58   :  { %1728 = vrot.lane.b32.xlu1 %v2498_v3, %s2457_s17 }
  0x5b   :  { %1724 = vrot.lane.b32.xlu0 %v2489_v2, %s2457_s17 }
  0x5c   :  { %1734 = vrot.lane.b32.xlu1 %v2516_v5, %s2457_s17 }
  0x5f   :  { %1736 = vrot.lane.b32.xlu0 %v2439_v14, %s2457_s17 }
  0x60   :  { %1732 = vrot.lane.b32.xlu1 %v2532_v8, %s2457_s17 }
  0x63   :  { %1730 = vrot.lane.b32.xlu0 %v2507_v4, %s2457_s17 }
  0x64   :  { %1966 = vrot.lane.b32.xlu1 %v2482_v0, %s2458_s20 }
  0x67   :  { %1968 = vrot.lane.b32.xlu0 %v2498_v3, %s2458_s20 }
  0x68   :  { %1964 = vrot.lane.b32.xlu1 %v2489_v2, %s2458_s20 }
  0x6b   :  { %1970 = vrot.lane.b32.xlu0 %v2507_v4, %s2458_s20 }
  0x6c   :  { %1972 = vrot.lane.b32.xlu1 %v2532_v8, %s2458_s20 }
  0x6f   :  { %1974 = vrot.lane.b32.xlu0 %v2516_v5, %s2458_s20 }
  0x70   :  { %1976 = vrot.lane.b32.xlu1 %v2441_v15, %s2458_s20 }
  0x73   :  { %195 = vperm.xlu0 %2422, %v15_v16  }
  0x74   :  { %200 = vperm.xlu1 %2423, %v16_v17   ;;  %v2446_v17 = vld [vmem:[%s2777_s0 + $0x28] sm:$0xff]  }
  0x75   :  { %v527_v18 = vpop.permute.xlu0 %526 }
  0x76   :  { %v525_v19 = vpop.permute.xlu1 %524 }
  0x77   :  { %v539_v23 = vsel %vm538_vm1, %v525_v19, %v527_v18 }
  0x79   :  { %v2613_v20 = vpop.permute.xlu0 %528 }
  0x7a   :  { %v287_v21 = vpop.permute.xlu1 %286  ;;  %v540_v22 = vsel %vm538_vm1, %v527_v18, %v2613_v20 }
  0x7b   :  { %554 = vmatprep.subr.bf16.mxu0 %v540_v22 }
  0x7c   :  { %555 = vmatpush1.bf16.msra.mxu0 %v539_v23 }
  0x7d   :  { %v289_v25 = vpop.permute.xlu0 %288 }
  0x7e   :  { %v535_v26 = vpop.permute.xlu1 %534  ;;  %v300_v27 = vsel %vm298_vm2, %v287_v21, %v289_v25 }
  0x7f   :  { %314 = vmatprep.subr.bf16.mxu1 %v300_v27  ;;  %2184 = vmatmul.mubr.msk.bf16.vlgmr.msra.gmra.mrb[0].mxu0 %vm60_vm0, %v2621_v24 }
  0x80   :  { %672 = vmatprep.mubr.bf16.mxu0 %v2450_v1 }
  0x81   :  { %v537_v28 = vpop.permute.xlu0 %536 }
  0x82   :  { %v285_v29 = vpop.permute.xlu1 %284  ;;  %v544_v30 = vsel %vm538_vm1, %v535_v26, %v537_v28 }
  0x83   :  { %v299_v31 = vsel %vm298_vm2, %v285_v29, %v287_v21  ;;  %640 = vmatprep.subr.bf16.mxu0 %v544_v30 }
  0x84   :  { %315 = vmatpush1.bf16.msra.mxu1 %v299_v31 }
  0x85   :  { %v533_v33 = vpop.permute.xlu0 %532 }
  0x86   :  { %v543_v34 = vsel %vm538_vm1, %v533_v33, %v535_v26  ;;  %v291_v35 = vpop.permute.xlu1 %290 }
  0x87   :  { %2171 = vmatmul.mubr.msk.bf16.vlgmr.msra.gmra.mrb[0].mxu1 %vm60_vm0, %v2442_v32  ;;  %641 = vmatpush1.bf16.msra.mxu0 %v543_v34  ;;  %v301_v39 = vsel %vm298_vm2, %v289_v25, %v291_v35 }
  0x88   :  { %389 = vmatprep.mubr.bf16.mxu1 %v2450_v1 }
  0x89   :  { %v293_v36 = vpop.permute.xlu0 %292 }
  0x8a   :  { %v767_v37 = vpop.permute.xlu1 %766  ;;  %v302_v38 = vsel %vm298_vm2, %v291_v35, %v293_v36  ;;  %2186 = vmatmul.mubr.msk.bf16.vlgmr.msra.gmra.mrb[4].mxu0 %vm60_vm0, %v2621_v24 }
  0x8b   :  { %357 = vmatprep.subr.bf16.mxu1 %v302_v38  ;;  %826 = vmatprep.mubr.bf16.mxu0 %v2450_v1 }
  0x8c   :  { %358 = vmatpush1.bf16.msra.mxu1 %v301_v39 }
  0x8d   :  { %v769_v40 = vpop.permute.xlu0 %768 }
  0x8e   :  { %v765_v41 = vpop.permute.xlu1 %764  ;;  %v780_v42 = vsel %vm778_vm3, %v767_v37, %v769_v40 }
  0x8f   :  { %v779_v43 = vsel %vm778_vm3, %v765_v41, %v767_v37  ;;  %2172 = vmatmul.mubr.msk.bf16.vlgmr.msra.gmra.mrb[4].mxu1 %vm60_vm0, %v2442_v32  ;;  %794 = vmatprep.subr.bf16.mxu0 %v780_v42 }
  0x90   :  { %795 = vmatpush1.bf16.msra.mxu0 %v779_v43  ;;  %432 = vmatprep.mubr.bf16.mxu1 %v2450_v1 }
  0x91   :  { %v295_v45 = vpop.permute.xlu0 %294 }
  0x92   :  { %v303_v46 = vsel %vm298_vm2, %v293_v36, %v295_v45  ;;  %v297_v47 = vpop.permute.xlu1 %296 }
  0x93   :  { %v304_v48 = vsel %vm298_vm2, %v295_v45, %v297_v47  ;;  %2197 = vmatmul.mubr.msk.bf16.vlgmr.msra.gmra.mrb[0].mxu0 %vm60_vm0, %v2444_v44  ;;  %v2448_v47 = vld [vmem:[%s2777_s0 + $0x38] sm:$0xff]  }
  0x94   :  { %400 = vmatprep.subr.bf16.mxu1 %v304_v48  ;;  %912 = vmatprep.mubr.bf16.mxu0 %v2450_v1 }
  0x95   :  { %401 = vmatpush1.bf16.msra.mxu1 %v303_v46  ;;  %v775_v49 = vpop.permute.xlu0 %774 }
  0x96   :  { %v777_v50 = vpop.permute.xlu1 %776 }
  0x97   :  { %v784_v51 = vsel %vm778_vm3, %v775_v49, %v777_v50 }
  0x98   :  { %2173 = vmatmul.mubr.msk.bf16.vlgmr.msra.gmra.mrb[8].mxu1 %vm60_vm0, %v2442_v32  ;;  %880 = vmatprep.subr.bf16.mxu0 %v784_v51  ;;  %v2447_v32 = vld [vmem:[%s2777_s0 + $0x30] sm:$0xff]  }
  0x99   :  { %v773_v52 = vpop.permute.xlu0 %772  ;;  %629 = vmatprep.mubr.bf16.mxu1 %v2450_v1 }
  0x9a   :  { %v783_v53 = vsel %vm778_vm3, %v773_v52, %v775_v49  ;;  %v531_v54 = vpop.permute.xlu1 %530 }
  0x9b   :  { %v541_v55 = vsel %vm538_vm1, %v2613_v20, %v531_v54  ;;  %v542_v56 = vsel %vm538_vm1, %v531_v54, %v533_v33  ;;  %881 = vmatpush1.bf16.msra.mxu0 %v783_v53 }
  0x9c   :  { %597 = vmatprep.subr.bf16.mxu1 %v542_v56 }
  0x9d   :  { %598 = vmatpush1.bf16.msra.mxu1 %v541_v55  ;;  %v1007_v57 = vpop.permute.xlu0 %1006 }
  0x9e   :  { %v1009_v58 = vpop.permute.xlu1 %1008  ;;  %2199 = vmatmul.mubr.msk.bf16.vlgmr.msra.gmra.mrb[4].mxu0 %vm60_vm0, %v2444_v44 }
  0x9f   :  { %v1020_v59 = vsel %vm1018_vm4, %v1007_v57, %v1009_v58  ;;  %1066 = vmatprep.mubr.bf16.mxu0 %v2450_v1 }
  0xa0   :  { %1034 = vmatprep.subr.bf16.mxu0 %v1020_v59  ;;  %2185 = vmatmul.mubr.msk.bf16.vlgmr.msra.gmra.mrb[4].mxu1 %vm60_vm0, %v2621_v24 }
  0xa1   :  { %v1005_v60 = vpop.permute.xlu0 %1004  ;;  %869 = vmatprep.mubr.bf16.mxu1 %v2450_v1 }
  0xa2   :  { %v1019_v61 = vsel %vm1018_vm4, %v1005_v60, %v1007_v57  ;;  %v1015_v62 = vpop.permute.xlu1 %1014 }
  0xa3   :  { %1035 = vmatpush1.bf16.msra.mxu0 %v1019_v61 }
  0xa5   :  { %v1017_v0 = vpop.permute.xlu0 %1016 }
  0xa6   :  { %v1013_v2 = vpop.permute.xlu1 %1012  ;;  %2210 = vmatmul.mubr.msk.bf16.vlgmr.msra.gmra.mrb[0].mxu0 %vm60_vm0, %v2445_v63  ;;  %v1024_v3 = vsel %vm1018_vm4, %v1015_v62, %v1017_v0  ;;  %v2449_v0 = vld [vmem:[%s2777_s0 + $0x40] sm:$0xff]  }
  0xa7   :  { %v1023_v4 = vsel %vm1018_vm4, %v1013_v2, %v1015_v62  ;;  %1120 = vmatprep.subr.bf16.mxu0 %v1024_v3  ;;  %1152 = vmatprep.mubr.bf16.mxu0 %v2450_v1 }
  0xa8   :  { %1121 = vmatpush1.bf16.msra.mxu0 %v1023_v4 }
  0xa9   :  { %v771_v5 = vpop.permute.xlu0 %770 }
  0xaa   :  { %v781_v6 = vsel %vm778_vm3, %v769_v40, %v771_v5  ;;  %v1247_v7 = vpop.permute.xlu1 %1246  ;;  %v782_v8 = vsel %vm778_vm3, %v771_v5, %v773_v52 }
  0xab   :  { %837 = vmatprep.subr.bf16.mxu1 %v782_v8 }
  0xac   :  { %838 = vmatpush1.bf16.msra.mxu1 %v781_v6 }
  0xad   :  { %v1249_v9 = vpop.permute.xlu0 %1248 }
  0xae   :  { %v1245_v10 = vpop.permute.xlu1 %1244  ;;  %2212 = vmatmul.mubr.msk.bf16.vlgmr.msra.gmra.mrb[4].mxu0 %vm60_vm0, %v2445_v63  ;;  %v1260_v11 = vsel %vm1258_vm5, %v1247_v7, %v1249_v9 }
  0xaf   :  { %v1259_v12 = vsel %vm1258_vm5, %v1245_v10, %v1247_v7  ;;  %2198 = vmatmul.mubr.msk.bf16.vlgmr.msra.gmra.mrb[4].mxu1 %vm60_vm0, %v2444_v44  ;;  %1274 = vmatprep.subr.bf16.mxu0 %v1260_v11 }
  0xb0   :  { %1275 = vmatpush1.bf16.msra.mxu0 %v1259_v12  ;;  %1306 = vmatprep.mubr.bf16.mxu0 %v2450_v1 }
  0xb1   :  { %v1011_v13 = vpop.permute.xlu0 %1010  ;;  %1109 = vmatprep.mubr.bf16.mxu1 %v2450_v1 }
  0xb2   :  { %v1021_v14 = vsel %vm1018_vm4, %v1009_v58, %v1011_v13  ;;  %v1255_v15 = vpop.permute.xlu1 %1254  ;;  %v1022_v16 = vsel %vm1018_vm4, %v1011_v13, %v1013_v2 }
  0xb3   :  { %1077 = vmatprep.subr.bf16.mxu1 %v1022_v16 }
  0xb4   :  { %1078 = vmatpush1.bf16.msra.mxu1 %v1021_v14 }
  0xb5   :  { %v1257_v18 = vpop.permute.xlu0 %1256 }
  0xb6   :  { %v1253_v19 = vpop.permute.xlu1 %1252  ;;  %2223 = vmatmul.mubr.msk.bf16.vlgmr.msra.gmra.mrb[0].mxu0 %vm60_vm0, %v2446_v17  ;;  %v1264_v20 = vsel %vm1258_vm5, %v1255_v15, %v1257_v18 }
  0xb7   :  { %v1263_v21 = vsel %vm1258_vm5, %v1253_v19, %v1255_v15  ;;  %1360 = vmatprep.subr.bf16.mxu0 %v1264_v20  ;;  %1392 = vmatprep.mubr.bf16.mxu0 %v2450_v1 }
  0xb8   :  { %1361 = vmatpush1.bf16.msra.mxu0 %v1263_v21 }
  0xb9   :  { %v1487_v22 = vpop.permute.xlu0 %1486 }
  0xba   :  { %v1489_v23 = vpop.permute.xlu1 %1488 }
  0xbb   :  { %2211 = vmatmul.mubr.msk.bf16.vlgmr.msra.gmra.mrb[4].mxu1 %vm60_vm0, %v2445_v63  ;;  %v1500_v24 = vsel %vm1498_vm6, %v1487_v22, %v1489_v23 }
  0xbc   :  { %1514 = vmatprep.subr.bf16.mxu0 %v1500_v24  ;;  %1349 = vmatprep.mubr.bf16.mxu1 %v2450_v1 }
  0xbd   :  { %v1485_v25 = vpop.permute.xlu0 %1484 }
  0xbe   :  { %v1499_v26 = vsel %vm1498_vm6, %v1485_v25, %v1487_v22  ;;  %v1251_v27 = vpop.permute.xlu1 %1250  ;;  %2225 = vmatmul.mubr.msk.bf16.vlgmr.msra.gmra.mrb[4].mxu0 %vm60_vm0, %v2446_v17 }
  0xbf   :  { %v1261_v28 = vsel %vm1258_vm5, %v1249_v9, %v1251_v27  ;;  %v1262_v29 = vsel %vm1258_vm5, %v1251_v27, %v1253_v19  ;;  %1515 = vmatpush1.bf16.msra.mxu0 %v1499_v26  ;;  %1546 = vmatprep.mubr.bf16.mxu0 %v2450_v1 }
  0xc0   :  { %1317 = vmatprep.subr.bf16.mxu1 %v1262_v29 }
  0xc1   :  { %1318 = vmatpush1.bf16.msra.mxu1 %v1261_v28  ;;  %v1495_v30 = vpop.permute.xlu0 %1494 }
  0xc2   :  { %v1497_v31 = vpop.permute.xlu1 %1496 }
  0xc3   :  { %v1504_v33 = vsel %vm1498_vm6, %v1495_v30, %v1497_v31 }
  0xc4   :  { %1600 = vmatprep.subr.bf16.mxu0 %v1504_v33 }
  0xc5   :  { %v1493_v34 = vpop.permute.xlu0 %1492 }
  0xc6   :  { %v1503_v35 = vsel %vm1498_vm6, %v1493_v34, %v1495_v30  ;;  %v1491_v36 = vpop.permute.xlu1 %1490  ;;  %2236 = vmatmul.mubr.msk.bf16.vlgmr.msra.gmra.mrb[0].mxu0 %vm60_vm0, %v2447_v32 }
  0xc7   :  { %v1501_v37 = vsel %vm1498_vm6, %v1489_v23, %v1491_v36  ;;  %2224 = vmatmul.mubr.msk.bf16.vlgmr.msra.gmra.mrb[4].mxu1 %vm60_vm0, %v2446_v17  ;;  %v1502_v38 = vsel %vm1498_vm6, %v1491_v36, %v1493_v34  ;;  %1601 = vmatpush1.bf16.msra.mxu0 %v1503_v35 }
  0xc8   :  { %1557 = vmatprep.subr.bf16.mxu1 %v1502_v38  ;;  %1632 = vmatprep.mubr.bf16.mxu0 %v2450_v1 }
  0xc9   :  { %1558 = vmatpush1.bf16.msra.mxu1 %v1501_v37  ;;  %v1727_v39 = vpop.permute.xlu0 %1726  ;;  %1589 = vmatprep.mubr.bf16.mxu1 %v2450_v1 }
  0xca   :  { %v1729_v40 = vpop.permute.xlu1 %1728 }
  0xcb   :  { %v1740_v41 = vsel %vm1738_vm7, %v1727_v39, %v1729_v40 }
  0xcc   :  { %1754 = vmatprep.subr.bf16.mxu0 %v1740_v41 }
  0xcd   :  { %v1725_v42 = vpop.permute.xlu0 %1724 }
  0xce   :  { %v1739_v43 = vsel %vm1738_vm7, %v1725_v42, %v1727_v39  ;;  %2238 = vmatmul.mubr.msk.bf16.vlgmr.msra.gmra.mrb[4].mxu0 %vm60_vm0, %v2447_v32  ;;  %v1735_v44 = vpop.permute.xlu1 %1734 }
  0xcf   :  { %1755 = vmatpush1.bf16.msra.mxu0 %v1739_v43  ;;  %1786 = vmatprep.mubr.bf16.mxu0 %v2450_v1 }
  0xd1   :  { %v1737_v45 = vpop.permute.xlu0 %1736 }
  0xd2   :  { %v1733_v46 = vpop.permute.xlu1 %1732  ;;  %v1744_v48 = vsel %vm1738_vm7, %v1735_v44, %v1737_v45 }
  0xd3   :  { %2237 = vmatmul.mubr.msk.bf16.vlgmr.msra.gmra.mrb[4].mxu1 %vm60_vm0, %v2447_v32  ;;  %1840 = vmatprep.subr.bf16.mxu0 %v1744_v48  ;;  %v1743_v49 = vsel %vm1738_vm7, %v1733_v46, %v1735_v44 }
  0xd4   :  { %1829 = vmatprep.mubr.bf16.mxu1 %v2450_v1 }
  0xd5   :  { %v1731_v50 = vpop.permute.xlu0 %1730 }
  0xd6   :  { %v1741_v51 = vsel %vm1738_vm7, %v1729_v40, %v1731_v50  ;;  %2249 = vmatmul.mubr.msk.bf16.vlgmr.msra.gmra.mrb[0].mxu0 %vm60_vm0, %v2448_v47  ;;  %v1742_v52 = vsel %vm1738_vm7, %v1731_v50, %v1733_v46  ;;  %v1967_v53 = vpop.permute.xlu1 %1966 }
  0xd7   :  { %1797 = vmatprep.subr.bf16.mxu1 %v1742_v52  ;;  %1841 = vmatpush1.bf16.msra.mxu0 %v1743_v49 }
  0xd8   :  { %1798 = vmatpush1.bf16.msra.mxu1 %v1741_v51  ;;  %1872 = vmatprep.mubr.bf16.mxu0 %v2450_v1 }
  0xd9   :  { %v1969_v54 = vpop.permute.xlu0 %1968 }
  0xda   :  { %v1965_v55 = vpop.permute.xlu1 %1964  ;;  %v1980_v56 = vsel %vm1978_vm8, %v1967_v53, %v1969_v54 }
  0xdb   :  { %1994 = vmatprep.subr.bf16.mxu0 %v1980_v56  ;;  %v1979_v57 = vsel %vm1978_vm8, %v1965_v55, %v1967_v53 }
  0xdd   :  { %v1971_v58 = vpop.permute.xlu0 %1970 }
  0xde   :  { %2251 = vmatmul.mubr.msk.bf16.vlgmr.msra.gmra.mrb[4].mxu0 %vm60_vm0, %v2448_v47  ;;  %v1981_v59 = vsel %vm1978_vm8, %v1969_v54, %v1971_v58  ;;  %v1973_v60 = vpop.permute.xlu1 %1972 }
  0xdf   :  { %2250 = vmatmul.mubr.msk.bf16.vlgmr.msra.gmra.mrb[4].mxu1 %vm60_vm0, %v2448_v47  ;;  %1995 = vmatpush1.bf16.msra.mxu0 %v1979_v57  ;;  %v1982_v61 = vsel %vm1978_vm8, %v1971_v58, %v1973_v60 }
  0xe0   :  { %2037 = vmatprep.subr.bf16.mxu1 %v1982_v61  ;;  %2026 = vmatprep.mubr.bf16.mxu0 %v2450_v1 }
  0xe1   :  { %2038 = vmatpush1.bf16.msra.mxu1 %v1981_v59  ;;  %v1975_v62 = vpop.permute.xlu0 %1974  ;;  %2069 = vmatprep.mubr.bf16.mxu1 %v2450_v1 }
  0xe2   :  { %v1977_v63 = vpop.permute.xlu1 %1976  ;;  %v1983_v3 = vsel %vm1978_vm8, %v1973_v60, %v1975_v62 }
  0xe3   :  { %v1984_v2 = vsel %vm1978_vm8, %v1975_v62, %v1977_v63 }
  0xe4   :  { %2080 = vmatprep.subr.bf16.mxu0 %v1984_v2 }
  0xe6   :  { %2262 = vmatmul.mubr.msk.bf16.vlgmr.msra.gmra.mrb[0].mxu0 %vm60_vm0, %v2449_v0 }
  0xe7   :  { %2081 = vmatpush1.bf16.msra.mxu0 %v1983_v3  ;;  %2112 = vmatprep.mubr.bf16.mxu0 %v2450_v1 }
  0xeb   :  { %2263 = vmatmul.mubr.msk.bf16.vlgmr.msra.gmra.mrb[4].mxu1 %vm60_vm0, %v2449_v0 }
  0xee   :  { %2264 = vmatmul.mubr.msk.bf16.vlgmr.msra.gmra.mrb[4].mxu0 %vm60_vm0, %v2449_v0 }
  0xf2   :  { %v196_v12 = vpop.permute.xlu0 %195 }
  0xf3   :  { %v201_v13 = vpop.permute.xlu1 %200 }
 0x15a   :  { %v348_v4 = vpop.f32.mrb[0].mxu1 }
 0x15b   :  { %v350_v5 = vpop.f32.mrb[1].mxu1  ;;  %v2267_v14 = vadd.f32 %v348_v4, %v196_v12 }
 0x15c   :  { %v352_v6 = vpop.f32.mrb[2].mxu1  ;;  %v2273_v15 = vadd.f32 %v350_v5, %v196_v12 }
 0x15d   :  { %v354_v7 = vpop.f32.mrb[3].mxu1  ;;  %v2279_v17 = vadd.f32 %v352_v6, %v201_v13 }
 0x15e   :  { %v2285_v19 = vadd.f32 %v354_v7, %v201_v13 }
 0x16b   :  { %v434_v8 = vpop.f32.mrb[8].mxu1 }
 0x16c   :  { %v436_v9 = vpop.f32.mrb[9].mxu1  ;;  %v2303_v28 = vadd.f32 %v434_v8, %v196_v12 }
 0x16d   :  { %v438_v10 = vpop.f32.mrb[10].mxu1  ;;  %v2309_v31 = vadd.f32 %v436_v9, %v196_v12 }
 0x16e   :  { %v440_v11 = vpop.f32.mrb[11].mxu1  ;;  %v2315_v35 = vadd.f32 %v438_v10, %v201_v13 }
 0x16f   :  { %v2321_v39 = vadd.f32 %v440_v11, %v201_v13 }
 0x1b9   :  { %v2028_v16 = vpop.f32.mrb[0].mxu0 }
 0x1ba   :  { %v2270_v18 = vadd.f32 %v2267_v14, %v2028_v16  ;;  %v2030_v1 = vpop.f32.mrb[1].mxu0 }
 0x1bb   :  { %v2276_v20 = vadd.f32 %v2273_v15, %v2030_v1  ;;  %v2032_v21 = vpop.f32.mrb[2].mxu0 }
 0x1bc   :  { %2135 = vst [vmem:[%s2779_s3] sm:$0xff] %v2270_v18  ;;  %v2282_v22 = vadd.f32 %v2279_v17, %v2032_v21  ;;  %v2034_v23 = vpop.f32.mrb[3].mxu0 }
 0x1bd   :  { %2136 = vst [vmem:[%s2779_s3 + $0x8] sm:$0xff] %v2276_v20  ;;  %v2288_v24 = vadd.f32 %v2285_v19, %v2034_v23 }
 0x1be   :  { %2141 = vst [vmem:[%s2779_s3 + $0x30] sm:$0xff] %v2282_v22  ;;  %v2071_v25 = vpop.f32.mrb[4].mxu1 }
 0x1bf   :  { %2142 = vst [vmem:[%s2779_s3 + $0x38] sm:$0xff] %v2288_v24  ;;  %v2291_v26 = vadd.f32 %v2071_v25, %v196_v12  ;;  %v2073_v27 = vpop.f32.mrb[5].mxu1 }
 0x1c0   :  { %v2294_v29 = vadd.f32 %v2073_v27, %v196_v12  ;;  %v2075_v30 = vpop.f32.mrb[6].mxu1 }
 0x1c1   :  { %2137 = vst [vmem:[%s2779_s3 + $0x10] sm:$0xff] %v2291_v26  ;;  %v2297_v32 = vadd.f32 %v2075_v30, %v201_v13  ;;  %v2077_v33 = vpop.f32.mrb[7].mxu1  ;;  %v2114_v34 = vpop.f32.mrb[4].mxu0 }
 0x1c2   :  { %2138 = vst [vmem:[%s2779_s3 + $0x18] sm:$0xff] %v2294_v29  ;;  %v2300_v36 = vadd.f32 %v2077_v33, %v201_v13  ;;  %v2306_v37 = vadd.f32 %v2303_v28, %v2114_v34  ;;  %v2116_v38 = vpop.f32.mrb[5].mxu0 }
 0x1c3   :  { %2143 = vst [vmem:[%s2779_s3 + $0x40] sm:$0xff] %v2297_v32  ;;  %v2312_v40 = vadd.f32 %v2309_v31, %v2116_v38  ;;  %v2118_v41 = vpop.f32.mrb[6].mxu0 }
 0x1c4   :  { %2144 = vst [vmem:[%s2779_s3 + $0x48] sm:$0xff] %v2300_v36  ;;  %2139 = vst [vmem:[%s2779_s3 + $0x20] sm:$0xff] %v2306_v37  ;;  %v2318_v42 = vadd.f32 %v2315_v35, %v2118_v41  ;;  %v2120_v43 = vpop.f32.mrb[7].mxu0 }
 0x1c5   :  { %2140 = vst [vmem:[%s2779_s3 + $0x28] sm:$0xff] %v2312_v40  ;;  %v2324_v44 = vadd.f32 %v2321_v39, %v2120_v43 }
 0x1c6   :  { %2145 = vst [vmem:[%s2779_s3 + $0x50] sm:$0xff] %v2318_v42 }
 0x1c7   :  { %2146 = vst [vmem:[%s2779_s3 + $0x58] sm:$0xff] %v2324_v44 }

</bundles_post_ra>
